<compile_context>
chip_gen: v5e
topology: v5e:2x2
jax: 0.10.0
libtpu: 0.0.40
codegen_flags: <defaults>
</compile_context>

<pallas_src>
import functools
import math

import numpy as np

import jax
import jax.numpy as jnp
from jax import lax
from jax.experimental import pallas as pl
from jax.experimental.pallas import tpu as pltpu


def _mhsa_kernel(x_ref, w_ref, perm_ref, mask_ref, o_ref, *, n_heads,
                 matmul_dtype):
    """Fused QKV + block-diagonal multi-head attention + tanh for one tile.

    x_ref    : (rows_total, D)   rows_total = edges_per_tile * N
    w_ref    : (D, 3D)           [Wq|Wk|Wv], contiguous-head cols, Wq pre-scaled
    perm_ref : (D, D)            0/1 matrix: contiguous-head -> interleaved cols
    mask_ref : (r_sub, r_sub)    additive mask (0 valid / -1e30 masked)
    o_ref    : (rows_total, D)
    """
    rows_total, D = x_ref.shape
    d_h = D // n_heads
    r_sub = mask_ref.shape[0]              # block-diagonal score rows
    rows_sub = r_sub // n_heads            # edges_per_block * N
    n_sub = rows_total // rows_sub         # sub-tiles per grid step

    # One MXU pass for all three projections (bf16 operands, f32 accumulate).
    x = x_ref[...].astype(matmul_dtype)
    w = w_ref[...].astype(matmul_dtype)
    qkv = jnp.dot(x, w, preferred_element_type=jnp.float32)   # (rows_total, 3D)

    mask = mask_ref[...]                                       # hoisted load

    def stack_heads(a):
        # (rows_sub, H*d_h) -> (H*rows_sub, d_h): heads move to the sublane
        # axis so every (edge, head) attention is a diagonal block of ONE
        # score matmul (static lane slices + sublane concat only).
        return jnp.concatenate(
            [a[:, h * d_h:(h + 1) * d_h] for h in range(n_heads)], axis=0)

    outs = []
    for t in range(n_sub):                 # tiny static unroll (<= 4)
        blk = qkv[t * rows_sub:(t + 1) * rows_sub, :]
        q_r = stack_heads(blk[:, :D])                       # (r_sub, d_h)
        k_r = stack_heads(blk[:, D:2 * D])
        v_r = stack_heads(blk[:, 2 * D:])

        # q @ k^T without materializing k^T (contract the feature dims).
        s = lax.dot_general(q_r, k_r, (((1,), (1,)), ((), ())),
                            preferred_element_type=jnp.float32)  # (r_sub, r_sub)
        s = s + mask                       # off-block / self-loop -> -1e30

        # One numerically-stable softmax for every (edge, head) block; masked
        # entries underflow to exactly 0 after the row-max subtraction.
        s = s - jnp.max(s, axis=-1, keepdims=True)
        e = jnp.exp(s)
        probs = e / jnp.sum(e, axis=-1, keepdims=True)      # exact divide

        pv = jnp.dot(probs.astype(matmul_dtype), v_r.astype(matmul_dtype),
                     preferred_element_type=jnp.float32)    # (r_sub, d_h)

        # Heads back onto the lane axis -> (rows_sub, D) contiguous-head cols.
        outs.append(jnp.concatenate(
            [pv[h * rows_sub:(h + 1) * rows_sub, :] for h in range(n_heads)],
            axis=1))

    out = outs[0] if n_sub == 1 else jnp.concatenate(outs, axis=0)

    # Single constant 0/1 matmul restores the module's interleaved output
    # column layout (hoisted out of all loops); tanh is elementwise so
    # applying it after the permutation matches the PyTorch order.
    out = jnp.dot(out, perm_ref[...], preferred_element_type=jnp.float32)
    o_ref[...] = jnp.tanh(out)


def prepare_mhsa_weights(Wq, Wk, Wv, n_heads):
    """One-time weight preprocessing (not in the hot path).

    Folds torch's head-interleave column permutation and the 1/sqrt(d_h) scale
    into the weights, fuses [Wq | Wk | Wv] into one (D, 3D) matrix, and builds
    the constant (D, D) 0/1 matrix mapping the contiguous-head output layout
    back to the module's interleaved layout.
    """
    D = Wq.shape[0]
    assert n_heads > 1, "No. of attention heads must be more than 1"
    assert D % n_heads == 0, "dimensions must be a multiple of n_heads"
    d_h = D // n_heads

    def to_contiguous_heads(W):
        # contiguous column (h*d_h + i)  <-  interleaved column (i*n_heads + h)
        return W.reshape(D, d_h, n_heads).transpose(0, 2, 1).reshape(D, D)

    scale = 1.0 / math.sqrt(d_h)
    W_qkv = jnp.concatenate(
        [to_contiguous_heads(Wq) * scale,      # fold softmax scale into Wq
         to_contiguous_heads(Wk),
         to_contiguous_heads(Wv)], axis=1).astype(jnp.float32)      # (D, 3D)

    src = np.arange(D)                         # contiguous index h*d_h + i
    dst = (src % d_h) * n_heads + src // d_h   # interleaved index i*H + h
    perm = np.zeros((D, D), np.float32)
    perm[src, dst] = 1.0
    return W_qkv, jnp.asarray(perm)


def multihead_self_attention_batched(x, W_qkv, out_perm, n_heads, *,
                                     self_loop=False,
                                     matmul_dtype=jnp.bfloat16):
    """Batched forward: x is (B, N, D) = B independent hyperedges of N nodes."""
    B, N, D = x.shape
    assert D % n_heads == 0
    d_h = D // n_heads
    del d_h  # (folded into the prepared weights)

    # ---- tile plan ---------------------------------------------------------
    # edges per block-diagonal attention sub-tile: ~128 score rows fills one
    # vreg / MXU pass; sub-tiles per grid step amortize the per-step overhead.
    epb = max(1, 128 // (N * n_heads))
    epb = min(epb, B)
    epb *= 8 // math.gcd(epb * N, 8)          # sublane (x8) alignment
    bpt = max(1, min(4, -(-B // epb)))        # sub-tiles per grid step
    et = epb * bpt                            # edges per grid step
    B_pad = -(-B // et) * et
    rows_tile = et * N
    r_sub = epb * N * n_heads                 # block-diagonal score rows

    # ---- additive attention mask (host constant, VMEM-resident) ------------
    # sub-tile row ordering is head-major: r = h*(epb*N) + e*N + n
    r = np.arange(r_sub)
    h_id = r // (epb * N)
    e_id = (r % (epb * N)) // N
    valid = (h_id[:, None] == h_id[None, :]) & (e_id[:, None] == e_id[None, :])
    if self_loop:
        valid &= r[:, None] != r[None, :]     # mask node-attends-to-itself
    attn_mask = jnp.asarray(np.where(valid, 0.0, -1e30), dtype=jnp.float32)

    # ---- flatten + pad batch (padded edges are zeros -> finite garbage,
    #      sliced off below; never NaN) --------------------------------------
    x_flat = x.reshape(B * N, D).astype(jnp.float32)
    if B_pad != B:
        x_flat = jnp.pad(x_flat, ((0, (B_pad - B) * N), (0, 0)))

    kern = functools.partial(_mhsa_kernel, n_heads=n_heads,
                             matmul_dtype=matmul_dtype)
    out_flat = pl.pallas_call(
        kern,
        out_shape=jax.ShapeDtypeStruct((B_pad * N, D), jnp.float32),
        grid_spec=pltpu.PrefetchScalarGridSpec(
            num_scalar_prefetch=0,
            grid=(B_pad // et,),
            in_specs=[
                # per-step slab of `et` hyperedges stacked along sublanes
                pl.BlockSpec((rows_tile, D), lambda b: (b, 0)),
                # constant index_maps: fused QKV weight, output permutation and
                # additive mask stay VMEM-resident across every grid step
                pl.BlockSpec((D, 3 * D), lambda b: (0, 0)),
                pl.BlockSpec((D, D), lambda b: (0, 0)),
                pl.BlockSpec((r_sub, r_sub), lambda b: (0, 0)),
            ],
            out_specs=pl.BlockSpec((rows_tile, D), lambda b: (b, 0)),
        ),
        # Edge axis is embarrassingly parallel: lets v7x split it across its
        # two TensorCores (harmless on single-TC v5e/v6e).  No vmem_limit_bytes
        # override: the per-step footprint is a few hundred KB.
        compiler_params=pltpu.CompilerParams(
            dimension_semantics=("parallel",)),
    )(x_flat, W_qkv, out_perm, attn_mask)

    return out_flat[:B * N].reshape(B, N, D)


def multihead_self_attention(node_embeddings, W_qkv, out_perm, n_heads,
                             self_loop=False, **kwargs):
    """Module-faithful single-hyperedge call: x is (N, D) (or (D,))."""
    x = node_embeddings
    if x.ndim < 2:
        x = x[None, :]
    return multihead_self_attention_batched(
        x[None], W_qkv, out_perm, n_heads, self_loop=self_loop, **kwargs)[0]


def _reference_edge(x, Wq, Wk, Wv, n_heads, self_loop):
    """Pure-JAX replica of the PyTorch forward (interleaved head views)."""
    N, D = x.shape
    d_h = D // n_heads
    q = (x @ Wq).reshape(N, d_h, n_heads).transpose(2, 0, 1)
    k = (x @ Wk).reshape(N, d_h, n_heads).transpose(2, 1, 0)
    v = (x @ Wv).reshape(N, d_h, n_heads).transpose(2, 0, 1)
    sim = jnp.matmul(q, k) / math.sqrt(d_h)
    if self_loop:
        sim = jnp.where(jnp.eye(N, dtype=bool)[None], -jnp.inf, sim)
    out = jnp.matmul(jax.nn.softmax(sim, axis=2), v)
    return jnp.tanh(out.transpose(1, 2, 0).reshape(N, D))


if __name__ == "__main__":
    # B hyperedges of N nodes with D-dim embeddings and H attention heads.
    B, N, D, H = 64, 8, 32, 4

    key = jax.random.PRNGKey(0)
    kx, kq, kk, kv = jax.random.split(key, 4)

    # Deterministic xavier_normal_ replication: std = sqrt(2 / (fan_in + fan_out)).
    std = math.sqrt(2.0 / (D + D))
    Wq = std * jax.random.normal(kq, (D, D), dtype=jnp.float32)
    Wk = std * jax.random.normal(kk, (D, D), dtype=jnp.float32)
    Wv = std * jax.random.normal(kv, (D, D), dtype=jnp.float32)
    x = jax.random.normal(kx, (B, N, D), dtype=jnp.float32)

    # One-time preprocessing (fold head permutation + scale, fuse QKV weights).
    W_qkv, out_perm = prepare_mhsa_weights(Wq, Wk, Wv, n_heads=H)

    for self_loop in (False, True):
        ref = jax.vmap(
            lambda xe: _reference_edge(xe, Wq, Wk, Wv, H, self_loop))(x)

        # bf16 MXU operands (default): tolerance covers bf16 operand rounding.
        out = multihead_self_attention_batched(x, W_qkv, out_perm, H,
                                               self_loop=self_loop)
        out = jax.block_until_ready(out)
        assert out.shape == (B, N, D), out.shape
        err = float(jnp.max(jnp.abs(out - ref)))
        assert err < 5e-2, f"bf16 path max abs err = {err:e}"

        # f32 MXU operands: near-exact vs. the reference.
        out32 = multihead_self_attention_batched(x, W_qkv, out_perm, H,
                                                 self_loop=self_loop,
                                                 matmul_dtype=jnp.float32)
        out32 = jax.block_until_ready(out32)
        err32 = float(jnp.max(jnp.abs(out32 - ref)))
        assert err32 < 1e-4, f"f32 path max abs err = {err32:e}"

    # Module-faithful single-edge call (also exercises batch padding).
    out1 = jax.block_until_ready(
        multihead_self_attention(x[0], W_qkv, out_perm, H, self_loop=False))
    ref1 = _reference_edge(x[0], Wq, Wk, Wv, H, False)
    assert out1.shape == (N, D)
    assert float(jnp.max(jnp.abs(out1 - ref1))) < 5e-2

    # ndim < 2 input path (single node, unsqueezed like the PyTorch module).
    out_v = jax.block_until_ready(
        multihead_self_attention(x[0, 0], W_qkv, out_perm, H, self_loop=False))
    ref_v = _reference_edge(x[0, 0][None, :], Wq, Wk, Wv, H, False)
    assert out_v.shape == (1, D)
    assert float(jnp.max(jnp.abs(out_v - ref_v))) < 5e-2

    print("KERNEL_OK")
</pallas_src>

<mosaic_0001>
module attributes {stable_mosaic.version = 11 : i64} {
  func.func @_mhsa_kernel(%arg0: i32, %arg1: memref<128x32xf32, #tpu.memory_space<vmem>>, %arg2: memref<32x96xf32, #tpu.memory_space<vmem>>, %arg3: memref<32x32xf32, #tpu.memory_space<vmem>>, %arg4: memref<128x128xf32, #tpu.memory_space<vmem>>, %arg5: memref<128x32xf32, #tpu.memory_space<vmem>>) attributes {dimension_semantics = [#tpu.dimension_semantics<parallel>], iteration_bounds = array<i64: 4>, scalar_prefetch = 0 : i64, scratch_operands = 0 : i64, tpu.core_type = #tpu.core_type<tc>, window_params = [{transform_indices = @transform_0, window_bounds = array<i64: 128, 32>}, {pipeline_mode = #tpu.pipeline_mode<synchronous>, transform_indices = @transform_1, window_bounds = array<i64: 32, 96>}, {pipeline_mode = #tpu.pipeline_mode<synchronous>, transform_indices = @transform_2, window_bounds = array<i64: 32, 32>}, {pipeline_mode = #tpu.pipeline_mode<synchronous>, transform_indices = @transform_3, window_bounds = array<i64: 128, 128>}, {transform_indices = @transform_4, window_bounds = array<i64: 128, 32>}]} {
    %c0 = arith.constant 0 : index
    %c0_0 = arith.constant 0 : index
    %0 = vector.load %arg1[%c0, %c0_0] : memref<128x32xf32, #tpu.memory_space<vmem>>, vector<128x32xf32>
    %1 = arith.truncf %0 : vector<128x32xf32> to vector<128x32xbf16>
    %c0_1 = arith.constant 0 : index
    %c0_2 = arith.constant 0 : index
    %2 = vector.load %arg2[%c0_1, %c0_2] : memref<32x96xf32, #tpu.memory_space<vmem>>, vector<32x96xf32>
    %3 = arith.truncf %2 : vector<32x96xf32> to vector<32x96xbf16>
    %cst = arith.constant dense<0.000000e+00> : vector<128x96xf32>
    %4 = tpu.matmul %1, %3, %cst {dimension_numbers = #tpu.dot_dimension_numbers<[1], [0], [0], [1], [0, 0, 1, 1], [], []>} : vector<128x32xbf16>, vector<32x96xbf16>, vector<128x96xf32> -> vector<128x96xf32>
    %c0_3 = arith.constant 0 : index
    %c0_4 = arith.constant 0 : index
    %5 = vector.load %arg4[%c0_3, %c0_4] : memref<128x128xf32, #tpu.memory_space<vmem>>, vector<128x128xf32>
    %6 = vector.extract_strided_slice %4 {offsets = [0, 0], sizes = [32, 96], strides = [1, 1]} : vector<128x96xf32> to vector<32x96xf32>
    %7 = vector.extract_strided_slice %6 {offsets = [0, 0], sizes = [32, 32], strides = [1, 1]} : vector<32x96xf32> to vector<32x32xf32>
    %8 = vector.extract_strided_slice %7 {offsets = [0, 0], sizes = [32, 8], strides = [1, 1]} : vector<32x32xf32> to vector<32x8xf32>
    %9 = vector.extract_strided_slice %7 {offsets = [0, 8], sizes = [32, 8], strides = [1, 1]} : vector<32x32xf32> to vector<32x8xf32>
    %10 = vector.extract_strided_slice %7 {offsets = [0, 16], sizes = [32, 8], strides = [1, 1]} : vector<32x32xf32> to vector<32x8xf32>
    %11 = vector.extract_strided_slice %7 {offsets = [0, 24], sizes = [32, 8], strides = [1, 1]} : vector<32x32xf32> to vector<32x8xf32>
    %12 = tpu.concatenate %8, %9, %10, %11 in 0 : vector<32x8xf32>, vector<32x8xf32>, vector<32x8xf32>, vector<32x8xf32> -> vector<128x8xf32>
    %13 = vector.extract_strided_slice %6 {offsets = [0, 32], sizes = [32, 32], strides = [1, 1]} : vector<32x96xf32> to vector<32x32xf32>
    %14 = vector.extract_strided_slice %13 {offsets = [0, 0], sizes = [32, 8], strides = [1, 1]} : vector<32x32xf32> to vector<32x8xf32>
    %15 = vector.extract_strided_slice %13 {offsets = [0, 8], sizes = [32, 8], strides = [1, 1]} : vector<32x32xf32> to vector<32x8xf32>
    %16 = vector.extract_strided_slice %13 {offsets = [0, 16], sizes = [32, 8], strides = [1, 1]} : vector<32x32xf32> to vector<32x8xf32>
    %17 = vector.extract_strided_slice %13 {offsets = [0, 24], sizes = [32, 8], strides = [1, 1]} : vector<32x32xf32> to vector<32x8xf32>
    %18 = tpu.concatenate %14, %15, %16, %17 in 0 : vector<32x8xf32>, vector<32x8xf32>, vector<32x8xf32>, vector<32x8xf32> -> vector<128x8xf32>
    %19 = vector.extract_strided_slice %6 {offsets = [0, 64], sizes = [32, 32], strides = [1, 1]} : vector<32x96xf32> to vector<32x32xf32>
    %20 = vector.extract_strided_slice %19 {offsets = [0, 0], sizes = [32, 8], strides = [1, 1]} : vector<32x32xf32> to vector<32x8xf32>
    %21 = vector.extract_strided_slice %19 {offsets = [0, 8], sizes = [32, 8], strides = [1, 1]} : vector<32x32xf32> to vector<32x8xf32>
    %22 = vector.extract_strided_slice %19 {offsets = [0, 16], sizes = [32, 8], strides = [1, 1]} : vector<32x32xf32> to vector<32x8xf32>
    %23 = vector.extract_strided_slice %19 {offsets = [0, 24], sizes = [32, 8], strides = [1, 1]} : vector<32x32xf32> to vector<32x8xf32>
    %24 = tpu.concatenate %20, %21, %22, %23 in 0 : vector<32x8xf32>, vector<32x8xf32>, vector<32x8xf32>, vector<32x8xf32> -> vector<128x8xf32>
    %cst_5 = arith.constant dense<0.000000e+00> : vector<128x128xf32>
    %25 = tpu.matmul %12, %18, %cst_5 {dimension_numbers = #tpu.dot_dimension_numbers<[1], [1], [0], [0], [0, 0, 1, 0], [], []>} : vector<128x8xf32>, vector<128x8xf32>, vector<128x128xf32> -> vector<128x128xf32>
    %26 = arith.addf %25, %5 : vector<128x128xf32>
    %cst_6 = arith.constant dense<0xFF800000> : vector<128xf32>
    %27 = vector.multi_reduction <maximumf>, %26, %cst_6 [1] : vector<128x128xf32> to vector<128xf32>
    %28 = vector.shape_cast %27 : vector<128xf32> to vector<128x1xf32>
    %29 = vector.broadcast %28 : vector<128x1xf32> to vector<128x128xf32>
    %30 = arith.subf %26, %29 : vector<128x128xf32>
    %31 = math.exp %30 : vector<128x128xf32>
    %cst_7 = arith.constant dense<0.000000e+00> : vector<128xf32>
    %32 = vector.multi_reduction <add>, %31, %cst_7 [1] : vector<128x128xf32> to vector<128xf32>
    %33 = vector.shape_cast %32 : vector<128xf32> to vector<128x1xf32>
    %34 = vector.broadcast %33 : vector<128x1xf32> to vector<128x128xf32>
    %35 = arith.divf %31, %34 : vector<128x128xf32>
    %36 = arith.truncf %35 : vector<128x128xf32> to vector<128x128xbf16>
    %37 = arith.truncf %24 : vector<128x8xf32> to vector<128x8xbf16>
    %cst_8 = arith.constant dense<0.000000e+00> : vector<128x8xf32>
    %38 = tpu.matmul %36, %37, %cst_8 {dimension_numbers = #tpu.dot_dimension_numbers<[1], [0], [0], [1], [0, 0, 1, 1], [], []>} : vector<128x128xbf16>, vector<128x8xbf16>, vector<128x8xf32> -> vector<128x8xf32>
    %39 = vector.extract_strided_slice %38 {offsets = [0, 0], sizes = [32, 8], strides = [1, 1]} : vector<128x8xf32> to vector<32x8xf32>
    %40 = vector.extract_strided_slice %38 {offsets = [32, 0], sizes = [32, 8], strides = [1, 1]} : vector<128x8xf32> to vector<32x8xf32>
    %41 = vector.extract_strided_slice %38 {offsets = [64, 0], sizes = [32, 8], strides = [1, 1]} : vector<128x8xf32> to vector<32x8xf32>
    %42 = vector.extract_strided_slice %38 {offsets = [96, 0], sizes = [32, 8], strides = [1, 1]} : vector<128x8xf32> to vector<32x8xf32>
    %43 = tpu.concatenate %39, %40, %41, %42 in 1 : vector<32x8xf32>, vector<32x8xf32>, vector<32x8xf32>, vector<32x8xf32> -> vector<32x32xf32>
    %44 = vector.extract_strided_slice %4 {offsets = [32, 0], sizes = [32, 96], strides = [1, 1]} : vector<128x96xf32> to vector<32x96xf32>
    %45 = vector.extract_strided_slice %44 {offsets = [0, 0], sizes = [32, 32], strides = [1, 1]} : vector<32x96xf32> to vector<32x32xf32>
    %46 = vector.extract_strided_slice %45 {offsets = [0, 0], sizes = [32, 8], strides = [1, 1]} : vector<32x32xf32> to vector<32x8xf32>
    %47 = vector.extract_strided_slice %45 {offsets = [0, 8], sizes = [32, 8], strides = [1, 1]} : vector<32x32xf32> to vector<32x8xf32>
    %48 = vector.extract_strided_slice %45 {offsets = [0, 16], sizes = [32, 8], strides = [1, 1]} : vector<32x32xf32> to vector<32x8xf32>
    %49 = vector.extract_strided_slice %45 {offsets = [0, 24], sizes = [32, 8], strides = [1, 1]} : vector<32x32xf32> to vector<32x8xf32>
    %50 = tpu.concatenate %46, %47, %48, %49 in 0 : vector<32x8xf32>, vector<32x8xf32>, vector<32x8xf32>, vector<32x8xf32> -> vector<128x8xf32>
    %51 = vector.extract_strided_slice %44 {offsets = [0, 32], sizes = [32, 32], strides = [1, 1]} : vector<32x96xf32> to vector<32x32xf32>
    %52 = vector.extract_strided_slice %51 {offsets = [0, 0], sizes = [32, 8], strides = [1, 1]} : vector<32x32xf32> to vector<32x8xf32>
    %53 = vector.extract_strided_slice %51 {offsets = [0, 8], sizes = [32, 8], strides = [1, 1]} : vector<32x32xf32> to vector<32x8xf32>
    %54 = vector.extract_strided_slice %51 {offsets = [0, 16], sizes = [32, 8], strides = [1, 1]} : vector<32x32xf32> to vector<32x8xf32>
    %55 = vector.extract_strided_slice %51 {offsets = [0, 24], sizes = [32, 8], strides = [1, 1]} : vector<32x32xf32> to vector<32x8xf32>
    %56 = tpu.concatenate %52, %53, %54, %55 in 0 : vector<32x8xf32>, vector<32x8xf32>, vector<32x8xf32>, vector<32x8xf32> -> vector<128x8xf32>
    %57 = vector.extract_strided_slice %44 {offsets = [0, 64], sizes = [32, 32], strides = [1, 1]} : vector<32x96xf32> to vector<32x32xf32>
    %58 = vector.extract_strided_slice %57 {offsets = [0, 0], sizes = [32, 8], strides = [1, 1]} : vector<32x32xf32> to vector<32x8xf32>
    %59 = vector.extract_strided_slice %57 {offsets = [0, 8], sizes = [32, 8], strides = [1, 1]} : vector<32x32xf32> to vector<32x8xf32>
    %60 = vector.extract_strided_slice %57 {offsets = [0, 16], sizes = [32, 8], strides = [1, 1]} : vector<32x32xf32> to vector<32x8xf32>
    %61 = vector.extract_strided_slice %57 {offsets = [0, 24], sizes = [32, 8], strides = [1, 1]} : vector<32x32xf32> to vector<32x8xf32>
    %62 = tpu.concatenate %58, %59, %60, %61 in 0 : vector<32x8xf32>, vector<32x8xf32>, vector<32x8xf32>, vector<32x8xf32> -> vector<128x8xf32>
    %cst_9 = arith.constant dense<0.000000e+00> : vector<128x128xf32>
    %63 = tpu.matmul %50, %56, %cst_9 {dimension_numbers = #tpu.dot_dimension_numbers<[1], [1], [0], [0], [0, 0, 1, 0], [], []>} : vector<128x8xf32>, vector<128x8xf32>, vector<128x128xf32> -> vector<128x128xf32>
    %64 = arith.addf %63, %5 : vector<128x128xf32>
    %cst_10 = arith.constant dense<0xFF800000> : vector<128xf32>
    %65 = vector.multi_reduction <maximumf>, %64, %cst_10 [1] : vector<128x128xf32> to vector<128xf32>
    %66 = vector.shape_cast %65 : vector<128xf32> to vector<128x1xf32>
    %67 = vector.broadcast %66 : vector<128x1xf32> to vector<128x128xf32>
    %68 = arith.subf %64, %67 : vector<128x128xf32>
    %69 = math.exp %68 : vector<128x128xf32>
    %cst_11 = arith.constant dense<0.000000e+00> : vector<128xf32>
    %70 = vector.multi_reduction <add>, %69, %cst_11 [1] : vector<128x128xf32> to vector<128xf32>
    %71 = vector.shape_cast %70 : vector<128xf32> to vector<128x1xf32>
    %72 = vector.broadcast %71 : vector<128x1xf32> to vector<128x128xf32>
    %73 = arith.divf %69, %72 : vector<128x128xf32>
    %74 = arith.truncf %73 : vector<128x128xf32> to vector<128x128xbf16>
    %75 = arith.truncf %62 : vector<128x8xf32> to vector<128x8xbf16>
    %cst_12 = arith.constant dense<0.000000e+00> : vector<128x8xf32>
    %76 = tpu.matmul %74, %75, %cst_12 {dimension_numbers = #tpu.dot_dimension_numbers<[1], [0], [0], [1], [0, 0, 1, 1], [], []>} : vector<128x128xbf16>, vector<128x8xbf16>, vector<128x8xf32> -> vector<128x8xf32>
    %77 = vector.extract_strided_slice %76 {offsets = [0, 0], sizes = [32, 8], strides = [1, 1]} : vector<128x8xf32> to vector<32x8xf32>
    %78 = vector.extract_strided_slice %76 {offsets = [32, 0], sizes = [32, 8], strides = [1, 1]} : vector<128x8xf32> to vector<32x8xf32>
    %79 = vector.extract_strided_slice %76 {offsets = [64, 0], sizes = [32, 8], strides = [1, 1]} : vector<128x8xf32> to vector<32x8xf32>
    %80 = vector.extract_strided_slice %76 {offsets = [96, 0], sizes = [32, 8], strides = [1, 1]} : vector<128x8xf32> to vector<32x8xf32>
    %81 = tpu.concatenate %77, %78, %79, %80 in 1 : vector<32x8xf32>, vector<32x8xf32>, vector<32x8xf32>, vector<32x8xf32> -> vector<32x32xf32>
    %82 = vector.extract_strided_slice %4 {offsets = [64, 0], sizes = [32, 96], strides = [1, 1]} : vector<128x96xf32> to vector<32x96xf32>
    %83 = vector.extract_strided_slice %82 {offsets = [0, 0], sizes = [32, 32], strides = [1, 1]} : vector<32x96xf32> to vector<32x32xf32>
    %84 = vector.extract_strided_slice %83 {offsets = [0, 0], sizes = [32, 8], strides = [1, 1]} : vector<32x32xf32> to vector<32x8xf32>
    %85 = vector.extract_strided_slice %83 {offsets = [0, 8], sizes = [32, 8], strides = [1, 1]} : vector<32x32xf32> to vector<32x8xf32>
    %86 = vector.extract_strided_slice %83 {offsets = [0, 16], sizes = [32, 8], strides = [1, 1]} : vector<32x32xf32> to vector<32x8xf32>
    %87 = vector.extract_strided_slice %83 {offsets = [0, 24], sizes = [32, 8], strides = [1, 1]} : vector<32x32xf32> to vector<32x8xf32>
    %88 = tpu.concatenate %84, %85, %86, %87 in 0 : vector<32x8xf32>, vector<32x8xf32>, vector<32x8xf32>, vector<32x8xf32> -> vector<128x8xf32>
    %89 = vector.extract_strided_slice %82 {offsets = [0, 32], sizes = [32, 32], strides = [1, 1]} : vector<32x96xf32> to vector<32x32xf32>
    %90 = vector.extract_strided_slice %89 {offsets = [0, 0], sizes = [32, 8], strides = [1, 1]} : vector<32x32xf32> to vector<32x8xf32>
    %91 = vector.extract_strided_slice %89 {offsets = [0, 8], sizes = [32, 8], strides = [1, 1]} : vector<32x32xf32> to vector<32x8xf32>
    %92 = vector.extract_strided_slice %89 {offsets = [0, 16], sizes = [32, 8], strides = [1, 1]} : vector<32x32xf32> to vector<32x8xf32>
    %93 = vector.extract_strided_slice %89 {offsets = [0, 24], sizes = [32, 8], strides = [1, 1]} : vector<32x32xf32> to vector<32x8xf32>
    %94 = tpu.concatenate %90, %91, %92, %93 in 0 : vector<32x8xf32>, vector<32x8xf32>, vector<32x8xf32>, vector<32x8xf32> -> vector<128x8xf32>
    %95 = vector.extract_strided_slice %82 {offsets = [0, 64], sizes = [32, 32], strides = [1, 1]} : vector<32x96xf32> to vector<32x32xf32>
    %96 = vector.extract_strided_slice %95 {offsets = [0, 0], sizes = [32, 8], strides = [1, 1]} : vector<32x32xf32> to vector<32x8xf32>
    %97 = vector.extract_strided_slice %95 {offsets = [0, 8], sizes = [32, 8], strides = [1, 1]} : vector<32x32xf32> to vector<32x8xf32>
    %98 = vector.extract_strided_slice %95 {offsets = [0, 16], sizes = [32, 8], strides = [1, 1]} : vector<32x32xf32> to vector<32x8xf32>
    %99 = vector.extract_strided_slice %95 {offsets = [0, 24], sizes = [32, 8], strides = [1, 1]} : vector<32x32xf32> to vector<32x8xf32>
    %100 = tpu.concatenate %96, %97, %98, %99 in 0 : vector<32x8xf32>, vector<32x8xf32>, vector<32x8xf32>, vector<32x8xf32> -> vector<128x8xf32>
    %cst_13 = arith.constant dense<0.000000e+00> : vector<128x128xf32>
    %101 = tpu.matmul %88, %94, %cst_13 {dimension_numbers = #tpu.dot_dimension_numbers<[1], [1], [0], [0], [0, 0, 1, 0], [], []>} : vector<128x8xf32>, vector<128x8xf32>, vector<128x128xf32> -> vector<128x128xf32>
    %102 = arith.addf %101, %5 : vector<128x128xf32>
    %cst_14 = arith.constant dense<0xFF800000> : vector<128xf32>
    %103 = vector.multi_reduction <maximumf>, %102, %cst_14 [1] : vector<128x128xf32> to vector<128xf32>
    %104 = vector.shape_cast %103 : vector<128xf32> to vector<128x1xf32>
    %105 = vector.broadcast %104 : vector<128x1xf32> to vector<128x128xf32>
    %106 = arith.subf %102, %105 : vector<128x128xf32>
    %107 = math.exp %106 : vector<128x128xf32>
    %cst_15 = arith.constant dense<0.000000e+00> : vector<128xf32>
    %108 = vector.multi_reduction <add>, %107, %cst_15 [1] : vector<128x128xf32> to vector<128xf32>
    %109 = vector.shape_cast %108 : vector<128xf32> to vector<128x1xf32>
    %110 = vector.broadcast %109 : vector<128x1xf32> to vector<128x128xf32>
    %111 = arith.divf %107, %110 : vector<128x128xf32>
    %112 = arith.truncf %111 : vector<128x128xf32> to vector<128x128xbf16>
    %113 = arith.truncf %100 : vector<128x8xf32> to vector<128x8xbf16>
    %cst_16 = arith.constant dense<0.000000e+00> : vector<128x8xf32>
    %114 = tpu.matmul %112, %113, %cst_16 {dimension_numbers = #tpu.dot_dimension_numbers<[1], [0], [0], [1], [0, 0, 1, 1], [], []>} : vector<128x128xbf16>, vector<128x8xbf16>, vector<128x8xf32> -> vector<128x8xf32>
    %115 = vector.extract_strided_slice %114 {offsets = [0, 0], sizes = [32, 8], strides = [1, 1]} : vector<128x8xf32> to vector<32x8xf32>
    %116 = vector.extract_strided_slice %114 {offsets = [32, 0], sizes = [32, 8], strides = [1, 1]} : vector<128x8xf32> to vector<32x8xf32>
    %117 = vector.extract_strided_slice %114 {offsets = [64, 0], sizes = [32, 8], strides = [1, 1]} : vector<128x8xf32> to vector<32x8xf32>
    %118 = vector.extract_strided_slice %114 {offsets = [96, 0], sizes = [32, 8], strides = [1, 1]} : vector<128x8xf32> to vector<32x8xf32>
    %119 = tpu.concatenate %115, %116, %117, %118 in 1 : vector<32x8xf32>, vector<32x8xf32>, vector<32x8xf32>, vector<32x8xf32> -> vector<32x32xf32>
    %120 = vector.extract_strided_slice %4 {offsets = [96, 0], sizes = [32, 96], strides = [1, 1]} : vector<128x96xf32> to vector<32x96xf32>
    %121 = vector.extract_strided_slice %120 {offsets = [0, 0], sizes = [32, 32], strides = [1, 1]} : vector<32x96xf32> to vector<32x32xf32>
    %122 = vector.extract_strided_slice %121 {offsets = [0, 0], sizes = [32, 8], strides = [1, 1]} : vector<32x32xf32> to vector<32x8xf32>
    %123 = vector.extract_strided_slice %121 {offsets = [0, 8], sizes = [32, 8], strides = [1, 1]} : vector<32x32xf32> to vector<32x8xf32>
    %124 = vector.extract_strided_slice %121 {offsets = [0, 16], sizes = [32, 8], strides = [1, 1]} : vector<32x32xf32> to vector<32x8xf32>
    %125 = vector.extract_strided_slice %121 {offsets = [0, 24], sizes = [32, 8], strides = [1, 1]} : vector<32x32xf32> to vector<32x8xf32>
    %126 = tpu.concatenate %122, %123, %124, %125 in 0 : vector<32x8xf32>, vector<32x8xf32>, vector<32x8xf32>, vector<32x8xf32> -> vector<128x8xf32>
    %127 = vector.extract_strided_slice %120 {offsets = [0, 32], sizes = [32, 32], strides = [1, 1]} : vector<32x96xf32> to vector<32x32xf32>
    %128 = vector.extract_strided_slice %127 {offsets = [0, 0], sizes = [32, 8], strides = [1, 1]} : vector<32x32xf32> to vector<32x8xf32>
    %129 = vector.extract_strided_slice %127 {offsets = [0, 8], sizes = [32, 8], strides = [1, 1]} : vector<32x32xf32> to vector<32x8xf32>
    %130 = vector.extract_strided_slice %127 {offsets = [0, 16], sizes = [32, 8], strides = [1, 1]} : vector<32x32xf32> to vector<32x8xf32>
    %131 = vector.extract_strided_slice %127 {offsets = [0, 24], sizes = [32, 8], strides = [1, 1]} : vector<32x32xf32> to vector<32x8xf32>
    %132 = tpu.concatenate %128, %129, %130, %131 in 0 : vector<32x8xf32>, vector<32x8xf32>, vector<32x8xf32>, vector<32x8xf32> -> vector<128x8xf32>
    %133 = vector.extract_strided_slice %120 {offsets = [0, 64], sizes = [32, 32], strides = [1, 1]} : vector<32x96xf32> to vector<32x32xf32>
    %134 = vector.extract_strided_slice %133 {offsets = [0, 0], sizes = [32, 8], strides = [1, 1]} : vector<32x32xf32> to vector<32x8xf32>
    %135 = vector.extract_strided_slice %133 {offsets = [0, 8], sizes = [32, 8], strides = [1, 1]} : vector<32x32xf32> to vector<32x8xf32>
    %136 = vector.extract_strided_slice %133 {offsets = [0, 16], sizes = [32, 8], strides = [1, 1]} : vector<32x32xf32> to vector<32x8xf32>
    %137 = vector.extract_strided_slice %133 {offsets = [0, 24], sizes = [32, 8], strides = [1, 1]} : vector<32x32xf32> to vector<32x8xf32>
    %138 = tpu.concatenate %134, %135, %136, %137 in 0 : vector<32x8xf32>, vector<32x8xf32>, vector<32x8xf32>, vector<32x8xf32> -> vector<128x8xf32>
    %cst_17 = arith.constant dense<0.000000e+00> : vector<128x128xf32>
    %139 = tpu.matmul %126, %132, %cst_17 {dimension_numbers = #tpu.dot_dimension_numbers<[1], [1], [0], [0], [0, 0, 1, 0], [], []>} : vector<128x8xf32>, vector<128x8xf32>, vector<128x128xf32> -> vector<128x128xf32>
    %140 = arith.addf %139, %5 : vector<128x128xf32>
    %cst_18 = arith.constant dense<0xFF800000> : vector<128xf32>
    %141 = vector.multi_reduction <maximumf>, %140, %cst_18 [1] : vector<128x128xf32> to vector<128xf32>
    %142 = vector.shape_cast %141 : vector<128xf32> to vector<128x1xf32>
    %143 = vector.broadcast %142 : vector<128x1xf32> to vector<128x128xf32>
    %144 = arith.subf %140, %143 : vector<128x128xf32>
    %145 = math.exp %144 : vector<128x128xf32>
    %cst_19 = arith.constant dense<0.000000e+00> : vector<128xf32>
    %146 = vector.multi_reduction <add>, %145, %cst_19 [1] : vector<128x128xf32> to vector<128xf32>
    %147 = vector.shape_cast %146 : vector<128xf32> to vector<128x1xf32>
    %148 = vector.broadcast %147 : vector<128x1xf32> to vector<128x128xf32>
    %149 = arith.divf %145, %148 : vector<128x128xf32>
    %150 = arith.truncf %149 : vector<128x128xf32> to vector<128x128xbf16>
    %151 = arith.truncf %138 : vector<128x8xf32> to vector<128x8xbf16>
    %cst_20 = arith.constant dense<0.000000e+00> : vector<128x8xf32>
    %152 = tpu.matmul %150, %151, %cst_20 {dimension_numbers = #tpu.dot_dimension_numbers<[1], [0], [0], [1], [0, 0, 1, 1], [], []>} : vector<128x128xbf16>, vector<128x8xbf16>, vector<128x8xf32> -> vector<128x8xf32>
    %153 = vector.extract_strided_slice %152 {offsets = [0, 0], sizes = [32, 8], strides = [1, 1]} : vector<128x8xf32> to vector<32x8xf32>
    %154 = vector.extract_strided_slice %152 {offsets = [32, 0], sizes = [32, 8], strides = [1, 1]} : vector<128x8xf32> to vector<32x8xf32>
    %155 = vector.extract_strided_slice %152 {offsets = [64, 0], sizes = [32, 8], strides = [1, 1]} : vector<128x8xf32> to vector<32x8xf32>
    %156 = vector.extract_strided_slice %152 {offsets = [96, 0], sizes = [32, 8], strides = [1, 1]} : vector<128x8xf32> to vector<32x8xf32>
    %157 = tpu.concatenate %153, %154, %155, %156 in 1 : vector<32x8xf32>, vector<32x8xf32>, vector<32x8xf32>, vector<32x8xf32> -> vector<32x32xf32>
    %158 = tpu.concatenate %43, %81, %119, %157 in 0 : vector<32x32xf32>, vector<32x32xf32>, vector<32x32xf32>, vector<32x32xf32> -> vector<128x32xf32>
    %c0_21 = arith.constant 0 : index
    %c0_22 = arith.constant 0 : index
    %159 = vector.load %arg3[%c0_21, %c0_22] : memref<32x32xf32, #tpu.memory_space<vmem>>, vector<32x32xf32>
    %cst_23 = arith.constant dense<0.000000e+00> : vector<128x32xf32>
    %160 = tpu.matmul %158, %159, %cst_23 {dimension_numbers = #tpu.dot_dimension_numbers<[1], [0], [0], [1], [0, 0, 1, 1], [], []>} : vector<128x32xf32>, vector<32x32xf32>, vector<128x32xf32> -> vector<128x32xf32>
    %161 = math.tanh %160 : vector<128x32xf32>
    %c0_24 = arith.constant 0 : index
    %c0_25 = arith.constant 0 : index
    %162 = vector.load %arg5[%c0_24, %c0_25] : memref<128x32xf32, #tpu.memory_space<vmem>>, vector<128x32xf32>
    tpu.vector_store %arg5[%c0_24, %c0_25], %161 {strides = array<i32>} : memref<128x32xf32, #tpu.memory_space<vmem>>, vector<128x32xf32>,
    return
  }
  func.func @transform_0(%arg0: i32) -> (i32, i32) {
    %c0_i32 = arith.constant 0 : i32
    %c0_i32_0 = arith.constant 0 : i32
    return %arg0, %c0_i32 : i32, i32
  }
  func.func @transform_1(%arg0: i32) -> (i32, i32) {
    %c0_i32 = arith.constant 0 : i32
    %c0_i32_0 = arith.constant 0 : i32
    %c0_i32_1 = arith.constant 0 : i32
    return %c0_i32, %c0_i32_0 : i32, i32
  }
  func.func @transform_2(%arg0: i32) -> (i32, i32) {
    %c0_i32 = arith.constant 0 : i32
    %c0_i32_0 = arith.constant 0 : i32
    %c0_i32_1 = arith.constant 0 : i32
    return %c0_i32, %c0_i32_0 : i32, i32
  }
  func.func @transform_3(%arg0: i32) -> (i32, i32) {
    %c0_i32 = arith.constant 0 : i32
    %c0_i32_0 = arith.constant 0 : i32
    %c0_i32_1 = arith.constant 0 : i32
    return %c0_i32, %c0_i32_0 : i32, i32
  }
  func.func @transform_4(%arg0: i32) -> (i32, i32) {
    %c0_i32 = arith.constant 0 : i32
    %c0_i32_0 = arith.constant 0 : i32
    return %arg0, %c0_i32 : i32, i32
  }
}

</mosaic_0001>

<bundles_post_ra>
// kernel: tpu_custom_call.1
= control target key start
LH: loop header
LB: loop body
LE: loop exit
PB: predicated region body
PF: predicated region fallthrough
CT: control target
= control target key end

     0   :  { %s3912_s15 = smov 0   ;;  %s6543_s0 = inlined_call_operand.vmem [shape: f32[512,32], index: 0, kind: input, shape index: {}]   ;;  %s6544_s1 = inlined_call_operand.vmem [shape: f32[32,96], index: 1, kind: input, shape index: {}]   ;;  %s6545_s2 = inlined_call_operand.vmem [shape: f32[32,32], index: 2, kind: input, shape index: {}]   ;;  %s6546_s3 = inlined_call_operand.vmem [shape: f32[128,128], index: 3, kind: input, shape index: {}]   ;;  %s6547_s4 = inlined_call_operand.vmem [shape: f32[512,32], index: 4, kind: output, shape index: {}]  }
   0x1 LB: > { %s3370_s16 = sadd.s32 4294967295, %s3877_s15   ;;  %p3374_p0 = scmp.ge.s32.totalorder %s3877_s15, 1  ;;  %s3877_s15 = sphi %s3912_s15, %s14_s15  }
   0x2   : > { %p163_p1 = scmp.lt.s32.totalorder %s3877_s15, 5 }
   0x4   : > { %p164_p2 = pnand %p3374_p0, %p163_p1 }
   0x6   : > { %167 = sbr.rel (%p164_p2) target bundleno = 2166 (0x876), region = 36 }
   0xb   : > { %v228_v0 = vld [vmem:[%s6544_s1 + $0x10] sm:$0xff]  ;;  %v229_v1 = vld [vmem:[%s6544_s1 + $0x18] sm:$0xff]  ;;  %v226_v2 = vld [vmem:[%s6544_s1] sm:$0xff]  ;;  %s3375_s23 = sshll.u32 %s3370_s16, 4  ;;  %vm232_vm0 = vcmask 261120   ;;  %s3879_s30 = smov 96  }
   0xc   : > { %v231_v3 = vpack.c.bf16 %v229_v1, %v228_v0  ;;  %v227_v4 = vld [vmem:[%s6544_s1 + $0x8] sm:$0xff]  ;;  %p190_p3 = scmp.lt.s32.totalorder %s3375_s23, 63  ;;  %s3880_s5 = smov 104   ;;  %vm394_vm1 = vcmask 64512  }
   0xd   : > { %v230_v5 = vpack.c.bf16 %v227_v4, %v226_v2  ;;  %s3881_s6 = smov 112   ;;  %s3882_s7 = smov 120  }
   0xe   : > { %263 = vmatpush.bf16.msra.mxu0 %v231_v3  ;;  %3533 = vmatpush.bf16.msra.mxu3 %v231_v3  ;;  %s6817_s23 = smov (!%p190_p3, %s3375_s23), 63  ;;  %s3883_s8 = smov 64  }
   0xf   : > { %s3376_s26 = sshll.u32 %s6817_s23, 3 }
  0x10   : > { %s3940_s29 = scalar_lea.vmem %s6543_s0, %s3376_s26  ;;  %s6473_s20 = scalar_lea.vmem %s6547_s4, %s3376_s26 }
  0x11   : > { %v202_v6 = vld [vmem:[%s3940_s29] sm:$0xff]  ;;  %v203_v7 = vld [vmem:[%s3940_s29 + $0x8] sm:$0xff]  ;;  %v204_v12 = vld [vmem:[%s3940_s29 + $0x10] sm:$0xff] }
  0x12   : > { %264 = vmatpush.bf16.msra.mxu0 %v230_v5  ;;  %3534 = vmatpush.bf16.msra.mxu3 %v230_v5  ;;  %v206_v8 = vld [vmem:[%s3940_s29 + $0x20] sm:$0xff]  ;;  %v218_v9 = vpack.c.bf16 %v203_v7, %v202_v6  ;;  %v207_v10 = vld [vmem:[%s3940_s29 + $0x28] sm:$0xff]  ;;  %v205_v13 = vld [vmem:[%s3940_s29 + $0x18] sm:$0xff] }
  0x13   : > { %v220_v11 = vpack.c.bf16 %v207_v10, %v206_v8  ;;  %v208_v14 = vld [vmem:[%s3940_s29 + $0x30] sm:$0xff]  ;;  %v209_v15 = vld [vmem:[%s3940_s29 + $0x38] sm:$0xff]  ;;  %v219_v16 = vpack.c.bf16 %v205_v13, %v204_v12  ;;  %v210_v18 = vld [vmem:[%s3940_s29 + $0x40] sm:$0xff] }
  0x14   : > { %v221_v17 = vpack.c.bf16 %v209_v15, %v208_v14  ;;  %v211_v19 = vld [vmem:[%s3940_s29 + $0x48] sm:$0xff]  ;;  %v212_v21 = vld [vmem:[%s3940_s29 + $0x50] sm:$0xff]  ;;  %v213_v22 = vld [vmem:[%s3940_s29 + $0x58] sm:$0xff] }
  0x15   : > { %3379 = vmatmul.msk.bf16.vlgmr.msra.gmra.mxu0 %vm232_vm0, %v218_v9  ;;  %3381 = vmatmul.msk.bf16.vlgmr.msra.gmra.mxu3 %vm232_vm0, %v220_v11  ;;  %v222_v20 = vpack.c.bf16 %v211_v19, %v210_v18  ;;  %v223_v23 = vpack.c.bf16 %v213_v22, %v212_v21  ;;  %v214_v30 = vld [vmem:[%s3940_s29 + $0x60] sm:$0xff]  ;;  %v215_v31 = vld [vmem:[%s3940_s29 + $0x68] sm:$0xff]  ;;  %v216_v34 = vld [vmem:[%s3940_s29 + $0x70] sm:$0xff] }
  0x16   : > { %v224_v32 = vpack.c.bf16 %v215_v31, %v214_v30  ;;  %v217_v35 = vld [vmem:[%s3940_s29 + $0x78] sm:$0xff] }
  0x17   : > { %v225_v37 = vpack.c.bf16 %v217_v35, %v216_v34 }
  0x25   : > { %3380 = vmatmul.msk.bf16.gmra.mxu0 %vm232_vm0, %v219_v16  ;;  %3382 = vmatmul.msk.bf16.gmra.mxu3 %vm232_vm0, %v221_v17 }
  0x35   : > { %3383 = vmatmul.msk.bf16.gmra.mxu3 %vm232_vm0, %v222_v20 }
  0x45   : > { %3384 = vmatmul.msk.bf16.gmra.mxu3 %vm232_vm0, %v223_v23 }
  0x55   : > { %3385 = vmatmul.msk.bf16.gmra.mxu3 %vm232_vm0, %v224_v32 }
  0x65   : > { %3386 = vmatmul.msk.bf16.gmra.mxu3 %vm232_vm0, %v225_v37 }
  0x92   : > { %v3960_v24 = vpop.f32.mrf.mxu0 }
  0x93   : > { %362 = vrot.lane.b32.xlu0 %v3960_v24, %s3879_s30  ;;  %342 = vrot.lane.b32.xlu1 %v3960_v24, %s3880_s5 }
  0x98   : > { %v3966_v25 = vpop.f32.mrf.mxu3 }
  0x99   : > { %1047 = vrot.lane.b32.xlu2 %v3966_v25, %s3881_s6 }
  0x9a   : > { %v3974_v26 = vpop.f32.mrf.mxu0 }
  0x9b   : > { %1075 = vrot.lane.b32.xlu0 %v3966_v25, %s3879_s30  ;;  %334 = vrot.lane.b32.xlu1 %v3960_v24, %s3881_s6  ;;  %v884_v37 = vpack.c.bf16 %v3974_v26, %v3960_v24 }
  0xa0   : > { %v3982_v27 = vpop.f32.mrf.mxu3 }
  0xa1   : > { %1039 = vrot.lane.b32.xlu2 %v3966_v25, %s3882_s7 }
  0xa2   : > { %v3996_v28 = vpop.f32.mrf.mxu0 }
  0xa3   : > { %326 = vrot.lane.b32.xlu1 %v3960_v24, %s3882_s7  ;;  %336 = vrot.lane.b32.xlu0 %v3974_v26, %s3881_s6 }
  0xa8   : > { %v4004_v29 = vpop.f32.mrf.mxu3 }
  0xa9   : > { %328 = vrot.lane.b32.xlu2 %v3974_v26, %s3882_s7 }
  0xaa   : > { %v4027_v38 = vpop.f32.mrf.mxu0 }
  0xab   : > { %1055 = vrot.lane.b32.xlu1 %v3966_v25, %s3880_s5  ;;  %1057 = vrot.lane.b32.xlu0 %v3982_v27, %s3880_s5  ;;  %v885_v18 = vpack.c.bf16 %v4027_v38, %v3996_v28 }
  0xb0   : > { %v4015_v33 = vpop.f32.mrf.mxu3 }
  0xb1   : > { %364 = vrot.lane.b32.xlu2 %v3974_v26, %s3879_s30 }
  0xb3   : > { %1041 = vrot.lane.b32.xlu0 %v3982_v27, %s3882_s7  ;;  %344 = vrot.lane.b32.xlu1 %v3974_v26, %s3880_s5 }
  0xb8   : > { %v4025_v36 = vpop.f32.mrf.mxu3 }
  0xb9   : > { %338 = vrot.lane.b32.xlu2 %v3996_v28, %s3881_s6  ;;  %6624 = vst [vmem:[#allocation2_spill] sm:$0xff] %v4025_v36 }
  0xbb   : > { %1077 = vrot.lane.b32.xlu0 %v3982_v27, %s3879_s30  ;;  %1049 = vrot.lane.b32.xlu1 %v3982_v27, %s3881_s6 }
  0xc0   : > { %v4036_v39 = vpop.f32.mrf.mxu3 }
  0xc1   : > { %1059 = vrot.lane.b32.xlu2 %v4004_v29, %s3880_s5  ;;  %6625 = vst [vmem:[#allocation3_spill] sm:$0xff] %v4036_v39 }
  0xc3   : > { %366 = vrot.lane.b32.xlu1 %v3996_v28, %s3879_s30  ;;  %346 = vrot.lane.b32.xlu0 %v3996_v28, %s3880_s5 }
  0xc8   : > { %v4046_v40 = vpop.f32.mrf.mxu3 }
  0xc9   : > { %1079 = vrot.lane.b32.xlu2 %v4004_v29, %s3879_s30  ;;  %6626 = vst [vmem:[#allocation4_spill] sm:$0xff] %v4046_v40 }
  0xcb   : > { %1043 = vrot.lane.b32.xlu1 %v4004_v29, %s3882_s7  ;;  %330 = vrot.lane.b32.xlu0 %v3996_v28, %s3882_s7 }
  0xd0   : > { %v4054_v41 = vpop.f32.mrf.mxu3 }
  0xd1   : > { %340 = vrot.lane.b32.xlu2 %v4027_v38, %s3881_s6  ;;  %6627 = vst [vmem:[#allocation5_spill] sm:$0xff] %v4054_v41 }
  0xd3   : > { %1061 = vrot.lane.b32.xlu1 %v4015_v33, %s3880_s5  ;;  %1051 = vrot.lane.b32.xlu0 %v4004_v29, %s3881_s6 }
  0xd8   : > { %v4180_v11 = vpop.f32.mrf.mxu3 }
  0xd9   : > { %332 = vrot.lane.b32.xlu2 %v4027_v38, %s3882_s7  ;;  %6636 = vst [vmem:[#allocation14_spill] sm:$0xff] %v4180_v11 }
  0xdb   : > { %348 = vrot.lane.b32.xlu0 %v4027_v38, %s3880_s5  ;;  %1081 = vrot.lane.b32.xlu1 %v4015_v33, %s3879_s30 }
  0xe0   : > { %v4193_v15 = vpop.f32.mrf.mxu3 }
  0xe1   : > { %1053 = vrot.lane.b32.xlu2 %v4015_v33, %s3881_s6  ;;  %6639 = vst [vmem:[#allocation17_spill] sm:$0xff] %v4193_v15 }
  0xe3   : > { %368 = vrot.lane.b32.xlu0 %v4027_v38, %s3879_s30  ;;  %1769 = vrot.lane.b32.xlu1 %v4046_v40, %s3880_s5 }
  0xe8   : > { %v4210_v22 = vpop.f32.mrf.mxu3 }
  0xe9   : > { %6641 = vst [vmem:[#allocation19_spill] sm:$0xff] %v4210_v22 }
  0xeb   : > { %1045 = vrot.lane.b32.xlu0 %v4015_v33, %s3882_s7 }
  0xf0   : > { %v4218_v32 = vpop.f32.mrf.mxu3 }
  0xf1   : > { %6643 = vst [vmem:[#allocation21_spill] sm:$0xff] %v4218_v32 }
  0xf3   : > { %1771 = vrot.lane.b32.xlu0 %v4054_v41, %s3880_s5  ;;  %v4058_v42 = vpop.permute.xlu2 %1047 }
  0xf4   : > { %6628 = vst [vmem:[#allocation6_spill] sm:$0xff] %v4058_v42 }
  0xfb   : > { %v4060_v43 = vpop.permute.xlu2 %1039 }
 0x103   : > { %v4062_v44 = vpop.permute.xlu2 %328 }
 0x105   : > { %v4064_v45 = vpop.permute.xlu0 %362  ;;  %v4066_v46 = vpop.permute.xlu1 %342 }
 0x106   : > { %386 = vrot.lane.b32.xlu0 %v4066_v46, %s3879_s30 }
 0x10b   : > { %v4070_v47 = vpop.permute.xlu2 %364 }
 0x10d   : > { %v4072_v48 = vpop.permute.xlu0 %1075  ;;  %v4074_v49 = vpop.permute.xlu1 %334 }
 0x10e   : > { %378 = vrot.lane.b32.xlu1 %v4074_v49, %s3879_s30  ;;  %1091 = vrot.lane.b32.xlu0 %v4058_v42, %s3879_s30 }
 0x113   : > { %v4080_v50 = vpop.permute.xlu2 %338 }
 0x115   : > { %v4082_v51 = vpop.permute.xlu1 %326  ;;  %v4084_v52 = vpop.permute.xlu0 %336 }
 0x116   : > { %370 = vrot.lane.b32.xlu2 %v4082_v51, %s3879_s30  ;;  %380 = vrot.lane.b32.xlu0 %v4084_v52, %s3879_s30  ;;  %v888_v5 = vpack.c.bf16 %v4084_v52, %v4074_v49  ;;  %v886_v8 = vpack.c.bf16 %v4062_v44, %v4082_v51 }
 0x11b   : > { %v4098_v55 = vpop.permute.xlu2 %1059 }
 0x11c   : > { %6631 = vst [vmem:[#allocation9_spill] sm:$0xff] %v4098_v55 }
 0x11d   : > { %v4090_v53 = vpop.permute.xlu1 %1055  ;;  %v4092_v54 = vpop.permute.xlu0 %1057 }
 0x11e   : > { %6629 = vst [vmem:[#allocation7_spill] sm:$0xff] %v4090_v53  ;;  %1099 = vrot.lane.b32.xlu1 %v4090_v53, %s3879_s30  ;;  %1083 = vrot.lane.b32.xlu2 %v4060_v43, %s3879_s30 }
 0x11f   : > { %6630 = vst [vmem:[#allocation8_spill] sm:$0xff] %v4092_v54  ;;  %1101 = vrot.lane.b32.xlu0 %v4092_v54, %s3879_s30 }
 0x123   : > { %v4110_v58 = vpop.permute.xlu2 %1079 }
 0x125   : > { %v4102_v56 = vpop.permute.xlu0 %1041  ;;  %v4104_v57 = vpop.permute.xlu1 %344 }
 0x126   : > { %372 = vrot.lane.b32.xlu1 %v4062_v44, %s3879_s30  ;;  %388 = vrot.lane.b32.xlu2 %v4104_v57, %s3879_s30  ;;  %v890_v1 = vpack.c.bf16 %v4104_v57, %v4066_v46 }
 0x12b   : > { %v4122_v61 = vpop.permute.xlu2 %340 }
 0x12c   : > { %v889_v7 = vpack.c.bf16 %v4122_v61, %v4080_v50 }
 0x12d   : > { %v4112_v59 = vpop.permute.xlu0 %1077  ;;  %v4114_v60 = vpop.permute.xlu1 %1049 }
 0x12e   : > { %6632 = vst [vmem:[#allocation10_spill] sm:$0xff] %v4114_v60  ;;  %1085 = vrot.lane.b32.xlu1 %v4102_v56, %s3879_s30  ;;  %382 = vrot.lane.b32.xlu2 %v4080_v50, %s3879_s30 }
 0x12f   : > { %1093 = vrot.lane.b32.xlu0 %v4114_v60, %s3879_s30 }
 0x133   : > { %v4132_v63 = vpop.permute.xlu2 %332 }
 0x135   : > { %v4124_v62 = vpop.permute.xlu0 %346  ;;  %v4149_v3 = vpop.permute.xlu1 %366 }
 0x136   : > { %1763 = vrot.lane.b32.xlu1 %v4054_v41, %s3881_s6  ;;  %1767 = vrot.lane.b32.xlu2 %v4036_v39, %s3880_s5 }
 0x137   : > { %390 = vrot.lane.b32.xlu0 %v4124_v62, %s3879_s30 }
 0x13b   : > { %v4184_v13 = vpop.permute.xlu2 %1053 }
 0x13c   : > { %6637 = vst [vmem:[#allocation15_spill] sm:$0xff] %v4184_v13 }
 0x13d   : > { %v4134_v0 = vpop.permute.xlu0 %330  ;;  %v4160_v6 = vpop.permute.xlu1 %1043 }
 0x13e   : > { %1103 = vrot.lane.b32.xlu1 %v4098_v55, %s3879_s30  ;;  %376 = vrot.lane.b32.xlu2 %v4132_v63, %s3879_s30  ;;  %v887_v12 = vpack.c.bf16 %v4132_v63, %v4134_v0 }
 0x13f   : > { %912 = vrot.lane.b32.xlu0 %v890_v1, %s3883_s8 }
 0x145   : > { %v4143_v2 = vpop.permute.xlu0 %1051  ;;  %v4171_v9 = vpop.permute.xlu1 %1061 }
 0x146   : > { %6633 = vst [vmem:[#allocation11_spill] sm:$0xff] %v4143_v2  ;;  %1761 = vrot.lane.b32.xlu2 %v4046_v40, %s3881_s6 }
 0x147   : > { %1765 = vrot.lane.b32.xlu0 %v4025_v36, %s3880_s5  ;;  %6635 = vst [vmem:[#allocation13_spill] sm:$0xff] %v4171_v9 }
 0x14d   : > { %v4151_v4 = vpop.permute.xlu0 %348  ;;  %v4206_v19 = vpop.permute.xlu1 %1081 }
 0x14e   : > { %6634 = vst [vmem:[#allocation12_spill] sm:$0xff] %v4151_v4  ;;  %1757 = vrot.lane.b32.xlu2 %v4025_v36, %s3881_s6  ;;  %392 = vrot.lane.b32.xlu1 %v4151_v4, %s3879_s30  ;;  %v891_v54 = vpack.c.bf16 %v4151_v4, %v4124_v62 }
 0x14f   : > { %908 = vrot.lane.b32.xlu0 %v888_v5, %s3883_s8 }
 0x155   : > { %v4176_v10 = vpop.permute.xlu0 %368  ;;  %v4214_v23 = vpop.permute.xlu1 %1769 }
 0x156   : > { %910 = vrot.lane.b32.xlu2 %v889_v7, %s3883_s8  ;;  %384 = vrot.lane.b32.xlu1 %v4122_v61, %s3879_s30  ;;  %6642 = vst [vmem:[#allocation20_spill] sm:$0xff] %v4214_v23 }
 0x157   : > { %374 = vrot.lane.b32.xlu0 %v4134_v0, %s3879_s30 }
 0x15d   : > { %v4191_v14 = vpop.permute.xlu0 %1045 }
 0x15e   : > { %1105 = vrot.lane.b32.xlu2 %v4171_v9, %s3879_s30  ;;  %904 = vrot.lane.b32.xlu1 %v886_v8, %s3883_s8  ;;  %6638 = vst [vmem:[#allocation16_spill] sm:$0xff] %v4191_v14 }
 0x15f   : > { %1095 = vrot.lane.b32.xlu0 %v4143_v2, %s3879_s30 }
 0x165   : > { %v4201_v17 = vpop.permute.xlu0 %1771 }
 0x166   : > { %1097 = vrot.lane.b32.xlu2 %v4184_v13, %s3879_s30  ;;  %906 = vrot.lane.b32.xlu1 %v887_v12, %s3883_s8  ;;  %6640 = vst [vmem:[#allocation18_spill] sm:$0xff] %v4201_v17 }
 0x167   : > { %1087 = vrot.lane.b32.xlu0 %v4160_v6, %s3879_s30 }
 0x16e   : > { %2477 = vrot.lane.b32.xlu2 %v4193_v15, %s3880_s5 }
 0x16f   : > { %1759 = vrot.lane.b32.xlu0 %v4036_v39, %s3881_s6 }
 0x170   : > { %v4199_v16 = vpop.permute.xlu2 %370 }
 0x177   : > { %902 = vrot.lane.b32.xlu0 %v885_v18, %s3883_s8 }
 0x178   : > { %v4208_v20 = vpop.permute.xlu2 %1083  ;;  %v387_v21 = vpop.permute.xlu0 %386 }
 0x17f   : > { %1755 = vrot.lane.b32.xlu0 %v4054_v41, %s3882_s7 }
 0x180   : > { %v389_v30 = vpop.permute.xlu2 %388  ;;  %v4216_v31 = vpop.permute.xlu0 %1091 }
 0x181   : > { %v379_v34 = vpop.permute.xlu1 %378 }
 0x187   : > { %2481 = vrot.lane.b32.xlu0 %v4218_v32, %s3880_s5 }
 0x188   : > { %v383_v35 = vpop.permute.xlu2 %382  ;;  %v381_v1 = vpop.permute.xlu0 %380 }
 0x18f   : > { %900 = vrot.lane.b32.xlu0 %v884_v37, %s3883_s8 }
 0x190   : > { %v1100_v5 = vpop.permute.xlu1 %1099  ;;  %v4225_v7 = vpop.permute.xlu2 %1767 }
 0x191   : > { %6644 = vst [vmem:[#allocation22_spill] sm:$0xff] %v4225_v7  ;;  %1811 = vrot.lane.b32.xlu1 %v4225_v7, %s3879_s30  ;;  %v1102_v12 = vpop.permute.xlu0 %1101 }
 0x197   : > { %1753 = vrot.lane.b32.xlu0 %v4046_v40, %s3882_s7 }
 0x198   : > { %v377_v8 = vpop.permute.xlu2 %376  ;;  %v373_v18 = vpop.permute.xlu1 %372 }
 0x199   : > { %2473 = vrot.lane.b32.xlu1 %v4218_v32, %s3881_s6 }
 0x19f   : > { %914 = vrot.lane.b32.xlu0 %v891_v54, %s3883_s8 }
 0x1a0   : > { %v4236_v37 = vpop.permute.xlu2 %1761  ;;  %v4240_v7 = vpop.permute.xlu1 %1085 }
 0x1a1   : > { %6645 = vst [vmem:[#allocation23_spill] sm:$0xff] %v4236_v37  ;;  %v1094_v53 = vpop.permute.xlu0 %1093  ;;  %1805 = vrot.lane.b32.xlu2 %v4236_v37, %s3879_s30 }
 0x1a7   : > { %1089 = vrot.lane.b32.xlu0 %v4191_v14, %s3879_s30 }
 0x1a8   : > { %v4244_v9 = vpop.permute.xlu2 %1757  ;;  %v4246_v13 = vpop.permute.xlu1 %1763 }
 0x1a9   : > { %6646 = vst [vmem:[#allocation24_spill] sm:$0xff] %v4244_v9  ;;  %v391_v55 = vpop.permute.xlu0 %390 }
 0x1aa   : > { %6647 = vst [vmem:[#allocation25_spill] sm:$0xff] %v4246_v13 }
 0x1af   : > { %2479 = vrot.lane.b32.xlu0 %v4210_v22, %s3880_s5 }
 0x1b0   : > { %v4250_v54 = vpop.permute.xlu2 %910  ;;  %v1104_v37 = vpop.permute.xlu1 %1103 }
 0x1b1   : > { %v4252_v2 = vpop.permute.xlu0 %912 }
 0x1b7   : > { %1751 = vrot.lane.b32.xlu0 %v4036_v39, %s3882_s7 }
 0x1b8   : > { %v1106_v60 = vpop.permute.xlu2 %1105 }
 0x1b9   : > { %v4256_v42 = vpop.permute.xlu0 %1765  ;;  %3419 = vmatpush.xpose.msk.msrb.mxu3 %vm394_vm1, %v1106_v60 }
 0x1ba   : > { %6648 = vst [vmem:[#allocation26_spill] sm:$0xff] %v4256_v42  ;;  %1809 = vrot.lane.b32.xlu1 %v4256_v42, %s3879_s30 }
 0x1bd   : > { %3420 = vmatpush.xpose.msk.msrb.mxu3 %vm394_vm1, %v1104_v37 }
 0x1bf   : > { %1813 = vrot.lane.b32.xlu0 %v4214_v23, %s3879_s30 }
 0x1c0   : > { %v393_v4 = vpop.permute.xlu1 %392  ;;  %v1098_v60 = vpop.permute.xlu2 %1097 }
 0x1c1   : > { %v4264_v14 = vpop.permute.xlu0 %908  ;;  %3387 = vmatpush.xpose.msk.msra.mxu1 %vm394_vm1, %v393_v4  ;;  %3421 = vmatpush.xpose.msk.msrb.mxu3 %vm394_vm1, %v1102_v12  ;;  %v6668_v12 = vld [vmem:[#allocation10_spill] sm:$0xff] }
 0x1c2   : > { %2471 = vrot.lane.b32.xlu1 %v4210_v22, %s3881_s6 }
 0x1c5   : > { %3388 = vmatpush.xpose.msk.msra.mxu1 %vm394_vm1, %v391_v55  ;;  %3422 = vmatpush.xpose.msk.msrb.mxu3 %vm394_vm1, %v1100_v5  ;;  %v6665_v5 = vld [vmem:[#allocation12_spill] sm:$0xff] }
 0x1c7   : > { %1749 = vrot.lane.b32.xlu0 %v4025_v36, %s3882_s7 }
 0x1c8   : > { %v385_v55 = vpop.permute.xlu1 %384 }
 0x1c9   : > { %v375_v37 = vpop.permute.xlu0 %374  ;;  %3389 = vmatpush.xpose.msk.msra.mxu1 %vm394_vm1, %v389_v30  ;;  %3423 = vmatpush.xpose.msk.msrb.mxu3 %vm394_vm1, %v1098_v60 }
 0x1ca   : > { %2469 = vrot.lane.b32.xlu1 %v4193_v15, %s3881_s6 }
 0x1cd   : > { %3390 = vmatpush.xpose.msk.msra.mxu1 %vm394_vm1, %v387_v21 }
 0x1cf   : > { %2475 = vrot.lane.b32.xlu0 %v4180_v11, %s3880_s5 }
 0x1d1   : > { %v1096_v4 = vpop.permute.xlu0 %1095  ;;  %3391 = vmatpush.xpose.msk.msra.mxu1 %vm394_vm1, %v385_v55 }
 0x1d2   : > { %2467 = vrot.lane.b32.xlu1 %v4180_v11, %s3881_s6  ;;  %3424 = vmatpush.xpose.msk.msrb.mxu3 %vm394_vm1, %v1096_v4  ;;  %v6671_v4 = vld [vmem:[#allocation9_spill] sm:$0xff]  ;;  %s3885_s6 = smov 16  }
 0x1d5   : > { %3392 = vmatpush.xpose.msk.msra.mxu1 %vm394_vm1, %v383_v35  ;;  %v6664_v35 = vld [vmem:[#allocation16_spill] sm:$0xff] }
 0x1d6   : > { %3425 = vmatpush.xpose.msk.msrb.mxu3 %vm394_vm1, %v1094_v53 }
 0x1d9   : > { %v1088_v30 = vpop.permute.xlu0 %1087  ;;  %3393 = vmatpush.xpose.msk.msra.mxu1 %vm394_vm1, %v381_v1 }
 0x1da   : > { %1815 = vrot.lane.b32.xlu1 %v4201_v17, %s3879_s30  ;;  %3426 = vmatpush.xpose.msk.msrb.mxu3 %vm394_vm1, %v4216_v31 }
 0x1dd   : > { %3394 = vmatpush.xpose.msk.msra.mxu1 %vm394_vm1, %v379_v34 }
 0x1e1   : > { %v4293_v21 = vpop.permute.xlu0 %1759  ;;  %3395 = vmatpush.xpose.msk.msra.mxu1 %vm394_vm1, %v377_v8 }
 0x1e2   : > { %6649 = vst [vmem:[#allocation27_spill] sm:$0xff] %v4293_v21  ;;  %1807 = vrot.lane.b32.xlu1 %v4246_v13, %s3879_s30  ;;  %1803 = vrot.lane.b32.xlu0 %v4293_v21, %s3879_s30  ;;  %v4691_v13 = vld [vmem:[%s6546_s3 + $0x70] sm:$0xff] }
 0x1e5   : > { %3396 = vmatpush.xpose.msk.msra.mxu1 %vm394_vm1, %v375_v37 }
 0x1e9   : > { %v903_v53 = vpop.permute.xlu0 %902  ;;  %3397 = vmatpush.xpose.msk.msra.mxu1 %vm394_vm1, %v373_v18  ;;  %v6669_v18 = vld [vmem:[#allocation11_spill] sm:$0xff] }
 0x1ea   : > { %2465 = vrot.lane.b32.xlu0 %v4218_v32, %s3882_s7 }
 0x1ed   : > { %3398 = vmatpush.xpose.msk.msra.mxu1 %vm394_vm1, %v4199_v16  ;;  %v905_v16 = vpop.permute.xlu1 %904 }
 0x1f1   : > { %v4306_v31 = vpop.permute.xlu0 %1755  ;;  %3399 = vmatpush.xpose.msk.msra.mxu1 %vm394_vm1, %v4176_v10 }
 0x1f2   : > { %6650 = vst [vmem:[#allocation28_spill] sm:$0xff] %v4306_v31  ;;  %1801 = vrot.lane.b32.xlu0 %v4244_v9, %s3879_s30 }
 0x1f5   : > { %3400 = vmatpush.xpose.msk.msra.mxu1 %vm394_vm1, %v4149_v3 }
 0x1f9   : > { %v4314_v34 = vpop.permute.xlu0 %2481  ;;  %3401 = vmatpush.xpose.msk.msra.mxu1 %vm394_vm1, %v4070_v47 }
 0x1fa   : > { %6651 = vst [vmem:[#allocation29_spill] sm:$0xff] %v4314_v34  ;;  %2463 = vrot.lane.b32.xlu0 %v4210_v22, %s3882_s7 }
 0x1fd   : > { %3402 = vmatpush.xpose.msk.msra.mxu1 %vm394_vm1, %v4064_v45  ;;  %v907_v45 = vpop.permute.xlu1 %906 }
 0x200   : > { %3403 = vmatmul.msk.f32.vlgmr.msra.gmra.mxu1 %vm394_vm1, %v3960_v24 }
 0x201   : > { %v901_v10 = vpop.permute.xlu0 %900 }
 0x202   : > { %1799 = vrot.lane.b32.xlu0 %v4306_v31, %s3879_s30  ;;  %v316_v31 = vld [vmem:[%s6546_s3 + $0x50] sm:$0xff] }
 0x205   : > { %v4341_v47 = vpop.permute.xlu1 %1811 }
 0x208   : > { %3404 = vmatmul.msk.f32.gmra.mxu1 %vm394_vm1, %v3974_v26 }
 0x209   : > { %v4328_v3 = vpop.permute.xlu0 %1753 }
 0x20a   : > { %6652 = vst [vmem:[#allocation30_spill] sm:$0xff] %v4328_v3  ;;  %2461 = vrot.lane.b32.xlu0 %v4193_v15, %s3882_s7  ;;  %1797 = vrot.lane.b32.xlu2 %v4328_v3, %s3879_s30 }
 0x210   : > { %3405 = vmatmul.msk.f32.gmra.mxu1 %vm394_vm1, %v3996_v28 }
 0x211   : > { %v915_v24 = vpop.permute.xlu0 %914 }
 0x212   : > { %924 = vmatpush.bf16.msrb.mxu0 %v915_v24  ;;  %3535 = vmatpush.bf16.msrb.mxu1 %v915_v24 }
 0x213   : > { %3536 = vmatpush.bf16.msra.mxu2 %v915_v24 }
 0x216   : > { %925 = vmatpush.bf16.msrb.mxu0 %v4252_v2  ;;  %3537 = vmatpush.bf16.msrb.mxu1 %v4252_v2 }
 0x217   : > { %3538 = vmatpush.bf16.msra.mxu2 %v4252_v2 }
 0x218   : > { %3406 = vmatmul.msk.f32.gmra.mxu1 %vm394_vm1, %v4027_v38  ;;  %v4357_v38 = vpop.permute.xlu1 %2473 }
 0x219   : > { %v1090_v26 = vpop.permute.xlu0 %1089  ;;  %6654 = vst [vmem:[#allocation32_spill] sm:$0xff] %v4357_v38 }
 0x21a   : > { %926 = vmatpush.bf16.msrb.mxu0 %v4250_v54  ;;  %3539 = vmatpush.bf16.msrb.mxu1 %v4250_v54 }
 0x21b   : > { %3540 = vmatpush.bf16.msra.mxu2 %v4250_v54  ;;  %3427 = vmatpush.xpose.msk.msrb.mxu3 %vm394_vm1, %v1090_v26  ;;  %v6670_v54 = vld [vmem:[#allocation15_spill] sm:$0xff] }
 0x21c   : > { %v1601_v60 = vpack.c.bf16 %v6670_v54, %v6669_v18  ;;  %v6673_v26 = vld [vmem:[#allocation7_spill] sm:$0xff] }
 0x21e   : > { %927 = vmatpush.bf16.msrb.mxu0 %v4264_v14  ;;  %3541 = vmatpush.bf16.msrb.mxu1 %v4264_v14 }
 0x21f   : > { %3542 = vmatpush.bf16.msra.mxu2 %v4264_v14  ;;  %3428 = vmatpush.xpose.msk.msrb.mxu3 %vm394_vm1, %v1088_v30  ;;  %v4377_v14 = vpop.permute.xlu2 %2477  ;;  %v6672_v30 = vld [vmem:[#allocation13_spill] sm:$0xff] }
 0x220   : > { %3407 = vmatmul.msk.f32.gmra.mxu1 %vm394_vm1, %v4082_v51  ;;  %6656 = vst [vmem:[#allocation34_spill] sm:$0xff] %v4377_v14 }
 0x221   : > { %v4353_v28 = vpop.permute.xlu0 %2479 }
 0x222   : > { %6653 = vst [vmem:[#allocation31_spill] sm:$0xff] %v4353_v28  ;;  %928 = vmatpush.bf16.msrb.mxu0 %v907_v45  ;;  %3543 = vmatpush.bf16.msrb.mxu1 %v907_v45 }
 0x223   : > { %3544 = vmatpush.bf16.msra.mxu2 %v907_v45  ;;  %3429 = vmatpush.xpose.msk.msrb.mxu3 %vm394_vm1, %v4240_v7  ;;  %v6666_v7 = vld [vmem:[#allocation6_spill] sm:$0xff] }
 0x224   : > { %2523 = vrot.lane.b32.xlu0 %v4353_v28, %s3879_s30  ;;  %v1600_v55 = vpack.c.bf16 %v6668_v12, %v6666_v7 }
 0x226   : > { %929 = vmatpush.bf16.msrb.mxu0 %v905_v16  ;;  %3545 = vmatpush.bf16.msrb.mxu1 %v905_v16 }
 0x227   : > { %3546 = vmatpush.bf16.msra.mxu2 %v905_v16  ;;  %3430 = vmatpush.xpose.msk.msrb.mxu3 %vm394_vm1, %v4208_v20  ;;  %v1806_v20 = vpop.permute.xlu2 %1805  ;;  %v1599_v16 = vpack.c.bf16 %v6664_v35, %v4160_v6 }
 0x228   : > { %3408 = vmatmul.msk.f32.gmra.mxu1 %vm394_vm1, %v4062_v44 }
 0x229   : > { %v4365_v51 = vpop.permute.xlu0 %1751 }
 0x22a   : > { %6655 = vst [vmem:[#allocation33_spill] sm:$0xff] %v4365_v51  ;;  %930 = vmatpush.bf16.msrb.mxu0 %v903_v53  ;;  %3547 = vmatpush.bf16.msrb.mxu1 %v903_v53 }
 0x22b   : > { %3548 = vmatpush.bf16.msra.mxu2 %v903_v53  ;;  %3431 = vmatpush.xpose.msk.msrb.mxu3 %vm394_vm1, %v4206_v19  ;;  %v1603_v53 = vpack.c.bf16 %v6672_v30, %v6671_v4 }
 0x22c   : > { %2459 = vrot.lane.b32.xlu0 %v4180_v11, %s3882_s7  ;;  %1795 = vrot.lane.b32.xlu1 %v4365_v51, %s3879_s30  ;;  %v1810_v2 = vpop.permute.xlu1 %1809  ;;  %s3886_s7 = smov 24  }
 0x22e   : > { %931 = vmatpush.bf16.msrb.mxu0 %v901_v10  ;;  %3549 = vmatpush.bf16.msrb.mxu1 %v901_v10 }
 0x22f   : > { %3550 = vmatpush.bf16.msra.mxu2 %v901_v10  ;;  %3432 = vmatpush.xpose.msk.msrb.mxu3 %vm394_vm1, %v4110_v58 }
 0x230   : > { %3409 = vmatmul.msk.f32.gmra.mxu1 %vm394_vm1, %v4134_v0 }
 0x231   : > { %v1814_v44 = vpop.permute.xlu0 %1813 }
 0x233   : > { %3433 = vmatpush.xpose.msk.msrb.mxu3 %vm394_vm1, %v4112_v59 }
 0x234   : > { %2521 = vrot.lane.b32.xlu0 %v4377_v14, %s3879_s30  ;;  %v4383_v19 = vpop.permute.xlu1 %2471 }
 0x235   : > { %6657 = vst [vmem:[#allocation35_spill] sm:$0xff] %v4383_v19 }
 0x237   : > { %3434 = vmatpush.xpose.msk.msrb.mxu3 %vm394_vm1, %v4072_v48 }
 0x238   : > { %3410 = vmatmul.msk.f32.gmra.mxu1 %vm394_vm1, %v4132_v63 }
 0x239   : > { %v4389_v58 = vpop.permute.xlu0 %1749 }
 0x23a   : > { %6658 = vst [vmem:[#allocation36_spill] sm:$0xff] %v4389_v58  ;;  %3435 = vmatmul.msk.f32.vlgmr.msrb.gmra.mxu3 %vm394_vm1, %v3966_v25  ;;  %1793 = vrot.lane.b32.xlu2 %v4389_v58, %s3879_s30  ;;  %v4641_v58 = vld [vmem:[%s6546_s3 + $0x58] sm:$0xff] }
 0x23c   : > { %1791 = vrot.lane.b32.xlu0 %v4054_v41, %s3879_s30  ;;  %v4397_v59 = vpop.permute.xlu1 %2469 }
 0x23d   : > { %6659 = vst [vmem:[#allocation37_spill] sm:$0xff] %v4397_v59 }
 0x240   : > { %3411 = vmatmul.msk.f32.gmra.mxu1 %vm394_vm1, %v4074_v49 }
 0x241   : > { %v4401_v48 = vpop.permute.xlu0 %2475 }
 0x242   : > { %6660 = vst [vmem:[#allocation38_spill] sm:$0xff] %v4401_v48  ;;  %3436 = vmatmul.msk.f32.gmra.mxu3 %vm394_vm1, %v3982_v27  ;;  %1787 = vrot.lane.b32.xlu2 %v4036_v39, %s3879_s30 }
 0x243   : > { %2519 = vrot.lane.b32.xlu1 %v4401_v48, %s3879_s30 }
 0x244   : > { %2515 = vrot.lane.b32.xlu0 %v4383_v19, %s3879_s30  ;;  %v4411_v63 = vpop.permute.xlu1 %2467 }
 0x245   : > { %6661 = vst [vmem:[#allocation39_spill] sm:$0xff] %v4411_v63 }
 0x248   : > { %3412 = vmatmul.msk.f32.gmra.mxu1 %vm394_vm1, %v4084_v52 }
 0x24a   : > { %3437 = vmatmul.msk.f32.gmra.mxu3 %vm394_vm1, %v4004_v29  ;;  %2511 = vrot.lane.b32.xlu2 %v4411_v63, %s3879_s30 }
 0x24b   : > { %1789 = vrot.lane.b32.xlu1 %v4046_v40, %s3879_s30 }
 0x24c   : > { %1785 = vrot.lane.b32.xlu0 %v4025_v36, %s3879_s30  ;;  %v1816_v49 = vpop.permute.xlu1 %1815 }
 0x24d   : > { %3451 = vmatpush.xpose.msk.msrb.mxu2 %vm394_vm1, %v1816_v49 }
 0x250   : > { %3413 = vmatmul.msk.f32.gmra.mxu1 %vm394_vm1, %v4080_v50 }
 0x251   : > { %3452 = vmatpush.xpose.msk.msrb.mxu2 %vm394_vm1, %v1814_v44 }
 0x252   : > { %3438 = vmatmul.msk.f32.gmra.mxu3 %vm394_vm1, %v4015_v33  ;;  %2517 = vrot.lane.b32.xlu2 %v4357_v38, %s3879_s30 }
 0x253   : > { %2525 = vrot.lane.b32.xlu1 %v4314_v34, %s3879_s30 }
 0x254   : > { %v1804_v52 = vpop.permute.xlu0 %1803  ;;  %v1808_v50 = vpop.permute.xlu1 %1807 }
 0x255   : > { %3453 = vmatpush.xpose.msk.msrb.mxu2 %vm394_vm1, %v4341_v47  ;;  %v1598_v47 = vpack.c.bf16 %v4102_v56, %v4060_v43 }
 0x258   : > { %3414 = vmatmul.msk.f32.gmra.mxu1 %vm394_vm1, %v4122_v61 }
 0x259   : > { %3454 = vmatpush.xpose.msk.msrb.mxu2 %vm394_vm1, %v1810_v2 }
 0x25a   : > { %3439 = vmatmul.msk.f32.gmra.mxu3 %vm394_vm1, %v4060_v43 }
 0x25b   : > { %2513 = vrot.lane.b32.xlu1 %v4397_v59, %s3879_s30 }
 0x25c   : > { %v4442_v0 = vpop.permute.xlu0 %2465 }
 0x25d   : > { %6662 = vst [vmem:[#allocation40_spill] sm:$0xff] %v4442_v0  ;;  %3455 = vmatpush.xpose.msk.msrb.mxu2 %vm394_vm1, %v1808_v50 }
 0x260   : > { %3415 = vmatmul.msk.f32.gmra.mxu1 %vm394_vm1, %v4066_v46 }
 0x261   : > { %3456 = vmatpush.xpose.msk.msrb.mxu2 %vm394_vm1, %v1806_v20 }
 0x262   : > { %3440 = vmatmul.msk.f32.gmra.mxu3 %vm394_vm1, %v4102_v56 }
 0x263   : > { %2509 = vrot.lane.b32.xlu1 %v4442_v0, %s3879_s30 }
 0x264   : > { %v1802_v61 = vpop.permute.xlu0 %1801 }
 0x265   : > { %3457 = vmatpush.xpose.msk.msrb.mxu2 %vm394_vm1, %v1804_v52  ;;  %v6675_v52 = vld [vmem:[#allocation8_spill] sm:$0xff] }
 0x266   : > { %v1602_v56 = vpack.c.bf16 %v6675_v52, %v6673_v26 }
 0x268   : > { %3416 = vmatmul.msk.f32.gmra.mxu1 %vm394_vm1, %v4104_v57  ;;  %v1798_v57 = vpop.permute.xlu2 %1797 }
 0x269   : > { %3458 = vmatpush.xpose.msk.msrb.mxu2 %vm394_vm1, %v1802_v61 }
 0x26a   : > { %3441 = vmatmul.msk.f32.gmra.mxu3 %vm394_vm1, %v4160_v6 }
 0x26c   : > { %v4458_v46 = vpop.permute.xlu0 %2463 }
 0x26d   : > { %6663 = vst [vmem:[#allocation41_spill] sm:$0xff] %v4458_v46  ;;  %2507 = vrot.lane.b32.xlu0 %v4458_v46, %s3879_s30 }
 0x270   : > { %3417 = vmatmul.msk.f32.gmra.mxu1 %vm394_vm1, %v4124_v62 }
 0x272   : > { %3442 = vmatmul.msk.f32.gmra.mxu3 %vm394_vm1, %v6664_v35  ;;  %v4530_v35 = vld [vmem:[%s6546_s3] sm:$0xff] }
 0x273   : > { %6676 = vst [vmem:[#allocation6_spill] sm:$0xff] %v4530_v35 }
 0x274   : > { %v1800_v1 = vpop.permute.xlu0 %1799 }
 0x275   : > { %2501 = vrot.lane.b32.xlu0 %v4218_v32, %s3879_s30  ;;  %3459 = vmatpush.xpose.msk.msrb.mxu2 %vm394_vm1, %v1800_v1 }
 0x278   : > { %3418 = vmatmul.msk.f32.gmra.mxu1 %vm394_vm1, %v6665_v5 }
 0x279   : > { %3460 = vmatpush.xpose.msk.msrb.mxu2 %vm394_vm1, %v1798_v57 }
 0x27a   : > { %3443 = vmatmul.msk.f32.gmra.mxu3 %vm394_vm1, %v6666_v7 }
 0x27c   : > { %v4474_v8 = vpop.permute.xlu0 %2461 }
 0x27d   : > { %6667 = vst [vmem:[#allocation16_spill] sm:$0xff] %v4474_v8  ;;  %2495 = vrot.lane.b32.xlu0 %v4180_v11, %s3879_s30  ;;  %2505 = vrot.lane.b32.xlu2 %v4474_v8, %s3879_s30  ;;  %v476_v62 = vpop.f32.mrf.mxu1 }
 0x27e   : > { %v4535_v1 = vadd.f32 %v476_v62, %v4530_v35  ;;  %v4550_v62 = vld [vmem:[%s6546_s3 + $0x10] sm:$0xff] }
 0x27f   : > { %6677 = vst [vmem:[#allocation10_spill] sm:$0xff] %v4550_v62 }
 0x282   : > { %3444 = vmatmul.msk.f32.gmra.mxu3 %vm394_vm1, %v6668_v12 }
 0x285   : > { %1622 = vrot.lane.b32.xlu0 %v1601_v60, %s3883_s8  ;;  %2499 = vrot.lane.b32.xlu2 %v4210_v22, %s3879_s30  ;;  %v4487_v37 = vpop.f32.mrf.mxu1 }
 0x28a   : > { %3445 = vmatmul.msk.f32.gmra.mxu3 %vm394_vm1, %v6669_v18 }
 0x28d   : > { %1620 = vrot.lane.b32.xlu0 %v1600_v55, %s3883_s8  ;;  %1626 = vrot.lane.b32.xlu2 %v1603_v53, %s3883_s8  ;;  %v482_v10 = vpop.f32.mrf.mxu1 }
 0x292   : > { %3446 = vmatmul.msk.f32.gmra.mxu3 %vm394_vm1, %v6670_v54 }
 0x294   : > { %v1794_v6 = vpop.permute.xlu2 %1793 }
 0x295   : > { %1618 = vrot.lane.b32.xlu0 %v1599_v16, %s3883_s8  ;;  %v485_v24 = vpop.f32.mrf.mxu1  ;;  %v4559_v16 = vadd.f32 %v482_v10, %v4550_v62 }
 0x296   : > { %v2524_v45 = vpop.permute.xlu0 %2523 }
 0x29a   : > { %3447 = vmatmul.msk.f32.gmra.mxu3 %vm394_vm1, %v6673_v26 }
 0x29c   : > { %v1788_v7 = vpop.permute.xlu2 %1787 }
 0x29d   : > { %1616 = vrot.lane.b32.xlu0 %v1598_v47, %s3883_s8  ;;  %v4507_v2 = vpop.f32.mrf.mxu1 }
 0x29e   : > { %v1796_v44 = vpop.permute.xlu1 %1795  ;;  %v4509_v49 = vpop.permute.xlu0 %2459 }
 0x29f   : > { %6674 = vst [vmem:[#allocation12_spill] sm:$0xff] %v4509_v49  ;;  %3461 = vmatpush.xpose.msk.msrb.mxu2 %vm394_vm1, %v1796_v44  ;;  %2503 = vrot.lane.b32.xlu1 %v4509_v49, %s3879_s30 }
 0x2a2   : > { %3448 = vmatmul.msk.f32.gmra.mxu3 %vm394_vm1, %v6675_v52 }
 0x2a3   : > { %3462 = vmatpush.xpose.msk.msrb.mxu2 %vm394_vm1, %v1794_v6 }
 0x2a5   : > { %v491_v50 = vpop.f32.mrf.mxu1 }
 0x2a6   : > { %v2522_v43 = vpop.permute.xlu0 %2521 }
 0x2a7   : > { %2497 = vrot.lane.b32.xlu1 %v4193_v15, %s3879_s30 }
 0x2aa   : > { %3449 = vmatmul.msk.f32.gmra.mxu3 %vm394_vm1, %v6671_v4  ;;  %v4556_v4 = vld [vmem:[%s6546_s3 + $0x18] sm:$0xff] }
 0x2ab   : > { %6678 = vst [vmem:[#allocation11_spill] sm:$0xff] %v4556_v4  ;;  %v4564_v44 = vadd.f32 %v485_v24, %v4556_v4  ;;  %v4576_v24 = vld [vmem:[%s6546_s3 + $0x8] sm:$0xff] }
 0x2ac   : > { %6679 = vst [vmem:[#allocation15_spill] sm:$0xff] %v4576_v24 }
 0x2ad   : > { %v4523_v20 = vpop.f32.mrf.mxu1 }
 0x2ae   : > { %v1792_v61 = vpop.permute.xlu0 %1791 }
 0x2af   : > { %1624 = vrot.lane.b32.xlu1 %v1602_v56, %s3883_s8  ;;  %3463 = vmatpush.xpose.msk.msrb.mxu2 %vm394_vm1, %v1792_v61 }
 0x2b2   : > { %3450 = vmatmul.msk.f32.gmra.mxu3 %vm394_vm1, %v6672_v30  ;;  %v2512_v30 = vpop.permute.xlu2 %2511 }
 0x2b5   : > { %v2520_v57 = vpop.permute.xlu1 %2519  ;;  %v4537_v5 = vpop.f32.mrf.mxu1 }
 0x2b6   : > { %524 = vmax.xlane.f32.xlu2 %v4535_v1  ;;  %v2516_v12 = vpop.permute.xlu0 %2515 }
 0x2ba   : > { %v2518_v10 = vpop.permute.xlu2 %2517 }
 0x2bd   : > { %v1188_v18 = vpop.f32.mrf.mxu3  ;;  %v1790_v54 = vpop.permute.xlu1 %1789 }
 0x2be   : > { %3464 = vmatpush.xpose.msk.msrb.mxu2 %vm394_vm1, %v1790_v54  ;;  %v4541_v60 = vpop.f32.mrf.mxu1  ;;  %v4544_v55 = vadd.f32 %v1188_v18, %v4530_v35  ;;  %v1786_v53 = vpop.permute.xlu0 %1785 }
 0x2c0   : > { %1236 = vmax.xlane.f32.xlu2 %v4544_v55 }
 0x2c2   : > { %3465 = vmatpush.xpose.msk.msrb.mxu2 %vm394_vm1, %v1788_v7 }
 0x2c5   : > { %v1191_v26 = vpop.f32.mrf.mxu3  ;;  %v2526_v47 = vpop.permute.xlu1 %2525 }
 0x2c6   : > { %3466 = vmatpush.xpose.msk.msrb.mxu2 %vm394_vm1, %v1786_v53  ;;  %3483 = vmatpush.xpose.msk.msra.mxu3 %vm394_vm1, %v2526_v47  ;;  %v503_v6 = vpop.f32.mrf.mxu1 }
 0x2c7   : > { %528 = vmax.xlane.f32.xlu0 %v4559_v16 }
 0x2c8   : > { %530 = vmax.xlane.f32.xlu2 %v4564_v44 }
 0x2ca   : > { %3484 = vmatpush.xpose.msk.msra.mxu3 %vm394_vm1, %v2524_v45 }
 0x2cd   : > { %v1194_v52 = vpop.f32.mrf.mxu3  ;;  %v2514_v18 = vpop.permute.xlu1 %2513 }
 0x2ce   : > { %3485 = vmatpush.xpose.msk.msra.mxu3 %vm394_vm1, %v2522_v43  ;;  %v4570_v56 = vpop.f32.mrf.mxu1  ;;  %v4584_v43 = vadd.f32 %v4487_v37, %v4576_v24  ;;  %v4598_v37 = vadd.f32 %v1191_v26, %v4576_v24  ;;  %v4612_v51 = vadd.f32 %v1194_v52, %v4550_v62 }
 0x2cf   : > { %v4677_v3 = vadd.f32 %v4570_v56, %v316_v31  ;;  %v4696_v56 = vld [vmem:[%s6546_s3 + $0x78] sm:$0xff] }
 0x2d2   : > { %3486 = vmatpush.xpose.msk.msra.mxu3 %vm394_vm1, %v2520_v57  ;;  %v311_v57 = vld [vmem:[%s6546_s3 + $0x28] sm:$0xff] }
 0x2d3   : > { %v4592_v47 = vadd.f32 %v491_v50, %v311_v57 }
 0x2d5   : > { %v1197_v61 = vpop.f32.mrf.mxu3 }
 0x2d6   : > { %v4579_v7 = vadd.f32 %v1197_v61, %v4556_v4  ;;  %3487 = vmatpush.xpose.msk.msra.mxu3 %vm394_vm1, %v2518_v10  ;;  %v509_v54 = vpop.f32.mrf.mxu1  ;;  %v2510_v61 = vpop.permute.xlu1 %2509 }
 0x2d7   : > { %v2506_v45 = vpop.permute.xlu2 %2505 }
 0x2d8   : > { %1242 = vmax.xlane.f32.xlu0 %v4579_v7 }
 0x2d9   : > { %526 = vmax.xlane.f32.xlu1 %v4584_v43 }
 0x2da   : > { %3488 = vmatpush.xpose.msk.msra.mxu3 %vm394_vm1, %v2516_v12  ;;  %v310_v12 = vld [vmem:[%s6546_s3 + $0x20] sm:$0xff] }
 0x2dd   : > { %v1200_v53 = vpop.f32.mrf.mxu3 }
 0x2de   : > { %3489 = vmatpush.xpose.msk.msra.mxu3 %vm394_vm1, %v2514_v18  ;;  %v4606_v39 = vadd.f32 %v1200_v53, %v310_v12  ;;  %v512_v18 = vpop.f32.mrf.mxu1  ;;  %v315_v53 = vld [vmem:[%s6546_s3 + $0x48] sm:$0xff] }
 0x2df   : > { %v4595_v10 = vpop.permute.xlu2 %2499 }
 0x2e0   : > { %534 = vmax.xlane.f32.xlu0 %v4592_v47 }
 0x2e1   : > { %1238 = vmax.xlane.f32.xlu1 %v4598_v37 }
 0x2e2   : > { %3490 = vmatpush.xpose.msk.msra.mxu3 %vm394_vm1, %v2512_v30  ;;  %v2508_v30 = vpop.permute.xlu0 %2507 }
 0x2e5   : > { %v1203_v50 = vpop.f32.mrf.mxu3 }
 0x2e6   : > { %3491 = vmatpush.xpose.msk.msra.mxu3 %vm394_vm1, %v2510_v61  ;;  %v4609_v36 = vadd.f32 %v1203_v50, %v311_v57  ;;  %v4624_v57 = vld [vmem:[%s6546_s3 + $0x30] sm:$0xff]  ;;  %v4630_v50 = vadd.f32 %v503_v6, %v315_v53  ;;  %v314_v6 = vld [vmem:[%s6546_s3 + $0x40] sm:$0xff] }
 0x2e7   : > { %v1627_v26 = vpop.permute.xlu2 %1626  ;;  %v4658_v41 = vadd.f32 %v4541_v60, %v314_v6  ;;  %v4674_v60 = vld [vmem:[%s6546_s3 + $0x60] sm:$0xff] }
 0x2e8   : > { %1244 = vmax.xlane.f32.xlu0 %v4606_v39  ;;  %1246 = vmax.xlane.f32.xlu2 %v4609_v36  ;;  %v4683_v9 = vadd.f32 %v512_v18, %v4674_v60 }
 0x2e9   : > { %1240 = vmax.xlane.f32.xlu1 %v4612_v51  ;;  %1636 = vmatpush.bf16.msra.mxu0 %v1627_v26  ;;  %v4633_v26 = vadd.f32 %v4507_v2, %v310_v12  ;;  %v4649_v2 = vld [vmem:[%s6546_s3 + $0x38] sm:$0xff]  ;;  %v4652_v12 = vadd.f32 %v509_v54, %v4641_v58  ;;  %v4669_v54 = vld [vmem:[%s6546_s3 + $0x68] sm:$0xff] }
 0x2ea   : > { %3492 = vmatpush.xpose.msk.msra.mxu3 %vm394_vm1, %v2508_v30  ;;  %v515_v30 = vpop.f32.mrf.mxu1  ;;  %v2502_v62 = vpop.permute.xlu0 %2501 }
 0x2eb   : > { %v4680_v21 = vadd.f32 %v515_v30, %v4669_v54 }
 0x2ed   : > { %v1206_v52 = vpop.f32.mrf.mxu3 }
 0x2ee   : > { %v4627_v61 = vadd.f32 %v1206_v52, %v4624_v57  ;;  %3493 = vmatpush.xpose.msk.msra.mxu3 %vm394_vm1, %v2506_v45 }
 0x2f0   : > { %1248 = vmax.xlane.f32.xlu0 %v4627_v61  ;;  %542 = vmax.xlane.f32.xlu2 %v4630_v50 }
 0x2f1   : > { %532 = vmax.xlane.f32.xlu1 %v4633_v26 }
 0x2f2   : > { %v518_v40 = vpop.f32.mrf.mxu1  ;;  %v2496_v4 = vpop.permute.xlu0 %2495 }
 0x2f3   : > { %v4699_v42 = vadd.f32 %v518_v40, %v4691_v13 }
 0x2f5   : > { %v1209_v45 = vpop.f32.mrf.mxu3 }
 0x2f6   : > { %v4655_v52 = vadd.f32 %v1209_v45, %v4649_v2 }
 0x2f8   : > { %1250 = vmax.xlane.f32.xlu0 %v4655_v52  ;;  %546 = vmax.xlane.f32.xlu2 %v4652_v12 }
 0x2f9   : > { %540 = vmax.xlane.f32.xlu1 %v4658_v41 }
 0x2fa   : > { %v521_v30 = vpop.f32.mrf.mxu1  ;;  %v1623_v35 = vpop.permute.xlu0 %1622 }
 0x2fb   : > { %v4704_v23 = vadd.f32 %v521_v30, %v4696_v56  ;;  %v1596_v30 = vpack.c.bf16 %v3982_v27, %v3966_v25 }
 0x2fd   : > { %v1212_v45 = vpop.f32.mrf.mxu3 }
 0x300   : > { %544 = vmax.xlane.f32.xlu0 %v4677_v3  ;;  %550 = vmax.xlane.f32.xlu2 %v4680_v21 }
 0x301   : > { %548 = vmax.xlane.f32.xlu1 %v4683_v9 }
 0x305   : > { %v1215_v18 = vpop.f32.mrf.mxu3 }
 0x306   : > { %v4701_v17 = vadd.f32 %v1215_v18, %v315_v53  ;;  %v1621_v53 = vpop.permute.xlu0 %1620  ;;  %v1597_v18 = vpack.c.bf16 %v4015_v33, %v4004_v29 }
 0x308   : > { %552 = vmax.xlane.f32.xlu0 %v4699_v42  ;;  %1254 = vmax.xlane.f32.xlu2 %v4701_v17 }
 0x309   : > { %554 = vmax.xlane.f32.xlu1 %v4704_v23 }
 0x311   : > { %v2504_v24 = vpop.permute.xlu1 %2503 }
 0x312   : > { %3494 = vmatpush.xpose.msk.msra.mxu3 %vm394_vm1, %v2504_v24 }
 0x316   : > { %3495 = vmatpush.xpose.msk.msra.mxu3 %vm394_vm1, %v2502_v62  ;;  %v1619_v62 = vpop.permute.xlu0 %1618 }
 0x319   : > { %v2498_v40 = vpop.permute.xlu1 %2497 }
 0x31a   : > { %3496 = vmatpush.xpose.msk.msra.mxu3 %vm394_vm1, %v4595_v10 }
 0x31e   : > { %3497 = vmatpush.xpose.msk.msra.mxu3 %vm394_vm1, %v2498_v40  ;;  %v1617_v29 = vpop.permute.xlu0 %1616  ;;  %v4748_v40 = vadd.f32 %v4523_v20, %v4624_v57 }
 0x320   : > { %1612 = vrot.lane.b32.xlu2 %v1596_v30, %s3883_s8 }
 0x321   : > { %v1625_v34 = vpop.permute.xlu1 %1624 }
 0x322   : > { %1614 = vrot.lane.b32.xlu1 %v1597_v18, %s3883_s8  ;;  %1637 = vmatpush.bf16.msra.mxu0 %v1625_v34  ;;  %v4731_v34 = vadd.f32 %v1212_v45, %v314_v6 }
 0x323   : > { %3498 = vmatpush.xpose.msk.msra.mxu3 %vm394_vm1, %v2496_v4 }
 0x326   : > { %3499 = vmatmul.msk.f32.vlgmr.msra.gmra.mxu3 %vm394_vm1, %v4180_v11  ;;  %1638 = vmatpush.bf16.msra.mxu0 %v1623_v35  ;;  %v1218_v35 = vpop.f32.mrf.mxu3 }
 0x327   : > { %v4743_v10 = vadd.f32 %v1218_v35, %v316_v31 }
 0x329   : > { %v525_v24 = vpop.xlane.xlu2 %524 }
 0x32a   : > { %1639 = vmatpush.bf16.msra.mxu0 %v1621_v53  ;;  %v556_v25 = vsub.f32 %v4535_v1, %v525_v24  ;;  %v4738_v1 = vadd.f32 %v4537_v5, %v4649_v2 }
 0x32c   : > { %v572_v27 = vmul.f32 1.442695, %v556_v25 }
 0x32e   : > { %3567 = vpow2.f32 %v572_v27  ;;  %3500 = vmatmul.msk.f32.gmra.mxu3 %vm394_vm1, %v4193_v15  ;;  %1640 = vmatpush.bf16.msra.mxu0 %v1619_v62  ;;  %v1221_v6 = vpop.f32.mrf.mxu3 }
 0x32f   : > { %v4751_v53 = vadd.f32 %v1221_v6, %v4641_v58 }
 0x332   : > { %1641 = vmatpush.bf16.msra.mxu0 %v1617_v29 }
 0x333   : > { %v1237_v45 = vpop.xlane.xlu2 %1236 }
 0x334   : > { %v4726_v33 = vpop.eup %3567  ;;  %v1268_v31 = vsub.f32 %v4544_v55, %v1237_v45 }
 0x335   : > { %604 = vadd.xlane.f32.xlu0 %v4726_v33 }
 0x336   : > { %3501 = vmatmul.msk.f32.gmra.mxu3 %vm394_vm1, %v4210_v22  ;;  %v1284_v20 = vmul.f32 1.442695, %v1268_v31 }
 0x33a   : > { %v529_v4 = vpop.xlane.xlu0 %528 }
 0x33b   : > { %v531_v57 = vpop.xlane.xlu2 %530  ;;  %v558_v55 = vsub.f32 %v4559_v16, %v529_v4 }
 0x33c   : > { %v559_v35 = vsub.f32 %v4564_v44, %v531_v57 }
 0x33d   : > { %1252 = vmax.xlane.f32.xlu0 %v4731_v34  ;;  %v576_v45 = vmul.f32 1.442695, %v558_v55 }
 0x33e   : > { %3502 = vmatmul.msk.f32.gmra.mxu3 %vm394_vm1, %v4218_v32  ;;  %v578_v31 = vmul.f32 1.442695, %v559_v35 }
 0x345   : > { %538 = vmax.xlane.f32.xlu0 %v4738_v1 }
 0x346   : > { %3503 = vmatmul.msk.f32.gmra.mxu3 %vm394_vm1, %v4509_v49  ;;  %v6692_v49 = vld [vmem:[#allocation26_spill] sm:$0xff] }
 0x349   : > { %1256 = vmax.xlane.f32.xlu2 %v4743_v10 }
 0x34b   : > { %v4753_v5 = vpop.xlane.xlu0 %1242 }
 0x34c   : > { %536 = vmax.xlane.f32.xlu1 %v4748_v40  ;;  %v527_v2 = vpop.xlane.xlu1 %526 }
 0x34d   : > { %v557_v30 = vsub.f32 %v4584_v43, %v527_v2  ;;  %1258 = vmax.xlane.f32.xlu0 %v4751_v53 }
 0x34e   : > { %3504 = vmatmul.msk.f32.gmra.mxu3 %vm394_vm1, %v4474_v8  ;;  %v6691_v8 = vld [vmem:[#allocation18_spill] sm:$0xff] }
 0x34f   : > { %v574_v18 = vmul.f32 1.442695, %v557_v30 }
 0x351   : > { %3569 = vpow2.f32 %v574_v18 }
 0x352   : > { %3571 = vpow2.f32 %v1284_v20 }
 0x353   : > { %v535_v58 = vpop.xlane.xlu0 %534 }
 0x354   : > { %v1239_v62 = vpop.xlane.xlu1 %1238  ;;  %v561_v24 = vsub.f32 %v4592_v47, %v535_v58 }
 0x355   : > { %v1269_v25 = vsub.f32 %v4598_v37, %v1239_v62 }
 0x356   : > { %v582_v27 = vmul.f32 1.442695, %v561_v24  ;;  %3505 = vmatmul.msk.f32.gmra.mxu3 %vm394_vm1, %v4458_v46 }
 0x357   : > { %v4765_v43 = vpop.eup %3569  ;;  %v1286_v29 = vmul.f32 1.442695, %v1269_v25 }
 0x358   : > { %3573 = vpow2.f32 %v582_v27  ;;  %606 = vadd.xlane.f32.xlu2 %v4765_v43  ;;  %v4771_v30 = vpop.eup %3571 }
 0x359   : > { %3575 = vpow2.f32 %v1286_v29 }
 0x35a   : > { %3577 = vpow2.f32 %v576_v45 }
 0x35b   : > { %v1247_v6 = vpop.xlane.xlu2 %1246  ;;  %v1245_v47 = vpop.xlane.xlu0 %1244  ;;  %3579 = vpow2.f32 %v578_v31 }
 0x35c   : > { %v1241_v37 = vpop.xlane.xlu1 %1240  ;;  %v1272_v2 = vsub.f32 %v4606_v39, %v1245_v47 }
 0x35d   : > { %v1270_v44 = vsub.f32 %v4612_v51, %v1241_v37 }
 0x35e   : > { %v4773_v18 = vpop.eup %3573  ;;  %v1292_v20 = vmul.f32 1.442695, %v1272_v2  ;;  %3506 = vmatmul.msk.f32.gmra.mxu3 %vm394_vm1, %v4442_v0 }
 0x35f   : > { %v4777_v16 = vpop.eup %3575  ;;  %614 = vadd.xlane.f32.xlu0 %v4773_v18  ;;  %v1288_v39 = vmul.f32 1.442695, %v1270_v44 }
 0x360   : > { %1316 = vadd.xlane.f32.xlu2 %v4771_v30  ;;  %1318 = vadd.xlane.f32.xlu1 %v4777_v16  ;;  %3581 = vpow2.f32 %v1292_v20  ;;  %v4785_v25 = vpop.eup %3577 }
 0x361   : > { %v4789_v27 = vpop.eup %3579  ;;  %3583 = vpow2.f32 %v1288_v39 }
 0x363   : > { %v543_v4 = vpop.xlane.xlu2 %542  ;;  %v1249_v57 = vpop.xlane.xlu0 %1248 }
 0x364   : > { %v565_v58 = vsub.f32 %v4630_v50, %v543_v4  ;;  %v533_v62 = vpop.xlane.xlu1 %532  ;;  %v1271_v50 = vsub.f32 %v4579_v7, %v4753_v5  ;;  %v1274_v7 = vsub.f32 %v4627_v61, %v1249_v57  ;;  %v1224_v5 = vpop.f32.mrf.mxu3 }
 0x365   : > { %v560_v24 = vsub.f32 %v4633_v26, %v533_v62  ;;  %v1273_v26 = vsub.f32 %v4609_v36, %v1247_v6 }
 0x366   : > { %v590_v51 = vmul.f32 1.442695, %v565_v58  ;;  %3507 = vmatmul.msk.f32.gmra.mxu3 %vm394_vm1, %v4411_v63  ;;  %v4791_v55 = vpop.eup %3581  ;;  %v1290_v45 = vmul.f32 1.442695, %v1271_v50  ;;  %v1296_v6 = vmul.f32 1.442695, %v1274_v7  ;;  %v4813_v58 = vadd.f32 %v1224_v5, %v4674_v60 }
 0x367   : > { %v580_v29 = vmul.f32 1.442695, %v560_v24  ;;  %1324 = vadd.xlane.f32.xlu0 %v4791_v55  ;;  %v4799_v47 = vpop.eup %3583  ;;  %v1294_v31 = vmul.f32 1.442695, %v1273_v26 }
 0x368   : > { %3585 = vpow2.f32 %v590_v51  ;;  %610 = vadd.xlane.f32.xlu1 %v4789_v27  ;;  %608 = vadd.xlane.f32.xlu2 %v4785_v25 }
 0x369   : > { %3587 = vpow2.f32 %v580_v29 }
 0x36a   : > { %3589 = vpow2.f32 %v1290_v45 }
 0x36b   : > { %v1251_v35 = vpop.xlane.xlu0 %1250  ;;  %v547_v37 = vpop.xlane.xlu2 %546  ;;  %3591 = vpow2.f32 %v1294_v31 }
 0x36c   : > { %v541_v20 = vpop.xlane.xlu1 %540  ;;  %3593 = vpow2.f32 %v1296_v6  ;;  %v1227_v51 = vpop.f32.mrf.mxu3 }
 0x36d   : > { %v564_v36 = vsub.f32 %v4658_v41, %v541_v20  ;;  %v1275_v41 = vsub.f32 %v4655_v52, %v1251_v35  ;;  %v4834_v35 = vadd.f32 %v1227_v51, %v4669_v54 }
 0x36e   : > { %v4801_v2 = vpop.eup %3585  ;;  %3508 = vmatmul.msk.f32.gmra.mxu3 %vm394_vm1, %v4397_v59  ;;  %v6693_v59 = vld [vmem:[#allocation22_spill] sm:$0xff] }
 0x36f   : > { %v4805_v44 = vpop.eup %3587  ;;  %622 = vadd.xlane.f32.xlu0 %v4801_v2  ;;  %v588_v4 = vmul.f32 1.442695, %v564_v36  ;;  %v1298_v29 = vmul.f32 1.442695, %v1275_v41  ;;  %v2312_v63 = vpack.c.bf16 %v6693_v59, %v6692_v49 }
 0x370   : > { %612 = vadd.xlane.f32.xlu1 %v4805_v44  ;;  %1320 = vadd.xlane.f32.xlu2 %v4799_v47  ;;  %v4817_v61 = vpop.eup %3589 }
 0x371   : > { %v4819_v62 = vpop.eup %3591  ;;  %3595 = vpow2.f32 %v588_v4 }
 0x372   : > { %v4827_v26 = vpop.eup %3593  ;;  %3597 = vpow2.f32 %v1298_v29 }
 0x373   : > { %v545_v39 = vpop.xlane.xlu0 %544  ;;  %v551_v57 = vpop.xlane.xlu2 %550 }
 0x374   : > { %v566_v24 = vsub.f32 %v4677_v3, %v545_v39  ;;  %v569_v60 = vsub.f32 %v4680_v21, %v551_v57  ;;  %v567_v3 = vsub.f32 %v4652_v12, %v547_v37  ;;  %v549_v20 = vpop.xlane.xlu1 %548 }
 0x375   : > { %v568_v37 = vsub.f32 %v4683_v9, %v549_v20 }
 0x376   : > { %3509 = vmatmul.msk.f32.gmra.mxu3 %vm394_vm1, %v4383_v19  ;;  %v592_v50 = vmul.f32 1.442695, %v566_v24  ;;  %v598_v45 = vmul.f32 1.442695, %v569_v60  ;;  %v594_v7 = vmul.f32 1.442695, %v567_v3 }
 0x377   : > { %1326 = vadd.xlane.f32.xlu0 %v4819_v62  ;;  %v4831_v52 = vpop.eup %3595  ;;  %v596_v39 = vmul.f32 1.442695, %v568_v37  ;;  %v6680_v3 = vld [vmem:[#allocation29_spill] sm:$0xff] }
 0x378   : > { %1260 = vmax.xlane.f32.xlu1 %v4813_v58  ;;  %1322 = vadd.xlane.f32.xlu2 %v4817_v61  ;;  %3599 = vpow2.f32 %v592_v50  ;;  %v4841_v5 = vpop.eup %3597 }
 0x379   : > { %3601 = vpow2.f32 %v598_v45 }
 0x37a   : > { %3603 = vpow2.f32 %v594_v7 }
 0x37b   : > { %v553_v31 = vpop.xlane.xlu0 %552  ;;  %v1255_v57 = vpop.xlane.xlu2 %1254 }
 0x37c   : > { %v570_v21 = vsub.f32 %v4699_v42, %v553_v31  ;;  %v1230_v42 = vpop.f32.mrf.mxu3  ;;  %v555_v6 = vpop.xlane.xlu1 %554 }
 0x37d   : > { %v4860_v24 = vadd.f32 %v1230_v42, %v4691_v13  ;;  %v571_v9 = vsub.f32 %v4704_v23, %v555_v6  ;;  %v1277_v23 = vsub.f32 %v4701_v17, %v1255_v57 }
 0x37e   : > { %3510 = vmatmul.msk.f32.gmra.mxu3 %vm394_vm1, %v4357_v38  ;;  %v600_v36 = vmul.f32 1.442695, %v570_v21  ;;  %v4845_v12 = vpop.eup %3599 }
 0x37f   : > { %1262 = vmax.xlane.f32.xlu0 %v4834_v35  ;;  %v4847_v54 = vpop.eup %3601  ;;  %v602_v29 = vmul.f32 1.442695, %v571_v9  ;;  %v1302_v31 = vmul.f32 1.442695, %v1277_v23 }
 0x380   : > { %620 = vadd.xlane.f32.xlu2 %v4831_v52  ;;  %1328 = vadd.xlane.f32.xlu1 %v4827_v26  ;;  %3605 = vpow2.f32 %v600_v36  ;;  %v4853_v4 = vpop.eup %3603  ;;  %v6681_v36 = vld [vmem:[#allocation6_spill] sm:$0xff] }
 0x381   : > { %3607 = vpow2.f32 %v596_v39  ;;  %v6683_v39 = vld [vmem:[#allocation15_spill] sm:$0xff] }
 0x382   : > { %3609 = vpow2.f32 %v602_v29 }
 0x383   : > { %v1613_v45 = vpop.permute.xlu2 %1612  ;;  %3611 = vpow2.f32 %v1302_v31 }
 0x384   : > { %v1233_v60 = vpop.f32.mrf.mxu3 }
 0x385   : > { %v4867_v50 = vadd.f32 %v1233_v60, %v4696_v56 }
 0x386   : > { %3511 = vmatmul.msk.f32.gmra.mxu3 %vm394_vm1, %v4401_v48  ;;  %v4857_v41 = vpop.eup %3605 }
 0x387   : > { %630 = vadd.xlane.f32.xlu0 %v4847_v54  ;;  %v4871_v13 = vpop.eup %3607 }
 0x388   : > { %1330 = vadd.xlane.f32.xlu2 %v4841_v5  ;;  %624 = vadd.xlane.f32.xlu1 %v4845_v12  ;;  %v4878_v56 = vpop.eup %3609 }
 0x389   : > { %v4881_v21 = vpop.eup %3611 }
 0x38e   : > { %3512 = vmatmul.msk.f32.gmra.mxu3 %vm394_vm1, %v4377_v14 }
 0x38f   : > { %1264 = vmax.xlane.f32.xlu0 %v4860_v24 }
 0x390   : > { %626 = vadd.xlane.f32.xlu2 %v4853_v4  ;;  %632 = vadd.xlane.f32.xlu1 %v4857_v41 }
 0x394   : > { %v1615_v51 = vpop.permute.xlu1 %1614 }
 0x395   : > { %1642 = vmatpush.bf16.msra.mxu0 %v1615_v51 }
 0x396   : > { %3513 = vmatmul.msk.f32.gmra.mxu3 %vm394_vm1, %v4353_v28 }
 0x398   : > { %628 = vadd.xlane.f32.xlu2 %v4871_v13  ;;  %1266 = vmax.xlane.f32.xlu1 %v4867_v50 }
 0x399   : > { %1643 = vmatpush.bf16.msra.mxu0 %v1613_v45 }
 0x39e   : > { %3514 = vmatmul.msk.f32.gmra.mxu3 %vm394_vm1, %v6680_v3 }
 0x3a0   : > { %634 = vadd.xlane.f32.xlu2 %v4878_v56 }
 0x3a8   : > { %1334 = vadd.xlane.f32.xlu2 %v4881_v21  ;;  %v4884_v20 = vpop.xlane.xlu0 %604 }
 0x3a9   : > { %v2608_v7 = vpop.f32.mrf.mxu3  ;;  %vm641_vm3 = vweird.f32 %v4884_v20  ;;  %v645_v32 = vand.u32 2147483647, %v4884_v20 }
 0x3aa   : > { %v4887_v17 = vadd.f32 %v2608_v7, %v6681_v36 }
 0x3ab   : > { %vm646_vm8 = vcmp.eq.f32.partialorder %v645_v32, 8.507059e+37 }
 0x3ac   : > { %6682 = vst [vmem:[#allocation9_spill] sm:$0xff] %v4887_v17 }
 0x3b0   : > { %2656 = vmax.xlane.f32.xlu2 %v4887_v17  ;;  %v1253_v42 = vpop.xlane.xlu0 %1252 }
 0x3b1   : > { %v2611_v37 = vpop.f32.mrf.mxu3  ;;  %v1276_v6 = vsub.f32 %v4731_v34, %v1253_v42 }
 0x3b2   : > { %v4892_v57 = vadd.f32 %v2611_v37, %v6683_v39 }
 0x3b3   : > { %v1300_v9 = vmul.f32 1.442695, %v1276_v6 }
 0x3b4   : > { %6684 = vst [vmem:[#allocation13_spill] sm:$0xff] %v4892_v57  ;;  %2658 = vmax.xlane.f32.xlu0 %v4892_v57  ;;  %v6690_v57 = vld [vmem:[#allocation20_spill] sm:$0xff] }
 0x3b5   : > { %3613 = vpow2.f32 %v1300_v9 }
 0x3b8   : > { %v539_v60 = vpop.xlane.xlu0 %538 }
 0x3b9   : > { %v563_v51 = vsub.f32 %v4738_v1, %v539_v60 }
 0x3bb   : > { %v4896_v29 = vpop.eup %3613  ;;  %v586_v45 = vmul.f32 1.442695, %v563_v51 }
 0x3bc   : > { %v1257_v23 = vpop.xlane.xlu2 %1256  ;;  %1332 = vadd.xlane.f32.xlu1 %v4896_v29 }
 0x3bd   : > { %3615 = vpow2.f32 %v586_v45  ;;  %v1278_v31 = vsub.f32 %v4743_v10, %v1257_v23  ;;  %v4913_v23 = vpop.f32.mrf.mxu3 }
 0x3be   : > { %3617 = vrcp.f32 %v4884_v20 }
 0x3bf   : > { %v1304_v34 = vmul.f32 1.442695, %v1278_v31  ;;  %v537_v7 = vpop.xlane.xlu1 %536 }
 0x3c0   : > { %v562_v36 = vsub.f32 %v4748_v40, %v537_v7  ;;  %v1259_v42 = vpop.xlane.xlu0 %1258 }
 0x3c1   : > { %3619 = vpow2.f32 %v1304_v34  ;;  %v1279_v1 = vsub.f32 %v4751_v53, %v1259_v42 }
 0x3c2   : > { %v584_v37 = vmul.f32 1.442695, %v562_v36 }
 0x3c3   : > { %v4902_v6 = vpop.eup %3615  ;;  %v1306_v10 = vmul.f32 1.442695, %v1279_v1 }
 0x3c4   : > { %3621 = vpow2.f32 %v584_v37  ;;  %618 = vadd.xlane.f32.xlu2 %v4902_v6  ;;  %v3618_v39 = vpop.eup %3617 }
 0x3c5   : > { %v637_v60 = vmul.f32 %v3618_v39, %v4884_v20  ;;  %3623 = vpow2.f32 %v1306_v10  ;;  %vm642_vm2 = vweird.f32 %v3618_v39 }
 0x3c6   : > { %vm4926_vm4 = vmor %vm641_vm3, %vm642_vm2 }
 0x3c7   : > { %v4906_v9 = vpop.eup %3619  ;;  %v638_v45 = vsub.f32 1.0, %v637_v60  ;;  %v647_v60 = vand.u32 2147483648, %v4884_v20 }
 0x3c8   : > { %6685 = vst [vmem:[#allocation7_spill] sm:$0xff] %v4906_v9  ;;  %1336 = vadd.xlane.f32.xlu0 %v4906_v9 }
 0x3c9   : > { %v639_v53 = vmul.f32 %v3618_v39, %v638_v45  ;;  %v2617_v45 = vpop.f32.mrf.mxu3  ;;  %v648_v14 = vor.u32 1.1754944e-38, %v647_v60 }
 0x3ca   : > { %v4910_v51 = vpop.eup %3621 }
 0x3cb   : > { %v607_v40 = vpop.xlane.xlu2 %606  ;;  %616 = vadd.xlane.f32.xlu1 %v4910_v51  ;;  %v4915_v31 = vpop.eup %3623  ;;  %v640_v1 = vadd.f32 %v3618_v39, %v639_v53  ;;  %v6688_v53 = vld [vmem:[#allocation11_spill] sm:$0xff] }
 0x3cc   : > { %3625 = vrcp.f32 %v607_v40  ;;  %v662_v22 = vand.u32 2147483648, %v607_v40  ;;  %v4934_v46 = vadd.f32 %v2617_v45, %v6688_v53  ;;  %vm656_vm6 = vweird.f32 %v607_v40  ;;  %v6694_v53 = vld [vmem:[#allocation23_spill] sm:$0xff] }
 0x3cd   : > { %v644_v0 = vsel %vm4926_vm4, %v3618_v39, %v640_v1  ;;  %v660_v17 = vand.u32 2147483647, %v607_v40 }
 0x3ce   : > { %6689 = vst [vmem:[#allocation8_spill] sm:$0xff] %v4934_v46 }
 0x3cf   : > { %vm661_vm9 = vcmp.eq.f32.partialorder %v660_v17, 8.507059e+37 }
 0x3d2   : > { %v3626_v34 = vpop.eup %3625  ;;  %v4917_v7 = vpop.xlane.xlu0 %614 }
 0x3d3   : > { %v652_v36 = vmul.f32 %v3626_v34, %v607_v40  ;;  %v4919_v42 = vpop.xlane.xlu2 %1316  ;;  %v4921_v37 = vpop.xlane.xlu1 %1318  ;;  %1338 = vadd.xlane.f32.xlu1 %v4915_v31  ;;  %vm657_vm5 = vweird.f32 %v3626_v34  ;;  %v663_v40 = vor.u32 1.1754944e-38, %v662_v22 }
 0x3d4   : > { %vm658_vm7 = vmor %vm656_vm6, %vm657_vm5  ;;  %vm716_vm6 = vweird.f32 %v4917_v7 }
 0x3d5   : > { %v653_v10 = vsub.f32 1.0, %v652_v36 }
 0x3d7   : > { %v654_v15 = vmul.f32 %v3626_v34, %v653_v10  ;;  %v2313_v10 = vpack.c.bf16 %v6691_v8, %v6690_v57 }
 0x3d9   : > { %v655_v36 = vadd.f32 %v3626_v34, %v654_v15  ;;  %v649_v15 = vsel %vm646_vm8, %v648_v14, %v644_v0 }
 0x3da   : > { %v4943_v39 = vpop.xlane.xlu0 %1324  ;;  %v650_v60 = vmul.f32 %v4726_v33, %v649_v15 }
 0x3db   : > { %v611_v20 = vpop.xlane.xlu1 %610  ;;  %v4940_v48 = vpop.xlane.xlu2 %608  ;;  %2662 = vmax.xlane.f32.xlu1 %v4934_v46  ;;  %v659_v11 = vsel %vm658_vm7, %v3626_v34, %v655_v36  ;;  %v6695_v36 = vld [vmem:[#allocation25_spill] sm:$0xff] }
 0x3dc   : > { %3627 = vrcp.f32 %v611_v20  ;;  %2334 = vrot.lane.b32.xlu0 %v2312_v63, %s3883_s8  ;;  %2336 = vrot.lane.b32.xlu2 %v2313_v10, %s3883_s8  ;;  %v664_v1 = vsel %vm661_vm9, %v663_v40, %v659_v11  ;;  %v2311_v46 = vpack.c.bf16 %v6695_v36, %v6694_v53  ;;  %vm686_vm11 = vweird.f32 %v611_v20 }
 0x3dd   : > { %3629 = vrcp.f32 %v4940_v48  ;;  %v665_v45 = vmul.f32 %v4765_v43, %v664_v1  ;;  %v675_v57 = vand.u32 2147483647, %v4940_v48  ;;  %vm671_vm14 = vweird.f32 %v4940_v48 }
 0x3de   : > { %3631 = vrcp.f32 %v4917_v7 }
 0x3df   : > { %v876_v32 = vpack.c.bf16 %v665_v45, %v650_v60  ;;  %v692_v60 = vand.u32 2147483648, %v611_v20  ;;  %vm676_vm3 = vcmp.eq.f32.partialorder %v675_v57, 8.507059e+37 }
 0x3e1   : > { %932 = vmatmul.bf16.vlgmr.msrb.gmra.mxu0 %v876_v32  ;;  %v693_v53 = vor.u32 1.1754944e-38, %v692_v60 }
 0x3e2   : > { %v3628_v34 = vpop.eup %3627  ;;  %v4960_v43 = vpop.xlane.xlu0 %622 }
 0x3e3   : > { %v3630_v63 = vpop.eup %3629  ;;  %v682_v8 = vmul.f32 %v3628_v34, %v611_v20  ;;  %v4953_v14 = vpop.xlane.xlu1 %612  ;;  %vm687_vm10 = vweird.f32 %v3628_v34 }
 0x3e4   : > { %v4955_v22 = vpop.xlane.xlu2 %1320  ;;  %v667_v0 = vmul.f32 %v3630_v63, %v4940_v48  ;;  %3633 = vrcp.f32 %v4953_v14  ;;  %2332 = vrot.lane.b32.xlu2 %v2311_v46, %s3883_s8  ;;  %v4962_v17 = vpop.eup %3631  ;;  %v677_v46 = vand.u32 2147483648, %v4940_v48  ;;  %vm672_vm12 = vweird.f32 %v3630_v63  ;;  %vm4978_vm13 = vmor %vm686_vm11, %vm687_vm10 }
 0x3e5   : > { %v683_v33 = vsub.f32 1.0, %v682_v8  ;;  %3635 = vrcp.f32 %v4960_v43  ;;  %v712_v40 = vmul.f32 %v4962_v17, %v4917_v7  ;;  %v690_v8 = vand.u32 2147483647, %v611_v20  ;;  %vm673_vm15 = vmor %vm671_vm14, %vm672_vm12 }
 0x3e6   : > { %v668_v10 = vsub.f32 1.0, %v667_v0  ;;  %3637 = vrcp.f32 %v4919_v42  ;;  %v678_v19 = vor.u32 1.1754944e-38, %v677_v46  ;;  %vm717_vm4 = vweird.f32 %v4962_v17 }
 0x3e7   : > { %v684_v11 = vmul.f32 %v3628_v34, %v683_v33  ;;  %3639 = vrcp.f32 %v4921_v37  ;;  %v713_v49 = vsub.f32 1.0, %v712_v40  ;;  %vm691_vm2 = vcmp.eq.f32.partialorder %v690_v8, 8.507059e+37  ;;  %vm5021_vm8 = vmor %vm716_vm6, %vm717_vm4 }
 0x3e8   : > { %v669_v15 = vmul.f32 %v3630_v63, %v668_v10  ;;  %vm701_vm7 = vweird.f32 %v4953_v14  ;;  %vm1353_vm12 = vweird.f32 %v4919_v42  ;;  %vm776_vm14 = vweird.f32 %v4960_v43 }
 0x3e9   : > { %v685_v1 = vadd.f32 %v3628_v34, %v684_v11  ;;  %v714_v46 = vmul.f32 %v4962_v17, %v713_v49 }
 0x3ea   : > { %v4968_v45 = vpop.eup %3633  ;;  %v670_v10 = vadd.f32 %v3630_v63, %v669_v15 }
 0x3eb   : > { %v697_v32 = vmul.f32 %v4968_v45, %v4953_v14  ;;  %v1261_v0 = vpop.xlane.xlu1 %1260  ;;  %v689_v20 = vsel %vm4978_vm13, %v3628_v34, %v685_v1  ;;  %v4986_v38 = vpop.eup %3635  ;;  %vm702_vm5 = vweird.f32 %v4968_v45  ;;  %v715_v49 = vadd.f32 %v4962_v17, %v714_v46 }
 0x3ec   : > { %v4974_v33 = vpop.xlane.xlu2 %1322  ;;  %v1280_v59 = vsub.f32 %v4813_v58, %v1261_v0  ;;  %v4988_v3 = vpop.eup %3637  ;;  %v674_v28 = vsel %vm673_vm15, %v3630_v63, %v670_v10  ;;  %v694_v9 = vsel %vm691_vm2, %v693_v53, %v689_v20  ;;  %v772_v1 = vmul.f32 %v4986_v38, %v4960_v43  ;;  %vm5026_vm9 = vmor %vm701_vm7, %vm702_vm5 }
 0x3ed   : > { %v698_v36 = vsub.f32 1.0, %v697_v32  ;;  %v4990_v58 = vpop.eup %3639  ;;  %v4992_v34 = vpop.xlane.xlu0 %1326  ;;  %v679_v40 = vsel %vm676_vm3, %v678_v19, %v674_v28  ;;  %v695_v48 = vmul.f32 %v4789_v27, %v694_v9  ;;  %v1349_v8 = vmul.f32 %v4988_v3, %v4919_v42 }
 0x3ee   : > { %v1308_v15 = vmul.f32 1.442695, %v1280_v59  ;;  %v680_v59 = vmul.f32 %v4785_v25, %v679_v40  ;;  %v1364_v28 = vmul.f32 %v4990_v58, %v4921_v37  ;;  %v773_v19 = vsub.f32 1.0, %v772_v1 }
 0x3ef   : > { %v699_v60 = vmul.f32 %v4968_v45, %v698_v36  ;;  %v707_v9 = vand.u32 2147483648, %v4953_v14  ;;  %v722_v36 = vand.u32 2147483648, %v4917_v7  ;;  %v705_v32 = vand.u32 2147483647, %v4953_v14 }
 0x3f0   : > { %3641 = vpow2.f32 %v1308_v15  ;;  %v877_v63 = vpack.c.bf16 %v695_v48, %v680_v59  ;;  %v720_v10 = vand.u32 2147483647, %v4917_v7  ;;  %v1350_v11 = vsub.f32 1.0, %v1349_v8  ;;  %v6702_v59 = vld [vmem:[#allocation10_spill] sm:$0xff] }
 0x3f1   : > { %v700_v25 = vadd.f32 %v4968_v45, %v699_v60  ;;  %v1365_v20 = vsub.f32 1.0, %v1364_v28  ;;  %v774_v40 = vmul.f32 %v4986_v38, %v773_v19  ;;  %v719_v14 = vsel %vm5021_vm8, %v4962_v17, %v715_v49 }
 0x3f2   : > { %937 = vmatmul.bf16.gmra.mxu0 %v877_v63  ;;  %v5041_v7 = vadd.f32 %v4913_v23, %v6702_v59  ;;  %v708_v46 = vor.u32 1.1754944e-38, %v707_v9  ;;  %v723_v63 = vor.u32 1.1754944e-38, %v722_v36  ;;  %v1359_v8 = vand.u32 2147483648, %v4919_v42 }
 0x3f3   : > { %v5002_v53 = vpop.xlane.xlu1 %1328  ;;  %v704_v48 = vsel %vm5026_vm9, %v4968_v45, %v700_v25  ;;  %vm706_vm10 = vcmp.eq.f32.partialorder %v705_v32, 8.507059e+37  ;;  %vm721_vm11 = vcmp.eq.f32.partialorder %v720_v10, 8.507059e+37  ;;  %v1351_v17 = vmul.f32 %v4988_v3, %v1350_v11 }
 0x3f4   : > { %v5000_v57 = vpop.xlane.xlu2 %620  ;;  %v1366_v25 = vmul.f32 %v4990_v58, %v1365_v20  ;;  %v709_v23 = vsel %vm706_vm10, %v708_v46, %v704_v48  ;;  %v724_v49 = vsel %vm721_vm11, %v723_v63, %v719_v14  ;;  %v775_v36 = vadd.f32 %v4986_v38, %v774_v40 }
 0x3f5   : > { %3643 = vrcp.f32 %v5000_v57  ;;  %v1263_v60 = vpop.xlane.xlu0 %1262  ;;  %vm777_vm13 = vweird.f32 %v4986_v38  ;;  %v782_v32 = vand.u32 2147483648, %v4960_v43  ;;  %v780_v10 = vand.u32 2147483647, %v4960_v43 }
 0x3f6   : > { %v5013_v27 = vpop.eup %3641  ;;  %v1281_v0 = vsub.f32 %v4834_v35, %v1263_v60  ;;  %v710_v20 = vmul.f32 %v4805_v44, %v709_v23  ;;  %vm1354_vm2 = vweird.f32 %v4988_v3  ;;  %v767_v15 = vand.u32 2147483648, %v5000_v57  ;;  %vm5068_vm3 = vmor %vm776_vm14, %vm777_vm13 }
 0x3f7   : > { %1340 = vadd.xlane.f32.xlu1 %v5013_v27  ;;  %v725_v40 = vmul.f32 %v4773_v18, %v724_v49  ;;  %vm761_vm4 = vweird.f32 %v5000_v57  ;;  %v765_v44 = vand.u32 2147483647, %v5000_v57  ;;  %v779_v48 = vsel %vm5068_vm3, %v4986_v38, %v775_v36  ;;  %vm5108_vm10 = vmor %vm1353_vm12, %vm1354_vm2 }
 0x3f8   : > { %v1352_v14 = vadd.f32 %v4988_v3, %v1351_v17  ;;  %vm1369_vm5 = vweird.f32 %v4990_v58  ;;  %v1310_v59 = vmul.f32 1.442695, %v1281_v0  ;;  %v783_v60 = vor.u32 1.1754944e-38, %v782_v32 }
 0x3f9   : > { %v1367_v63 = vadd.f32 %v4990_v58, %v1366_v25  ;;  %vm781_vm7 = vcmp.eq.f32.partialorder %v780_v10, 8.507059e+37  ;;  %v768_v23 = vor.u32 1.1754944e-38, %v767_v15  ;;  %v1357_v36 = vand.u32 2147483647, %v4919_v42 }
 0x3fa   : > { %v784_v49 = vsel %vm781_vm7, %v783_v60, %v779_v48  ;;  %vm1368_vm8 = vweird.f32 %v4921_v37  ;;  %v1374_v25 = vand.u32 2147483648, %v4921_v37  ;;  %vm766_vm9 = vcmp.eq.f32.partialorder %v765_v44, 8.507059e+37 }
 0x3fb   : > { %v5037_v1 = vpop.eup %3643  ;;  %v5048_v45 = vpop.xlane.xlu1 %624  ;;  %v1372_v10 = vand.u32 2147483647, %v4921_v37  ;;  %v1360_v15 = vor.u32 1.1754944e-38, %v1359_v8  ;;  %vm5116_vm11 = vmor %vm1368_vm8, %vm1369_vm5  ;;  %v785_v35 = vmul.f32 %v4801_v2, %v784_v49  ;;  %v1356_v37 = vsel %vm5108_vm10, %v4988_v3, %v1352_v14 }
 0x3fc   : > { %v757_v28 = vmul.f32 %v5037_v1, %v5000_v57  ;;  %v5046_v19 = vpop.xlane.xlu2 %1330  ;;  %3645 = vrcp.f32 %v5048_v45  ;;  %vm762_vm15 = vweird.f32 %v5037_v1  ;;  %v1371_v8 = vsel %vm5116_vm11, %v4990_v58, %v1367_v63  ;;  %v6711_v63 = vld [vmem:[#allocation24_spill] sm:$0xff] }
 0x3fd   : > { %3647 = vrcp.f32 %v4974_v33  ;;  %vm5080_vm6 = vmor %vm761_vm4, %vm762_vm15  ;;  %v5100_v32 = vpop.xlane.xlu0 %630  ;;  %vm1358_vm12 = vcmp.eq.f32.partialorder %v1357_v36, 8.507059e+37  ;;  %v1375_v48 = vor.u32 1.1754944e-38, %v1374_v25  ;;  %vm1373_vm13 = vcmp.eq.f32.partialorder %v1372_v10, 8.507059e+37 }
 0x3fe   : > { %v758_v9 = vsub.f32 1.0, %v757_v28  ;;  %3649 = vrcp.f32 %v4955_v22  ;;  %v878_v28 = vpack.c.bf16 %v725_v40, %v710_v20  ;;  %v1361_v3 = vsel %vm1358_vm12, %v1360_v15, %v1356_v37 }
 0x3ff   : > { %v1376_v60 = vsel %vm1373_vm13, %v1375_v48, %v1371_v8  ;;  %v797_v49 = vand.u32 2147483648, %v5048_v45  ;;  %vm791_vm15 = vweird.f32 %v5048_v45  ;;  %v795_v25 = vand.u32 2147483647, %v5048_v45 }
 0x400   : > { %v759_v11 = vmul.f32 %v5037_v1, %v758_v9  ;;  %v1377_v15 = vmul.f32 %v4777_v16, %v1376_v60  ;;  %vm1398_vm8 = vweird.f32 %v4974_v33  ;;  %vm1383_vm12 = vweird.f32 %v4955_v22 }
 0x401   : > { %v798_v16 = vor.u32 1.1754944e-38, %v797_v49  ;;  %vm796_vm5 = vcmp.eq.f32.partialorder %v795_v25, 8.507059e+37 }
 0x402   : > { %v760_v43 = vadd.f32 %v5037_v1, %v759_v11  ;;  %v5084_v46 = vpop.eup %3645  ;;  %942 = vmatmul.bf16.gmra.mxu0 %v878_v28 }
 0x403   : > { %v787_v17 = vmul.f32 %v5084_v46, %v5048_v45  ;;  %v5095_v9 = vpop.eup %3647  ;;  %vm792_vm14 = vweird.f32 %v5084_v46  ;;  %v5183_v49 = vpop.xlane.xlu1 %632 }
 0x404   : > { %v5087_v57 = vpop.xlane.xlu2 %626  ;;  %v764_v38 = vsel %vm5080_vm6, %v5037_v1, %v760_v43  ;;  %v5102_v1 = vpop.eup %3649  ;;  %v1394_v43 = vmul.f32 %v5095_v9, %v4974_v33  ;;  %vm5156_vm2 = vmor %vm791_vm15, %vm792_vm14 }
 0x405   : > { %3651 = vrcp.f32 %v5087_v57  ;;  %v788_v11 = vsub.f32 1.0, %v787_v17  ;;  %v769_v20 = vsel %vm766_vm9, %v768_v23, %v764_v38  ;;  %v1379_v2 = vmul.f32 %v5102_v1, %v4955_v22  ;;  %v6712_v38 = vld [vmem:[#allocation27_spill] sm:$0xff] }
 0x406   : > { %3653 = vpow2.f32 %v1310_v59  ;;  %2660 = vmax.xlane.f32.xlu0 %v5041_v7  ;;  %v770_v42 = vmul.f32 %v4831_v52, %v769_v20  ;;  %v2310_v17 = vpack.c.bf16 %v6712_v38, %v6711_v63  ;;  %v1395_v23 = vsub.f32 1.0, %v1394_v43 }
 0x407   : > { %3655 = vrcp.f32 %v5100_v32  ;;  %v789_v44 = vmul.f32 %v5084_v46, %v788_v11  ;;  %v1380_v10 = vsub.f32 1.0, %v1379_v2  ;;  %v812_v11 = vand.u32 2147483648, %v5087_v57 }
 0x408   : > { %v880_v52 = vpack.c.bf16 %v785_v35, %v770_v42  ;;  %v1362_v20 = vmul.f32 %v4771_v30, %v1361_v3  ;;  %v810_v35 = vand.u32 2147483647, %v5087_v57  ;;  %v1396_v30 = vmul.f32 %v5095_v9, %v1395_v23 }
 0x409   : > { %v790_v28 = vadd.f32 %v5084_v46, %v789_v44  ;;  %vm806_vm4 = vweird.f32 %v5087_v57  ;;  %v1389_v44 = vand.u32 2147483648, %v4955_v22  ;;  %vm1399_vm9 = vweird.f32 %v5095_v9 }
 0x40a   : > { %952 = vmatmul.bf16.vlgmr.msra.gmra.mxu2 %v880_v52  ;;  %v813_v52 = vor.u32 1.1754944e-38, %v812_v11  ;;  %vm811_vm7 = vcmp.eq.f32.partialorder %v810_v35, 8.507059e+37  ;;  %vm1384_vm10 = vweird.f32 %v5102_v1  ;;  %vm5205_vm11 = vmor %vm1398_vm8, %vm1399_vm9 }
 0x40b   : > { %v3652_v59 = vpop.eup %3651  ;;  %v794_v45 = vsel %vm5156_vm2, %v5084_v46, %v790_v28  ;;  %v1381_v46 = vmul.f32 %v5102_v1, %v1380_v10  ;;  %vm5217_vm13 = vmor %vm1383_vm12, %vm1384_vm10 }
 0x40c   : > { %v802_v14 = vmul.f32 %v3652_v59, %v5087_v57  ;;  %v5135_v18 = vpop.xlane.xlu2 %628  ;;  %v5139_v58 = vpop.eup %3653  ;;  %vm807_vm3 = vweird.f32 %v3652_v59  ;;  %v799_v48 = vsel %vm796_vm5, %v798_v16, %v794_v45  ;;  %v6715_v45 = vld [vmem:[#allocation30_spill] sm:$0xff]  ;;  %vm836_vm5 = vweird.f32 %v5100_v32 }
 0x40d   : > { %3657 = vrcp.f32 %v5135_v18  ;;  %1342 = vadd.xlane.f32.xlu2 %v5139_v58  ;;  %v5149_v0 = vpop.eup %3655  ;;  %vm808_vm6 = vmor %vm806_vm4, %vm807_vm3  ;;  %v800_v25 = vmul.f32 %v4845_v12, %v799_v48  ;;  %v1402_v12 = vand.u32 2147483647, %v4974_v33  ;;  %vm821_vm3 = vweird.f32 %v5135_v18 }
 0x40e   : > { %3659 = vrcp.f32 %v4992_v34  ;;  %v803_v36 = vsub.f32 1.0, %v802_v14  ;;  %v832_v37 = vmul.f32 %v5149_v0, %v5100_v32  ;;  %v1588_v14 = vpack.c.bf16 %v1377_v15, %v1362_v20 }
 0x40f   : > { %3661 = vrcp.f32 %v4943_v39  ;;  %v1382_v15 = vadd.f32 %v5102_v1, %v1381_v46  ;;  %vm1403_vm14 = vcmp.eq.f32.partialorder %v1402_v12, 8.507059e+37  ;;  %vm837_vm4 = vweird.f32 %v5149_v0  ;;  %v6724_v12 = vld [vmem:[#allocation5_spill] sm:$0xff] }
 0x410   : > { %v804_v42 = vmul.f32 %v3652_v59, %v803_v36  ;;  %2330 = vrot.lane.b32.xlu1 %v2310_v17, %s3883_s8  ;;  %v1397_v17 = vadd.f32 %v5095_v9, %v1396_v30  ;;  %v833_v23 = vsub.f32 1.0, %v832_v37  ;;  %v1387_v30 = vand.u32 2147483647, %v4955_v22 }
 0x411   : > { %v1386_v22 = vsel %vm5217_vm13, %v5102_v1, %v1382_v15  ;;  %v840_v15 = vand.u32 2147483647, %v5100_v32 }
 0x412   : > { %v805_v43 = vadd.f32 %v3652_v59, %v804_v42  ;;  %1644 = vmatmul.bf16.vlgmr.msra.gmra.mxu0 %v1588_v14  ;;  %v834_v37 = vmul.f32 %v5149_v0, %v833_v23  ;;  %vm1388_vm2 = vcmp.eq.f32.partialorder %v1387_v30, 8.507059e+37 }
 0x413   : > { %v5170_v8 = vpop.eup %3657  ;;  %vm841_vm9 = vcmp.eq.f32.partialorder %v840_v15, 8.507059e+37 }
 0x414   : > { %v5174_v2 = vpop.eup %3659  ;;  %v817_v3 = vmul.f32 %v5170_v8, %v5135_v18  ;;  %v5178_v60 = vpop.xlane.xlu2 %634  ;;  %v809_v57 = vsel %vm808_vm6, %v3652_v59, %v805_v43  ;;  %v1404_v59 = vand.u32 2147483648, %v4974_v33  ;;  %v1401_v43 = vsel %vm5205_vm11, %v5095_v9, %v1397_v17  ;;  %v6726_v33 = vld [vmem:[#allocation33_spill] sm:$0xff] }
 0x415   : > { %v814_v28 = vsel %vm811_vm7, %v813_v52, %v809_v57  ;;  %v5187_v11 = vpop.eup %3661  ;;  %v1424_v20 = vmul.f32 %v5174_v2, %v4992_v34  ;;  %3663 = vrcp.f32 %v5178_v60  ;;  %v1390_v52 = vor.u32 1.1754944e-38, %v1389_v44  ;;  %vm838_vm7 = vmor %vm836_vm5, %vm837_vm4 }
 0x416   : > { %v818_v36 = vsub.f32 1.0, %v817_v3  ;;  %v815_v10 = vmul.f32 %v4853_v4, %v814_v28  ;;  %v6716_v4 = vld [vmem:[#allocation28_spill] sm:$0xff]  ;;  %3665 = vrcp.f32 %v5183_v49  ;;  %v1409_v46 = vmul.f32 %v5187_v11, %v4943_v39 }
 0x417   : > { %v2309_v35 = vpack.c.bf16 %v6716_v4, %v6715_v45  ;;  %v1425_v48 = vsub.f32 1.0, %v1424_v20  ;;  %v1405_v3 = vor.u32 1.1754944e-38, %v1404_v59  ;;  %vm822_vm15 = vweird.f32 %v5170_v8 }
 0x418   : > { %v819_v40 = vmul.f32 %v5170_v8, %v818_v36  ;;  %v881_v42 = vpack.c.bf16 %v815_v10, %v800_v25  ;;  %3667 = vrcp.f32 %v5046_v19  ;;  %v827_v57 = vand.u32 2147483648, %v5135_v18  ;;  %vm5240_vm6 = vmor %vm821_vm3, %vm822_vm15 }
 0x419   : > { %v1406_v28 = vsel %vm1403_vm14, %v1405_v3, %v1401_v43  ;;  %v825_v44 = vand.u32 2147483647, %v5135_v18  ;;  %v835_v17 = vadd.f32 %v5149_v0, %v834_v37  ;;  %v1410_v23 = vsub.f32 1.0, %v1409_v46 }
 0x41a   : > { %2328 = vrot.lane.b32.xlu0 %v2309_v35, %s3883_s8  ;;  %957 = vmatmul.bf16.gmra.mxu2 %v881_v42  ;;  %v820_v9 = vadd.f32 %v5170_v8, %v819_v40  ;;  %v842_v36 = vand.u32 2147483648, %v5100_v32  ;;  %v1391_v25 = vsel %vm1388_vm2, %v1390_v52, %v1386_v22  ;;  %v1407_v59 = vmul.f32 %v4817_v61, %v1406_v28  ;;  %v6723_v42 = vld [vmem:[#allocation4_spill] sm:$0xff] }
 0x41b   : > { %v5226_v14 = vpop.eup %3663  ;;  %v1426_v40 = vmul.f32 %v5174_v2, %v1425_v48  ;;  %3669 = vrcp.f32 %v5002_v53  ;;  %v2307_v35 = vpack.c.bf16 %v6724_v12, %v6723_v42  ;;  %v828_v30 = vor.u32 1.1754944e-38, %v827_v57  ;;  %v6725_v48 = vld [vmem:[#allocation36_spill] sm:$0xff] }
 0x41c   : > { %v5234_v1 = vpop.eup %3665  ;;  %v862_v18 = vmul.f32 %v5226_v14, %v5178_v60  ;;  %v824_v20 = vsel %vm5240_vm6, %v5170_v8, %v820_v9  ;;  %v1392_v16 = vmul.f32 %v4799_v47, %v1391_v25  ;;  %vm826_vm8 = vcmp.eq.f32.partialorder %v825_v44, 8.507059e+37  ;;  %v5267_v47 = vpop.xlane.xlu2 %1334 }
 0x41d   : > { %v847_v61 = vmul.f32 %v5234_v1, %v5183_v49  ;;  %v839_v8 = vsel %vm838_vm7, %v5149_v0, %v835_v17  ;;  %v829_v37 = vsel %vm826_vm8, %v828_v30, %v824_v20  ;;  %v843_v43 = vor.u32 1.1754944e-38, %v842_v36  ;;  %v5280_v25 = vpop.xlane.xlu1 %1266 }
 0x41e   : > { %v5261_v32 = vpop.eup %3667  ;;  %v1411_v46 = vmul.f32 %v5187_v11, %v1410_v23  ;;  %v2308_v52 = vpack.c.bf16 %v6726_v33, %v6725_v48  ;;  %v863_v3 = vsub.f32 1.0, %v862_v18  ;;  %v1589_v22 = vpack.c.bf16 %v1407_v59, %v1392_v16 }
 0x41f   : > { %v844_v9 = vsel %vm841_vm9, %v843_v43, %v839_v8  ;;  %v848_v57 = vsub.f32 1.0, %v847_v61  ;;  %v830_v0 = vmul.f32 %v4871_v13, %v829_v37  ;;  %v1427_v28 = vadd.f32 %v5174_v2, %v1426_v40  ;;  %v5303_v8 = vpop.f32.mrf.mxu3 }
 0x420   : > { %vm1429_vm10 = vweird.f32 %v5174_v2  ;;  %vm1428_vm11 = vweird.f32 %v4992_v34  ;;  %v1434_v17 = vand.u32 2147483648, %v4992_v34  ;;  %v1454_v23 = vmul.f32 %v5261_v32, %v5046_v19 }
 0x421   : > { %v5273_v44 = vpop.eup %3669  ;;  %v1412_v36 = vadd.f32 %v5187_v11, %v1411_v46  ;;  %v864_v10 = vmul.f32 %v5226_v14, %v863_v3  ;;  %v845_v13 = vmul.f32 %v4847_v54, %v844_v9  ;;  %vm1414_vm12 = vweird.f32 %v5187_v11  ;;  %vm5288_vm13 = vmor %vm1428_vm11, %vm1429_vm10 }
 0x422   : > { %2324 = vrot.lane.b32.xlu0 %v2307_v35, %s3883_s8  ;;  %1649 = vmatmul.bf16.gmra.mxu0 %v1589_v22  ;;  %v1432_v18 = vand.u32 2147483647, %v4992_v34  ;;  %v1417_v59 = vand.u32 2147483647, %v4943_v39  ;;  %v1419_v20 = vand.u32 2147483648, %v4943_v39  ;;  %vm1413_vm14 = vweird.f32 %v4943_v39 }
 0x423   : > { %v882_v40 = vpack.c.bf16 %v845_v13, %v830_v0  ;;  %v1431_v35 = vsel %vm5288_vm13, %v5174_v2, %v1427_v28  ;;  %v849_v54 = vmul.f32 %v5234_v1, %v848_v57  ;;  %v1439_v34 = vmul.f32 %v5273_v44, %v5002_v53  ;;  %vm5299_vm15 = vmor %vm1413_vm14, %vm1414_vm12 }
 0x424   : > { %v1455_v30 = vsub.f32 1.0, %v1454_v23  ;;  %v1435_v16 = vor.u32 1.1754944e-38, %v1434_v17  ;;  %v1416_v39 = vsel %vm5299_vm15, %v5187_v11, %v1412_v36  ;;  %vm1433_vm2 = vcmp.eq.f32.partialorder %v1432_v18, 8.507059e+37  ;;  %v1265_v11 = vpop.xlane.xlu0 %1264  ;;  %v5320_v28 = vpop.xlane.xlu2 %2656 }
 0x425   : > { %2326 = vrot.lane.b32.xlu2 %v2308_v52, %s3883_s8  ;;  %v865_v2 = vadd.f32 %v5226_v14, %v864_v10  ;;  %vm867_vm3 = vweird.f32 %v5226_v14  ;;  %v872_v37 = vand.u32 2147483648, %v5178_v60  ;;  %vm1418_vm4 = vcmp.eq.f32.partialorder %v1417_v59, 8.507059e+37 }
 0x426   : > { %v1420_v43 = vor.u32 1.1754944e-38, %v1419_v20  ;;  %v1436_v46 = vsel %vm1433_vm2, %v1435_v16, %v1431_v35  ;;  %vm866_vm5 = vweird.f32 %v5178_v60  ;;  %v850_v52 = vadd.f32 %v5234_v1, %v849_v54 }
 0x427   : > { %vm852_vm6 = vweird.f32 %v5234_v1  ;;  %v870_v3 = vand.u32 2147483647, %v5178_v60  ;;  %v1440_v22 = vsub.f32 1.0, %v1439_v34  ;;  %v857_v57 = vand.u32 2147483648, %v5183_v49  ;;  %vm5316_vm7 = vmor %vm866_vm5, %vm867_vm3  ;;  %v2623_v35 = vpop.f32.mrf.mxu3 }
 0x428   : > { %v1421_v9 = vsel %vm1418_vm4, %v1420_v43, %v1416_v39  ;;  %v1437_v23 = vmul.f32 %v4819_v62, %v1436_v46  ;;  %vm851_vm8 = vweird.f32 %v5183_v49  ;;  %v855_v36 = vand.u32 2147483647, %v5183_v49 }
 0x429   : > { %v869_v60 = vsel %vm5316_vm7, %v5226_v14, %v865_v2  ;;  %vm853_vm9 = vmor %vm851_vm8, %vm852_vm6  ;;  %v873_v10 = vor.u32 1.1754944e-38, %v872_v37  ;;  %v1456_v13 = vmul.f32 %v5261_v32, %v1455_v30  ;;  %v1422_v18 = vmul.f32 %v4791_v55, %v1421_v9  ;;  %v5357_v37 = vld [vmem:[%s6546_s3 + $0x28] sm:$0xff] }
 0x42a   : > { %962 = vmatmul.bf16.gmra.mxu2 %v882_v40  ;;  %v854_v59 = vsel %vm853_vm9, %v5234_v1, %v850_v52  ;;  %vm871_vm10 = vcmp.eq.f32.partialorder %v870_v3, 8.507059e+37  ;;  %v1282_v62 = vsub.f32 %v4860_v24, %v1265_v11  ;;  %v858_v49 = vor.u32 1.1754944e-38, %v857_v57 }
 0x42b   : > { %v874_v20 = vsel %vm871_vm10, %v873_v10, %v869_v60  ;;  %v1590_v15 = vpack.c.bf16 %v1437_v23, %v1422_v18  ;;  %vm856_vm11 = vcmp.eq.f32.partialorder %v855_v36, 8.507059e+37  ;;  %v1441_v14 = vmul.f32 %v5273_v44, %v1440_v22 }
 0x42c   : > { %v859_v40 = vsel %vm856_vm11, %v858_v49, %v854_v59  ;;  %v875_v54 = vmul.f32 %v4878_v56, %v874_v20  ;;  %v1457_v55 = vadd.f32 %v5261_v32, %v1456_v13  ;;  %vm1459_vm12 = vweird.f32 %v5261_v32  ;;  %v5344_v30 = vpop.xlane.xlu0 %2658 }
 0x42d   : > { %vm1458_vm13 = vweird.f32 %v5046_v19  ;;  %v1464_v24 = vand.u32 2147483648, %v5046_v19  ;;  %v1312_v34 = vmul.f32 1.442695, %v1282_v62  ;;  %v860_v16 = vmul.f32 %v4857_v41, %v859_v40 }
 0x42e   : > { %v1442_v39 = vadd.f32 %v5273_v44, %v1441_v14  ;;  %vm1444_vm14 = vweird.f32 %v5273_v44  ;;  %v1462_v56 = vand.u32 2147483647, %v5046_v19  ;;  %v5360_v43 = vadd.f32 %v5357_v37, %v2623_v35  ;;  %vm5369_vm2 = vmor %vm1458_vm13, %vm1459_vm12 }
 0x42f   : > { %v5322_v17 = vpop.xlane.xlu1 %1332  ;;  %vm1443_vm15 = vweird.f32 %v5002_v53  ;;  %v1449_v41 = vand.u32 2147483648, %v5002_v53  ;;  %v883_v3 = vpack.c.bf16 %v875_v54, %v860_v16  ;;  %v1447_v22 = vand.u32 2147483647, %v5002_v53  ;;  %v2626_v49 = vpop.f32.mrf.mxu3 }
 0x430   : > { %3671 = vrcp.f32 %v5322_v17  ;;  %v1461_v11 = vsel %vm5369_vm2, %v5261_v32, %v1457_v55  ;;  %v1283_v9 = vsub.f32 %v4867_v50, %v5280_v25  ;;  %vm1445_vm3 = vmor %vm1443_vm15, %vm1444_vm14  ;;  %v1465_v19 = vor.u32 1.1754944e-38, %v1464_v24  ;;  %v5417_v55 = vld [vmem:[%s6546_s3 + $0x30] sm:$0xff] }
 0x431   : > { %3673 = vrcp.f32 %v5267_v47  ;;  %v1446_v53 = vsel %vm1445_vm3, %v5273_v44, %v1442_v39  ;;  %vm1463_vm4 = vcmp.eq.f32.partialorder %v1462_v56, 8.507059e+37  ;;  %v1450_v0 = vor.u32 1.1754944e-38, %v1449_v41 }
 0x432   : > { %1654 = vmatmul.bf16.gmra.mxu0 %v1590_v15  ;;  %v1466_v23 = vsel %vm1463_vm4, %v1465_v19, %v1461_v11  ;;  %vm1448_vm5 = vcmp.eq.f32.partialorder %v1447_v22, 8.507059e+37  ;;  %v1314_v50 = vmul.f32 1.442695, %v1283_v9  ;;  %v5420_v24 = vadd.f32 %v5417_v55, %v2626_v49  ;;  %v6741_v49 = vld [vmem:[#allocation2_spill] sm:$0xff] }
 0x433   : > { %v1451_v60 = vsel %vm1448_vm5, %v1450_v0, %v1446_v53  ;;  %v1467_v59 = vmul.f32 %v4841_v5, %v1466_v23  ;;  %v5408_v5 = vld [vmem:[%s6546_s3 + $0x20] sm:$0xff]  ;;  %vm1488_vm6 = vweird.f32 %v5267_v47  ;;  %vm1473_vm7 = vweird.f32 %v5322_v17 }
 0x434   : > { %v1452_v15 = vmul.f32 %v4827_v26, %v1451_v60  ;;  %v5412_v26 = vadd.f32 %v5408_v5, %v5303_v8  ;;  %v1479_v8 = vand.u32 2147483648, %v5322_v17  ;;  %v1492_v53 = vand.u32 2147483647, %v5267_v47 }
 0x436   : > { %v5340_v1 = vpop.eup %3671  ;;  %v1591_v54 = vpack.c.bf16 %v1467_v59, %v1452_v15  ;;  %vm1493_vm5 = vcmp.eq.f32.partialorder %v1492_v53, 8.507059e+37 }
 0x437   : > { %v5346_v61 = vpop.xlane.xlu2 %618  ;;  %v5352_v2 = vpop.eup %3673  ;;  %v1469_v52 = vmul.f32 %v5340_v1, %v5322_v17  ;;  %vm1474_vm8 = vweird.f32 %v5340_v1 }
 0x438   : > { %3675 = vrcp.f32 %v5346_v61  ;;  %v1484_v57 = vmul.f32 %v5352_v2, %v5267_v47  ;;  %vm1489_vm10 = vweird.f32 %v5352_v2  ;;  %vm746_vm11 = vweird.f32 %v5346_v61  ;;  %vm5446_vm12 = vmor %vm1473_vm7, %vm1474_vm8 }
 0x439   : > { %3677 = vpow2.f32 %v1312_v34  ;;  %v1470_v32 = vsub.f32 1.0, %v1469_v52  ;;  %v1494_v34 = vand.u32 2147483648, %v5267_v47  ;;  %v1477_v52 = vand.u32 2147483647, %v5322_v17  ;;  %vm5468_vm14 = vmor %vm1488_vm6, %vm1489_vm10 }
 0x43a   : > { %2666 = vmax.xlane.f32.xlu1 %v5360_v43  ;;  %967 = vmatmul.bf16.gmra.mxu2 %v883_v3  ;;  %v1485_v10 = vsub.f32 1.0, %v1484_v57  ;;  %v752_v3 = vand.u32 2147483648, %v5346_v61  ;;  %v750_v9 = vand.u32 2147483647, %v5346_v61 }
 0x43b   : > { %v5393_v18 = vpop.xlane.xlu0 %1336  ;;  %v1471_v14 = vmul.f32 %v5340_v1, %v1470_v32  ;;  %v1480_v32 = vor.u32 1.1754944e-38, %v1479_v8  ;;  %vm1478_vm2 = vcmp.eq.f32.partialorder %v1477_v52, 8.507059e+37 }
 0x43c   : > { %v1486_v40 = vmul.f32 %v5352_v2, %v1485_v10  ;;  %vm751_vm3 = vcmp.eq.f32.partialorder %v750_v9, 8.507059e+37  ;;  %v5495_v9 = vld [vmem:[%s6546_s3 + $0x38] sm:$0xff] }
 0x43d   : > { %v1472_v39 = vadd.f32 %v5340_v1, %v1471_v14 }
 0x43e   : > { %v5387_v36 = vpop.eup %3675  ;;  %v5389_v25 = vpop.xlane.xlu1 %616  ;;  %v1487_v22 = vadd.f32 %v5352_v2, %v1486_v40 }
 0x43f   : > { %v742_v13 = vmul.f32 %v5387_v36, %v5346_v61  ;;  %3679 = vrcp.f32 %v5389_v25  ;;  %v2337_v44 = vpop.permute.xlu2 %2336  ;;  %v5397_v62 = vpop.eup %3677  ;;  %vm747_vm9 = vweird.f32 %v5387_v36  ;;  %v737_v61 = vand.u32 2147483648, %v5389_v25 }
 0x440   : > { %2346 = vmatpush.bf16.msra.mxu1 %v2337_v44  ;;  %3681 = vrcp.f32 %v5393_v18  ;;  %vm5455_vm13 = vmor %vm746_vm11, %vm747_vm9  ;;  %v1476_v17 = vsel %vm5446_vm12, %v5340_v1, %v1472_v39  ;;  %v753_v44 = vor.u32 1.1754944e-38, %v752_v3  ;;  %v1491_v47 = vsel %vm5468_vm14, %v5352_v2, %v1487_v22  ;;  %v2629_v39 = vpop.f32.mrf.mxu3 }
 0x441   : > { %v743_v20 = vsub.f32 1.0, %v742_v13  ;;  %3683 = vpow2.f32 %v1314_v50  ;;  %v1495_v50 = vor.u32 1.1754944e-38, %v1494_v34  ;;  %v735_v13 = vand.u32 2147483647, %v5389_v25 }
 0x442   : > { %1344 = vadd.xlane.f32.xlu1 %v5397_v62  ;;  %1659 = vmatmul.bf16.gmra.mxu0 %v1591_v54  ;;  %vm731_vm4 = vweird.f32 %v5389_v25  ;;  %v738_v14 = vor.u32 1.1754944e-38, %v737_v61  ;;  %v6742_v61 = vld [vmem:[#allocation3_spill] sm:$0xff]  ;;  %vm1503_vm12 = vweird.f32 %v5393_v18 }
 0x443   : > { %v744_v35 = vmul.f32 %v5387_v36, %v743_v20  ;;  %v1481_v20 = vsel %vm1478_vm2, %v1480_v32, %v1476_v17  ;;  %v1496_v34 = vsel %vm1493_vm5, %v1495_v50, %v1491_v47  ;;  %vm736_vm7 = vcmp.eq.f32.partialorder %v735_v13, 8.507059e+37  ;;  %v6743_v47 = vld [vmem:[#allocation7_spill] sm:$0xff] }
 0x444   : > { %v1482_v8 = vmul.f32 %v4896_v29, %v1481_v20  ;;  %v1497_v22 = vmul.f32 %v4881_v21, %v1496_v34  ;;  %v1509_v32 = vand.u32 2147483648, %v5393_v18  ;;  %v1507_v50 = vand.u32 2147483647, %v5393_v18 }
 0x445   : > { %v3680_v16 = vpop.eup %3679  ;;  %v745_v56 = vadd.f32 %v5387_v36, %v744_v35 }
 0x446   : > { %v727_v41 = vmul.f32 %v3680_v16, %v5389_v25  ;;  %v5431_v46 = vpop.xlane.xlu1 %1338  ;;  %v5438_v11 = vpop.eup %3681  ;;  %vm732_vm15 = vweird.f32 %v3680_v16  ;;  %v1592_v23 = vpack.c.bf16 %v1497_v22, %v1482_v8  ;;  %v6752_v8 = vld [vmem:[#allocation12_spill] sm:$0xff] }
 0x447   : > { %3685 = vrcp.f32 %v5431_v46  ;;  %v5451_v0 = vpop.eup %3683  ;;  %v749_v1 = vsel %vm5455_vm13, %v5387_v36, %v745_v56  ;;  %v1499_v59 = vmul.f32 %v5438_v11, %v5393_v18  ;;  %vm733_vm6 = vmor %vm731_vm4, %vm732_vm15  ;;  %vm1504_vm9 = vweird.f32 %v5438_v11 }
 0x448   : > { %v728_v19 = vsub.f32 1.0, %v727_v41  ;;  %v754_v40 = vsel %vm751_vm3, %v753_v44, %v749_v1  ;;  %vm1518_vm10 = vweird.f32 %v5431_v46  ;;  %v1522_v17 = vand.u32 2147483647, %v5431_v46  ;;  %vm1505_vm13 = vmor %vm1503_vm12, %vm1504_vm9 }
 0x449   : > { %v1500_v25 = vsub.f32 1.0, %v1499_v59  ;;  %v755_v3 = vmul.f32 %v4902_v6, %v754_v40  ;;  %v1524_v6 = vand.u32 2147483648, %v5431_v46  ;;  %v1510_v1 = vor.u32 1.1754944e-38, %v1509_v32  ;;  %v6747_v40 = vld [vmem:[#allocation32_spill] sm:$0xff] }
 0x44a   : > { %v729_v60 = vmul.f32 %v3680_v16, %v728_v19  ;;  %1346 = vadd.xlane.f32.xlu1 %v5451_v0  ;;  %3467 = vmatmul.msk.f32.vlgmr.msrb.gmra.mxu2 %vm394_vm1, %v6741_v49  ;;  %v2333_v19 = vpop.permute.xlu2 %2332  ;;  %vm1523_vm14 = vcmp.eq.f32.partialorder %v1522_v17, 8.507059e+37  ;;  %vm1508_vm15 = vcmp.eq.f32.partialorder %v1507_v50, 8.507059e+37  ;;  %v2306_v18 = vpack.c.bf16 %v6742_v61, %v6741_v49  ;;  %v6748_v49 = vld [vmem:[#allocation38_spill] sm:$0xff] }
 0x44b   : > { %v1501_v29 = vmul.f32 %v5438_v11, %v1500_v25  ;;  %v1525_v10 = vor.u32 1.1754944e-38, %v1524_v6 }
 0x44c   : > { %2668 = vmax.xlane.f32.xlu0 %v5420_v24  ;;  %v730_v15 = vadd.f32 %v3680_v16, %v729_v60 }
 0x44d   : > { %v3686_v36 = vpop.eup %3685 }
 0x44e   : > { %v1514_v35 = vmul.f32 %v3686_v36, %v5431_v46  ;;  %v2335_v54 = vpop.permute.xlu0 %2334  ;;  %2664 = vmax.xlane.f32.xlu2 %v5412_v26  ;;  %v734_v2 = vsel %vm733_vm6, %v3680_v16, %v730_v15  ;;  %v5498_v16 = vadd.f32 %v5495_v9, %v2629_v39  ;;  %vm1519_vm8 = vweird.f32 %v3686_v36 }
 0x44f   : > { %2347 = vmatpush.bf16.msra.mxu1 %v2335_v54  ;;  %v739_v56 = vsel %vm736_vm7, %v738_v14, %v734_v2  ;;  %vm1520_vm11 = vmor %vm1518_vm10, %vm1519_vm8  ;;  %v6746_v14 = vld [vmem:[#allocation35_spill] sm:$0xff]  ;;  %v6749_v54 = vld [vmem:[#allocation34_spill] sm:$0xff] }
 0x450   : > { %v1515_v41 = vsub.f32 1.0, %v1514_v35  ;;  %v740_v52 = vmul.f32 %v4910_v51, %v739_v56  ;;  %v1502_v51 = vadd.f32 %v5438_v11, %v1501_v29  ;;  %v3021_v35 = vpack.c.bf16 %v6747_v40, %v6746_v14  ;;  %v6751_v2 = vld [vmem:[#allocation37_spill] sm:$0xff]  ;;  %v6753_v56 = vld [vmem:[#allocation16_spill] sm:$0xff] }
 0x451   : > { %v3022_v34 = vpack.c.bf16 %v6749_v54, %v6748_v49 }
 0x452   : > { %v879_v57 = vpack.c.bf16 %v755_v3, %v740_v52  ;;  %v1516_v53 = vmul.f32 %v3686_v36, %v1515_v41  ;;  %3468 = vmatmul.msk.f32.gmra.mxu2 %vm394_vm1, %v6742_v61  ;;  %1664 = vmatmul.bf16.gmra.mxu0 %v1592_v23  ;;  %v1506_v13 = vsel %vm1505_vm13, %v5438_v11, %v1502_v51  ;;  %v6745_v11 = vld [vmem:[#allocation29_spill] sm:$0xff] }
 0x453   : > { %2348 = vmatpush.bf16.msra.mxu1 %v2333_v19  ;;  %v1511_v46 = vsel %vm1508_vm15, %v1510_v1, %v1506_v13  ;;  %v3018_v41 = vpack.c.bf16 %v6753_v56, %v6752_v8  ;;  %v6755_v23 = vld [vmem:[#allocation9_spill] sm:$0xff] }
 0x454   : > { %947 = vmatmul.bf16.vlgmr.msrb.gmra.mxu1 %v879_v57  ;;  %2670 = vmax.xlane.f32.xlu0 %v5498_v16  ;;  %v1517_v21 = vadd.f32 %v3686_v36, %v1516_v53  ;;  %v1512_v20 = vmul.f32 %v6743_v47, %v1511_v46  ;;  %v6754_v57 = vld [vmem:[#allocation13_spill] sm:$0xff]  ;;  %v2688_v61 = vsub.f32 %v6755_v23, %v5320_v28 }
 0x455   : > { %v2689_v53 = vsub.f32 %v6754_v57, %v5344_v30 }
 0x456   : > { %v1521_v60 = vsel %vm1520_vm11, %v3686_v36, %v1517_v21  ;;  %v2704_v32 = vmul.f32 1.442695, %v2688_v61 }
 0x457   : > { %v1526_v44 = vsel %vm1523_vm14, %v1525_v10, %v1521_v60 }
 0x458   : > { %v1527_v59 = vmul.f32 %v4915_v31, %v1526_v44  ;;  %v5527_v31 = vpop.xlane.xlu1 %2662 }
 0x45a   : > { %3469 = vmatmul.msk.f32.gmra.mxu2 %vm394_vm1, %v6723_v42  ;;  %v1593_v15 = vpack.c.bf16 %v1527_v59, %v1512_v20  ;;  %v6744_v42 = vld [vmem:[#allocation31_spill] sm:$0xff] }
 0x45b   : > { %v3023_v36 = vpack.c.bf16 %v6745_v11, %v6744_v42 }
 0x462   : > { %3470 = vmatmul.msk.f32.gmra.mxu2 %vm394_vm1, %v6724_v12  ;;  %1669 = vmatmul.bf16.gmra.mxu0 %v1593_v15  ;;  %v6750_v12 = vld [vmem:[#allocation39_spill] sm:$0xff] }
 0x463   : > { %2322 = vrot.lane.b32.xlu1 %v2306_v18, %s3883_s8  ;;  %v3020_v39 = vpack.c.bf16 %v6751_v2, %v6750_v12  ;;  %v6758_v2 = vld [vmem:[#allocation26_spill] sm:$0xff] }
 0x466   : > { %3046 = vrot.lane.b32.xlu2 %v3023_v36, %s3883_s8 }
 0x468   : > { %3042 = vrot.lane.b32.xlu0 %v3021_v35, %s3883_s8  ;;  %v2632_v35 = vpop.f32.mrf.mxu3 }
 0x46a   : > { %3471 = vmatmul.msk.f32.gmra.mxu2 %vm394_vm1, %v6725_v48  ;;  %v1341_v25 = vpop.xlane.xlu1 %1340 }
 0x46b   : > { %3044 = vrot.lane.b32.xlu1 %v3022_v34, %s3883_s8  ;;  %3687 = vrcp.f32 %v1341_v25  ;;  %v1539_v17 = vand.u32 2147483648, %v1341_v25  ;;  %vm1533_vm3 = vweird.f32 %v1341_v25  ;;  %v1537_v30 = vand.u32 2147483647, %v1341_v25  ;;  %v6757_v34 = vld [vmem:[#allocation25_spill] sm:$0xff] }
 0x46d   : > { %v1540_v1 = vor.u32 1.1754944e-38, %v1539_v17  ;;  %vm1538_vm7 = vcmp.eq.f32.partialorder %v1537_v30, 8.507059e+37 }
 0x46e   : > { %3040 = vrot.lane.b32.xlu2 %v3020_v39, %s3883_s8  ;;  %v6759_v39 = vld [vmem:[#allocation41_spill] sm:$0xff] }
 0x471   : > { %v3688_v52 = vpop.eup %3687 }
 0x472   : > { %3472 = vmatmul.msk.f32.gmra.mxu2 %vm394_vm1, %v6726_v33  ;;  %v1529_v48 = vmul.f32 %v3688_v52, %v1341_v25  ;;  %vm1534_vm2 = vweird.f32 %v3688_v52  ;;  %v6760_v25 = vld [vmem:[#allocation40_spill] sm:$0xff] }
 0x473   : > { %vm1535_vm4 = vmor %vm1533_vm3, %vm1534_vm2  ;;  %v3019_v8 = vpack.c.bf16 %v6760_v25, %v6759_v39  ;;  %v3861_v25 = vld [vmem:[%s6546_s3 + $0x8] sm:$0xff] }
 0x474   : > { %v1530_v3 = vsub.f32 1.0, %v1529_v48 }
 0x476   : > { %3036 = vrot.lane.b32.xlu2 %v3018_v41, %s3883_s8  ;;  %v1531_v33 = vmul.f32 %v3688_v52, %v1530_v3 }
 0x478   : > { %v1532_v51 = vadd.f32 %v3688_v52, %v1531_v33 }
 0x479   : > { %v5549_v29 = vpop.xlane.xlu0 %2660 }
 0x47a   : > { %3473 = vmatmul.msk.f32.gmra.mxu2 %vm394_vm1, %v6715_v45  ;;  %v2706_v45 = vmul.f32 1.442695, %v2689_v53  ;;  %v1536_v13 = vsel %vm1535_vm4, %v3688_v52, %v1532_v51  ;;  %v6761_v52 = vld [vmem:[#allocation22_spill] sm:$0xff] }
 0x47b   : > { %v1541_v59 = vsel %vm1538_vm7, %v1540_v1, %v1536_v13 }
 0x47c   : > { %v1542_v42 = vmul.f32 %v5013_v27, %v1541_v59  ;;  %v5572_v27 = vld [vmem:[%s6546_s3 + $0x40] sm:$0xff] }
 0x480   : > { %v1343_v22 = vpop.xlane.xlu2 %1342 }
 0x481   : > { %3689 = vrcp.f32 %v1343_v22  ;;  %v1554_v60 = vand.u32 2147483648, %v1343_v22  ;;  %v1552_v28 = vand.u32 2147483647, %v1343_v22  ;;  %vm1548_vm6 = vweird.f32 %v1343_v22 }
 0x482   : > { %v2331_v19 = vpop.permute.xlu1 %2330  ;;  %3474 = vmatmul.msk.f32.gmra.mxu2 %vm394_vm1, %v6716_v4  ;;  %3691 = vpow2.f32 %v2706_v45  ;;  %v6763_v45 = vld [vmem:[#allocation18_spill] sm:$0xff] }
 0x483   : > { %2349 = vmatpush.bf16.msra.mxu1 %v2331_v19  ;;  %3693 = vpow2.f32 %v2704_v32  ;;  %v1555_v47 = vor.u32 1.1754944e-38, %v1554_v60  ;;  %vm1553_vm9 = vcmp.eq.f32.partialorder %v1552_v28, 8.507059e+37 }
 0x487   : > { %v3690_v21 = vpop.eup %3689 }
 0x488   : > { %v1544_v6 = vmul.f32 %v3690_v21, %v1343_v22  ;;  %vm1549_vm5 = vweird.f32 %v3690_v21  ;;  %v2327_v20 = vpop.permute.xlu2 %2326  ;;  %v6762_v22 = vld [vmem:[#allocation20_spill] sm:$0xff] }
 0x489   : > { %vm1550_vm8 = vmor %vm1548_vm6, %vm1549_vm5 }
 0x48a   : > { %v1545_v50 = vsub.f32 1.0, %v1544_v6  ;;  %3475 = vmatmul.msk.f32.gmra.mxu2 %vm394_vm1, %v6711_v63  ;;  %v5557_v63 = vpop.eup %3691 }
 0x48b   : > { %v5564_v36 = vpop.eup %3693 }
 0x48c   : > { %v1546_v4 = vmul.f32 %v3690_v21, %v1545_v50  ;;  %v2329_v10 = vpop.permute.xlu0 %2328 }
 0x48d   : > { %2350 = vmatpush.bf16.msra.mxu1 %v2329_v10  ;;  %v5555_v44 = vpop.f32.mrf.mxu2 }
 0x48e   : > { %v1547_v46 = vadd.f32 %v3690_v21, %v1546_v4 }
 0x490   : > { %v1551_v18 = vsel %vm1550_vm8, %v3690_v21, %v1547_v46 }
 0x491   : > { %2351 = vmatpush.bf16.msra.mxu1 %v2327_v20  ;;  %v1556_v15 = vsel %vm1553_vm9, %v1555_v47, %v1551_v18 }
 0x492   : > { %2738 = vadd.xlane.f32.xlu0 %v5557_v63  ;;  %v1557_v11 = vmul.f32 %v5139_v58, %v1556_v15  ;;  %3476 = vmatmul.msk.f32.gmra.mxu2 %vm394_vm1, %v6712_v38  ;;  %v5575_v58 = vadd.f32 %v5572_v27, %v2632_v35  ;;  %v6756_v38 = vld [vmem:[#allocation23_spill] sm:$0xff] }
 0x494   : > { %v2325_v14 = vpop.permute.xlu0 %2324  ;;  %v1594_v40 = vpack.c.bf16 %v1557_v11, %v1542_v42 }
 0x495   : > { %2736 = vadd.xlane.f32.xlu1 %v5564_v36  ;;  %2352 = vmatpush.bf16.msra.mxu1 %v2325_v14  ;;  %v5567_v49 = vpop.f32.mrf.mxu2 }
 0x496   : > { %1674 = vmatmul.bf16.gmra.mxu0 %v1594_v40 }
 0x49a   : > { %2672 = vmax.xlane.f32.xlu0 %v5575_v58  ;;  %3477 = vmatmul.msk.f32.gmra.mxu2 %vm394_vm1, %v6756_v38 }
 0x49d   : > { %v5580_v54 = vpop.f32.mrf.mxu2 }
 0x4a2   : > { %3478 = vmatmul.msk.f32.gmra.mxu2 %vm394_vm1, %v6757_v34  ;;  %v3860_v34 = vld [vmem:[%s6546_s3] sm:$0xff] }
 0x4a5   : > { %v5584_v12 = vpop.f32.mrf.mxu2 }
 0x4aa   : > { %3479 = vmatmul.msk.f32.gmra.mxu2 %vm394_vm1, %v6758_v2 }
 0x4ad   : > { %v5590_v56 = vpop.xlane.xlu1 %2666  ;;  %v5592_v41 = vpop.f32.mrf.mxu2 }
 0x4ae   : > { %3038 = vrot.lane.b32.xlu1 %v3019_v8, %s3883_s8 }
 0x4b2   : > { %3480 = vmatmul.msk.f32.gmra.mxu2 %vm394_vm1, %v6761_v52 }
 0x4b5   : > { %v1345_v48 = vpop.xlane.xlu1 %1344  ;;  %v5597_v3 = vpop.f32.mrf.mxu2 }
 0x4b6   : > { %3695 = vrcp.f32 %v1345_v48  ;;  %v1569_v32 = vand.u32 2147483648, %v1345_v48  ;;  %vm1563_vm11 = vweird.f32 %v1345_v48  ;;  %v1567_v30 = vand.u32 2147483647, %v1345_v48 }
 0x4b8   : > { %v1570_v46 = vor.u32 1.1754944e-38, %v1569_v32  ;;  %vm1568_vm14 = vcmp.eq.f32.partialorder %v1567_v30, 8.507059e+37 }
 0x4ba   : > { %3481 = vmatmul.msk.f32.gmra.mxu2 %vm394_vm1, %v6762_v22  ;;  %v3862_v22 = vld [vmem:[%s6546_s3 + $0x48] sm:$0xff] }
 0x4bc   : > { %v3696_v19 = vpop.eup %3695 }
 0x4bd   : > { %v1559_v57 = vmul.f32 %v3696_v19, %v1345_v48  ;;  %v1347_v53 = vpop.xlane.xlu1 %1346  ;;  %v5601_v33 = vpop.f32.mrf.mxu2  ;;  %vm1564_vm10 = vweird.f32 %v3696_v19 }
 0x4be   : > { %3697 = vrcp.f32 %v1347_v53  ;;  %vm1565_vm12 = vmor %vm1563_vm11, %vm1564_vm10  ;;  %v1584_v4 = vand.u32 2147483648, %v1347_v53  ;;  %v1582_v13 = vand.u32 2147483647, %v1347_v53  ;;  %vm1578_vm15 = vweird.f32 %v1347_v53 }
 0x4bf   : > { %v1560_v23 = vsub.f32 1.0, %v1559_v57  ;;  %v5609_v11 = vpop.xlane.xlu0 %2668  ;;  %v3863_v57 = vld [vmem:[%s6546_s3 + $0x10] sm:$0xff] }
 0x4c0   : > { %v1585_v47 = vor.u32 1.1754944e-38, %v1584_v4  ;;  %vm1583_vm3 = vcmp.eq.f32.partialorder %v1582_v13, 8.507059e+37 }
 0x4c1   : > { %v1561_v61 = vmul.f32 %v3696_v19, %v1560_v23  ;;  %v5603_v21 = vpop.xlane.xlu2 %2664 }
 0x4c2   : > { %3482 = vmatmul.msk.f32.gmra.mxu2 %vm394_vm1, %v6763_v45 }
 0x4c3   : > { %v1562_v51 = vadd.f32 %v3696_v19, %v1561_v61 }
 0x4c4   : > { %v3698_v6 = vpop.eup %3697 }
 0x4c5   : > { %v1574_v17 = vmul.f32 %v3698_v6, %v1347_v53  ;;  %v5607_v50 = vpop.f32.mrf.mxu2  ;;  %vm1579_vm13 = vweird.f32 %v3698_v6  ;;  %v1566_v1 = vsel %vm1565_vm12, %v3696_v19, %v1562_v51 }
 0x4c6   : > { %vm1580_vm2 = vmor %vm1578_vm15, %vm1579_vm13  ;;  %v1571_v20 = vsel %vm1568_vm14, %v1570_v46, %v1566_v1 }
 0x4c7   : > { %v1575_v60 = vsub.f32 1.0, %v1574_v17  ;;  %v1572_v14 = vmul.f32 %v5397_v62, %v1571_v20  ;;  %v5624_v62 = vpop.xlane.xlu0 %2670 }
 0x4c9   : > { %v1576_v10 = vmul.f32 %v3698_v6, %v1575_v60  ;;  %v3047_v28 = vpop.permute.xlu2 %3046 }
 0x4ca   : > { %3056 = vmatpush.bf16.msrb.mxu0 %v3047_v28 }
 0x4cb   : > { %v1577_v59 = vadd.f32 %v3698_v6, %v1576_v10 }
 0x4cd   : > { %v1581_v18 = vsel %vm1580_vm2, %v3698_v6, %v1577_v59  ;;  %v1898_v15 = vpop.f32.mrf.mxu2  ;;  %v3864_v6 = vld [vmem:[%s6546_s3 + $0x18] sm:$0xff] }
 0x4ce   : > { %v1586_v42 = vsel %vm1583_vm3, %v1585_v47, %v1581_v18  ;;  %v5616_v2 = vadd.f32 %v3860_v34, %v1898_v15 }
 0x4cf   : > { %v1587_v40 = vmul.f32 %v5451_v0, %v1586_v42  ;;  %v2635_v0 = vpop.f32.mrf.mxu3 }
 0x4d0   : > { %v5630_v19 = vadd.f32 %v3862_v22, %v2635_v0 }
 0x4d1   : > { %v1595_v35 = vpack.c.bf16 %v1587_v40, %v1572_v14  ;;  %v3041_v61 = vpop.permute.xlu2 %3040 }
 0x4d3   : > { %1679 = vmatmul.bf16.gmra.mxu0 %v1595_v35 }
 0x4d5   : > { %v2323_v38 = vpop.permute.xlu1 %2322  ;;  %v1901_v39 = vpop.f32.mrf.mxu2 }
 0x4d6   : > { %2353 = vmatpush.bf16.msra.mxu1 %v2323_v38  ;;  %v5621_v8 = vadd.f32 %v3861_v25, %v1901_v39 }
 0x4d8   : > { %1946 = vmax.xlane.f32.xlu1 %v5616_v2  ;;  %1948 = vmax.xlane.f32.xlu0 %v5621_v8 }
 0x4d9   : > { %v3037_v39 = vpop.permute.xlu2 %3036 }
 0x4da   : > { %v3043_v23 = vpop.permute.xlu0 %3042 }
 0x4dd   : > { %v3045_v52 = vpop.permute.xlu1 %3044  ;;  %v1904_v48 = vpop.f32.mrf.mxu2 }
 0x4de   : > { %3057 = vmatpush.bf16.msrb.mxu0 %v3045_v52  ;;  %v5635_v53 = vadd.f32 %v3863_v57, %v1904_v48  ;;  %v5680_v57 = vld [vmem:[%s6546_s3 + $0x58] sm:$0xff] }
 0x4e0   : > { %1950 = vmax.xlane.f32.xlu2 %v5635_v53  ;;  %2674 = vmax.xlane.f32.xlu0 %v5630_v19 }
 0x4e2   : > { %3058 = vmatpush.bf16.msrb.mxu0 %v3043_v23 }
 0x4e5   : > { %v1907_v45 = vpop.f32.mrf.mxu2 }
 0x4e6   : > { %3059 = vmatpush.bf16.msrb.mxu0 %v3041_v61  ;;  %v5642_v51 = vadd.f32 %v3864_v6, %v1907_v45 }
 0x4e8   : > { %1952 = vmax.xlane.f32.xlu0 %v5642_v51 }
 0x4ed   : > { %v1910_v17 = vpop.f32.mrf.mxu2 }
 0x4ee   : > { %v5646_v32 = vadd.f32 %v5408_v5, %v1910_v17 }
 0x4f0   : > { %1954 = vmax.xlane.f32.xlu0 %v5646_v32 }
 0x4f5   : > { %v1913_v30 = vpop.f32.mrf.mxu2 }
 0x4f6   : > { %v5650_v60 = vadd.f32 %v5357_v37, %v1913_v30 }
 0x4f8   : > { %1956 = vmax.xlane.f32.xlu1 %v5650_v60 }
 0x4fd   : > { %v1916_v4 = vpop.f32.mrf.mxu2 }
 0x4fe   : > { %v5654_v10 = vadd.f32 %v5417_v55, %v1916_v4 }
 0x500   : > { %1958 = vmax.xlane.f32.xlu1 %v5654_v10 }
 0x505   : > { %v1919_v13 = vpop.f32.mrf.mxu2  ;;  %v2739_v46 = vpop.xlane.xlu0 %2738 }
 0x506   : > { %v5658_v28 = vadd.f32 %v5495_v9, %v1919_v13  ;;  %v2794_v61 = vand.u32 2147483648, %v2739_v46  ;;  %vm2788_vm8 = vweird.f32 %v2739_v46  ;;  %v2792_v45 = vand.u32 2147483647, %v2739_v46 }
 0x508   : > { %1960 = vmax.xlane.f32.xlu1 %v5658_v28  ;;  %v2737_v5 = vpop.xlane.xlu1 %2736  ;;  %v2795_v4 = vor.u32 1.1754944e-38, %v2794_v61  ;;  %vm2793_vm11 = vcmp.eq.f32.partialorder %v2792_v45, 8.507059e+37  ;;  %v6764_v61 = vld [vmem:[#allocation8_spill] sm:$0xff] }
 0x509   : > { %3699 = vrcp.f32 %v2737_v5  ;;  %vm2773_vm5 = vweird.f32 %v2737_v5  ;;  %v2779_v0 = vand.u32 2147483648, %v2737_v5  ;;  %v2691_v45 = vsub.f32 %v6764_v61, %v5527_v31 }
 0x50a   : > { %3701 = vrcp.f32 %v2739_v46 }
 0x50b   : > { %v2780_v17 = vor.u32 1.1754944e-38, %v2779_v0 }
 0x50d   : > { %v1922_v1 = vpop.f32.mrf.mxu2 }
 0x50e   : > { %v5662_v37 = vadd.f32 %v5572_v27, %v1922_v1  ;;  %v5671_v27 = vld [vmem:[%s6546_s3 + $0x50] sm:$0xff] }
 0x50f   : > { %v3700_v55 = vpop.eup %3699 }
 0x510   : > { %1962 = vmax.xlane.f32.xlu1 %v5662_v37  ;;  %v3702_v20 = vpop.eup %3701  ;;  %v2769_v18 = vmul.f32 %v3700_v55, %v2737_v5  ;;  %vm2774_vm4 = vweird.f32 %v3700_v55 }
 0x511   : > { %v2784_v9 = vmul.f32 %v3702_v20, %v2739_v46  ;;  %vm2789_vm6 = vweird.f32 %v3702_v20  ;;  %vm2775_vm7 = vmor %vm2773_vm5, %vm2774_vm4 }
 0x512   : > { %v2770_v15 = vsub.f32 1.0, %v2769_v18  ;;  %vm2790_vm9 = vmor %vm2788_vm8, %vm2789_vm6  ;;  %v5692_v18 = vld [vmem:[%s6546_s3 + $0x60] sm:$0xff] }
 0x513   : > { %v2785_v14 = vsub.f32 1.0, %v2784_v9 }
 0x514   : > { %v2771_v38 = vmul.f32 %v3700_v55, %v2770_v15 }
 0x515   : > { %v1925_v59 = vpop.f32.mrf.mxu2  ;;  %v2786_v34 = vmul.f32 %v3702_v20, %v2785_v14 }
 0x516   : > { %v5665_v47 = vadd.f32 %v3862_v22, %v1925_v59  ;;  %v2772_v25 = vadd.f32 %v3700_v55, %v2771_v38  ;;  %v2777_v22 = vand.u32 2147483647, %v2737_v5 }
 0x517   : > { %v2787_v48 = vadd.f32 %v3702_v20, %v2786_v34 }
 0x518   : > { %1964 = vmax.xlane.f32.xlu0 %v5665_v47  ;;  %v2776_v6 = vsel %vm2775_vm7, %v3700_v55, %v2772_v25  ;;  %vm2778_vm10 = vcmp.eq.f32.partialorder %v2777_v22, 8.507059e+37 }
 0x519   : > { %v2791_v30 = vsel %vm2790_vm9, %v3702_v20, %v2787_v48  ;;  %v2781_v13 = vsel %vm2778_vm10, %v2780_v17, %v2776_v6 }
 0x51a   : > { %v2796_v5 = vsel %vm2793_vm11, %v2795_v4, %v2791_v30  ;;  %v5687_v59 = vmul.f32 %v5564_v36, %v2781_v13  ;;  %v5706_v36 = vld [vmem:[%s6546_s3 + $0x68] sm:$0xff] }
 0x51b   : > { %v5698_v55 = vmul.f32 %v5557_v63, %v2796_v5 }
 0x51d   : > { %v1928_v42 = vpop.f32.mrf.mxu2 }
 0x51e   : > { %v5674_v40 = vadd.f32 %v5671_v27, %v1928_v42  ;;  %v5712_v42 = vpop.xlane.xlu0 %2672 }
 0x520   : > { %v3039_v35 = vpop.permute.xlu1 %3038  ;;  %1966 = vmax.xlane.f32.xlu2 %v5674_v40 }
 0x521   : > { %3060 = vmatpush.bf16.msrb.mxu0 %v3039_v35 }
 0x525   : > { %3061 = vmatpush.bf16.msrb.mxu0 %v3037_v39  ;;  %v1931_v52 = vpop.f32.mrf.mxu2 }
 0x526   : > { %v5683_v23 = vadd.f32 %v5680_v57, %v1931_v52 }
 0x528   : > { %1968 = vmax.xlane.f32.xlu1 %v5683_v23 }
 0x52d   : > { %v1934_v1 = vpop.f32.mrf.mxu2 }
 0x52e   : > { %v5695_v46 = vadd.f32 %v5692_v18, %v1934_v1 }
 0x530   : > { %1970 = vmax.xlane.f32.xlu1 %v5695_v46 }
 0x535   : > { %v1937_v9 = vpop.f32.mrf.mxu2 }
 0x536   : > { %v5709_v15 = vadd.f32 %v5706_v36, %v1937_v9 }
 0x538   : > { %1972 = vmax.xlane.f32.xlu2 %v5709_v15 }
 0x54b   : > { %v1947_v63 = vpop.xlane.xlu1 %1946  ;;  %v1949_v14 = vpop.xlane.xlu0 %1948 }
 0x54c   : > { %v1978_v35 = vsub.f32 %v5616_v2, %v1947_v63  ;;  %v1979_v34 = vsub.f32 %v5621_v8, %v1949_v14  ;;  %v2710_v2 = vmul.f32 1.442695, %v2691_v45 }
 0x54e   : > { %v1994_v38 = vmul.f32 1.442695, %v1978_v35  ;;  %v1996_v39 = vmul.f32 1.442695, %v1979_v34 }
 0x550   : > { %3703 = vpow2.f32 %v1994_v38 }
 0x551   : > { %3705 = vpow2.f32 %v1996_v39  ;;  %v6765_v39 = vld [vmem:[#allocation19_spill] sm:$0xff] }
 0x553   : > { %v1951_v25 = vpop.xlane.xlu2 %1950  ;;  %v5716_v0 = vpop.xlane.xlu0 %2674 }
 0x554   : > { %v1980_v52 = vsub.f32 %v5635_v53, %v1951_v25  ;;  %v6766_v25 = vld [vmem:[#allocation21_spill] sm:$0xff] }
 0x556   : > { %v5719_v48 = vpop.eup %3703  ;;  %v1998_v22 = vmul.f32 1.442695, %v1980_v52  ;;  %v3017_v52 = vpack.c.bf16 %v6766_v25, %v6765_v39  ;;  %v6767_v39 = vld [vmem:[#allocation14_spill] sm:$0xff]  ;;  %v6768_v25 = vld [vmem:[#allocation17_spill] sm:$0xff] }
 0x557   : > { %2026 = vadd.xlane.f32.xlu1 %v5719_v48  ;;  %v5725_v17 = vpop.eup %3705 }
 0x558   : > { %3707 = vpow2.f32 %v1998_v22 }
 0x559   : > { %3709 = vpow2.f32 %v2710_v2  ;;  %v5756_v2 = vld [vmem:[%s6546_s3 + $0x70] sm:$0xff] }
 0x55b   : > { %v1953_v6 = vpop.xlane.xlu0 %1952 }
 0x55c   : > { %v1981_v8 = vsub.f32 %v5642_v51, %v1953_v6 }
 0x55e   : > { %v5727_v30 = vpop.eup %3707  ;;  %v2000_v4 = vmul.f32 1.442695, %v1981_v8 }
 0x55f   : > { %2028 = vadd.xlane.f32.xlu1 %v5725_v17  ;;  %2030 = vadd.xlane.f32.xlu2 %v5727_v30  ;;  %v5732_v13 = vpop.eup %3709 }
 0x560   : > { %3711 = vpow2.f32 %v2000_v4  ;;  %v5768_v4 = vld [vmem:[%s6546_s3 + $0x78] sm:$0xff] }
 0x563   : > { %v1955_v53 = vpop.xlane.xlu0 %1954 }
 0x564   : > { %v1982_v31 = vsub.f32 %v5646_v32, %v1955_v53 }
 0x566   : > { %v5734_v5 = vpop.eup %3711  ;;  %v2002_v1 = vmul.f32 1.442695, %v1982_v31  ;;  %v2638_v31 = vpop.f32.mrf.mxu3 }
 0x567   : > { %2742 = vadd.xlane.f32.xlu1 %v5732_v13  ;;  %2032 = vadd.xlane.f32.xlu0 %v5734_v5 }
 0x568   : > { %3713 = vpow2.f32 %v2002_v1  ;;  %v2692_v1 = vsub.f32 %v5412_v26, %v5603_v21  ;;  %v2693_v26 = vsub.f32 %v5360_v43, %v5590_v56  ;;  %v2694_v56 = vsub.f32 %v5420_v24, %v5609_v11 }
 0x56a   : > { %v2714_v21 = vmul.f32 1.442695, %v2693_v26  ;;  %v2696_v26 = vsub.f32 %v5575_v58, %v5712_v42 }
 0x56b   : > { %v1957_v51 = vpop.xlane.xlu1 %1956 }
 0x56c   : > { %v1983_v9 = vsub.f32 %v5650_v60, %v1957_v51  ;;  %v2712_v51 = vmul.f32 1.442695, %v2692_v1 }
 0x56e   : > { %v5739_v63 = vpop.eup %3713  ;;  %v2004_v14 = vmul.f32 1.442695, %v1983_v9  ;;  %v5777_v9 = vadd.f32 %v5671_v27, %v2638_v31  ;;  %v2716_v31 = vmul.f32 1.442695, %v2694_v56 }
 0x56f   : > { %2034 = vadd.xlane.f32.xlu2 %v5739_v63 }
 0x570   : > { %3715 = vpow2.f32 %v2004_v14  ;;  %v2690_v14 = vsub.f32 %v5041_v7, %v5549_v29 }
 0x573   : > { %v1959_v32 = vpop.xlane.xlu1 %1958 }
 0x574   : > { %v1984_v35 = vsub.f32 %v5654_v10, %v1959_v32  ;;  %v1940_v10 = vpop.f32.mrf.mxu2  ;;  %v2641_v32 = vpop.f32.mrf.mxu3 }
 0x575   : > { %v5759_v6 = vadd.f32 %v5756_v2, %v1940_v10 }
 0x576   : > { %v5743_v38 = vpop.eup %3715  ;;  %v2006_v34 = vmul.f32 1.442695, %v1984_v35  ;;  %v2708_v35 = vmul.f32 1.442695, %v2690_v14 }
 0x577   : > { %2036 = vadd.xlane.f32.xlu2 %v5743_v38 }
 0x578   : > { %3717 = vpow2.f32 %v2006_v34 }
 0x57b   : > { %v1961_v22 = vpop.xlane.xlu1 %1960  ;;  %3034 = vrot.lane.b32.xlu0 %v3017_v52, %s3883_s8  ;;  %v3016_v52 = vpack.c.bf16 %v6768_v25, %v6767_v39 }
 0x57c   : > { %v1985_v60 = vsub.f32 %v5658_v28, %v1961_v22  ;;  %v1943_v28 = vpop.f32.mrf.mxu2  ;;  %v2644_v29 = vpop.f32.mrf.mxu3 }
 0x57d   : > { %v5771_v53 = vadd.f32 %v5768_v4, %v1943_v28  ;;  %v5794_v10 = vadd.f32 %v5692_v18, %v2644_v29 }
 0x57e   : > { %v5750_v61 = vpop.eup %3717  ;;  %v2008_v45 = vmul.f32 1.442695, %v1985_v60 }
 0x57f   : > { %2038 = vadd.xlane.f32.xlu1 %v5750_v61 }
 0x580   : > { %3719 = vpow2.f32 %v2008_v45 }
 0x581   : > { %3721 = vpow2.f32 %v2712_v51 }
 0x582   : > { %3723 = vpow2.f32 %v2708_v35 }
 0x583   : > { %v1963_v34 = vpop.xlane.xlu1 %1962  ;;  %3725 = vpow2.f32 %v2714_v21 }
 0x584   : > { %v1986_v7 = vsub.f32 %v5662_v37, %v1963_v34  ;;  %v2647_v51 = vpop.f32.mrf.mxu3 }
 0x586   : > { %v5761_v8 = vpop.eup %3719  ;;  %v2010_v45 = vmul.f32 1.442695, %v1986_v7 }
 0x587   : > { %1974 = vmax.xlane.f32.xlu1 %v5759_v6  ;;  %2040 = vadd.xlane.f32.xlu2 %v5761_v8  ;;  %v5784_v22 = vpop.eup %3721 }
 0x588   : > { %v5791_v60 = vpop.eup %3723  ;;  %3727 = vpow2.f32 %v2010_v45 }
 0x589   : > { %v5801_v28 = vpop.eup %3725 }
 0x58b   : > { %v1965_v27 = vpop.xlane.xlu0 %1964 }
 0x58c   : > { %v1987_v43 = vsub.f32 %v5665_v47, %v1965_v27  ;;  %v2650_v39 = vpop.f32.mrf.mxu3 }
 0x58e   : > { %v2012_v37 = vmul.f32 1.442695, %v1987_v43  ;;  %v5804_v18 = vpop.eup %3727  ;;  %v5831_v43 = vpop.f32.mrf.mxu0 }
 0x58f   : > { %1976 = vmax.xlane.f32.xlu1 %v5771_v53 }
 0x590   : > { %3729 = vpow2.f32 %v2012_v37  ;;  %v5835_v37 = vadd.f32 %v5680_v57, %v2641_v32 }
 0x591   : > { %3731 = vpow2.f32 %v2716_v31 }
 0x593   : > { %v1967_v1 = vpop.xlane.xlu2 %1966 }
 0x594   : > { %v1988_v47 = vsub.f32 %v5674_v40, %v1967_v1  ;;  %v2653_v29 = vpop.f32.mrf.mxu3 }
 0x595   : > { %v5829_v45 = vadd.f32 %v5768_v4, %v2653_v29  ;;  %v5842_v4 = vadd.f32 %v5756_v2, %v2650_v39 }
 0x596   : > { %v5808_v35 = vpop.eup %3729  ;;  %v2014_v24 = vmul.f32 1.442695, %v1988_v47  ;;  %v5849_v32 = vpop.f32.mrf.mxu0 }
 0x597   : > { %2676 = vmax.xlane.f32.xlu1 %v5777_v9  ;;  %v5811_v11 = vpop.eup %3731  ;;  %6769 = vst [vmem:[#allocation6_spill] sm:$0xff] %v5849_v32 }
 0x598   : > { %3733 = vpow2.f32 %v2014_v24 }
 0x59b   : > { %v1969_v14 = vpop.xlane.xlu1 %1968 }
 0x59c   : > { %v1989_v34 = vsub.f32 %v5683_v23, %v1969_v14  ;;  %v2695_v23 = vsub.f32 %v5498_v16, %v5624_v62 }
 0x59e   : > { %v2016_v25 = vmul.f32 1.442695, %v1989_v34  ;;  %v5819_v40 = vpop.eup %3733  ;;  %v2718_v56 = vmul.f32 1.442695, %v2695_v23 }
 0x59f   : > { %2744 = vadd.xlane.f32.xlu1 %v5784_v22  ;;  %3032 = vrot.lane.b32.xlu2 %v3016_v52, %s3883_s8  ;;  %v5816_v52 = vadd.f32 %v5706_v36, %v2647_v51  ;;  %v2720_v36 = vmul.f32 1.442695, %v2696_v26  ;;  %s3884_s8 = smov 8  }
 0x5a0   : > { %3735 = vpow2.f32 %v2016_v25 }
 0x5a1   : > { %3737 = vpow2.f32 %v2720_v36 }
 0x5a2   : > { %3739 = vpow2.f32 %v2718_v56 }
 0x5a3   : > { %v1971_v7 = vpop.xlane.xlu1 %1970 }
 0x5a4   : > { %v1990_v16 = vsub.f32 %v5695_v46, %v1971_v7  ;;  %v2697_v46 = vsub.f32 %v5630_v19, %v5716_v0  ;;  %v5864_v19 = vpop.f32.mrf.mxu0 }
 0x5a5   : > { %2740 = vadd.xlane.f32.xlu0 %v5791_v60  ;;  %6770 = vst [vmem:[#allocation15_spill] sm:$0xff] %v5864_v19 }
 0x5a6   : > { %v5826_v27 = vpop.eup %3735  ;;  %v2018_v31 = vmul.f32 1.442695, %v1990_v16  ;;  %v2722_v34 = vmul.f32 1.442695, %v2697_v46 }
 0x5a7   : > { %2680 = vmax.xlane.f32.xlu1 %v5794_v10  ;;  %v5845_v57 = vpop.eup %3737 }
 0x5ab   : > { %v1973_v21 = vpop.xlane.xlu2 %1972 }
 0x5ac   : > { %v1991_v58 = vsub.f32 %v5709_v15, %v1973_v21  ;;  %v5847_v15 = vpop.eup %3739  ;;  %v5885_v32 = vpop.f32.mrf.mxu0 }
 0x5ad   : > { %2746 = vadd.xlane.f32.xlu0 %v5801_v28  ;;  %6773 = vst [vmem:[#allocation11_spill] sm:$0xff] %v5885_v32 }
 0x5ae   : > { %v2020_v42 = vmul.f32 1.442695, %v1991_v58 }
 0x5af   : > { %2042 = vadd.xlane.f32.xlu1 %v5804_v18 }
 0x5b5   : > { %2044 = vadd.xlane.f32.xlu0 %v5808_v35 }
 0x5b7   : > { %2748 = vadd.xlane.f32.xlu1 %v5811_v11 }
 0x5bd   : > { %2682 = vmax.xlane.f32.xlu0 %v5816_v52 }
 0x5bf   : > { %2046 = vadd.xlane.f32.xlu1 %v5819_v40 }
 0x5c5   : > { %2048 = vadd.xlane.f32.xlu0 %v5826_v27 }
 0x5c7   : > { %2686 = vmax.xlane.f32.xlu1 %v5829_v45 }
 0x5c8   : > { %2678 = vmax.xlane.f32.xlu2 %v5835_v37 }
 0x5ca   : > { %v2027_v62 = vpop.xlane.xlu1 %2026 }
 0x5cb   : > { %3741 = vrcp.f32 %v2027_v62  ;;  %v2069_v21 = vand.u32 2147483648, %v2027_v62  ;;  %vm2063_vm13 = vweird.f32 %v2027_v62  ;;  %v2067_v56 = vand.u32 2147483647, %v2027_v62 }
 0x5cc   : > { %3743 = vpow2.f32 %v2020_v42 }
 0x5cd   : > { %2684 = vmax.xlane.f32.xlu0 %v5842_v4  ;;  %3745 = vpow2.f32 %v2018_v31  ;;  %vm2068_vm3 = vcmp.eq.f32.partialorder %v2067_v56, 8.507059e+37 }
 0x5cf   : > { %2752 = vadd.xlane.f32.xlu1 %v5845_v57 }
 0x5d0   : > { %2750 = vadd.xlane.f32.xlu2 %v5847_v15 }
 0x5d1   : > { %v3742_v1 = vpop.eup %3741 }
 0x5d2   : > { %v2059_v2 = vmul.f32 %v3742_v1, %v2027_v62  ;;  %v2029_v51 = vpop.xlane.xlu1 %2028  ;;  %v5855_v47 = vpop.xlane.xlu2 %2030  ;;  %vm2064_vm12 = vweird.f32 %v3742_v1 }
 0x5d3   : > { %3747 = vrcp.f32 %v2029_v51  ;;  %v5857_v24 = vpop.eup %3743  ;;  %v2084_v58 = vand.u32 2147483648, %v2029_v51  ;;  %vm5871_vm14 = vmor %vm2063_vm13, %vm2064_vm12  ;;  %v2082_v31 = vand.u32 2147483647, %v2029_v51  ;;  %vm2078_vm2 = vweird.f32 %v2029_v51 }
 0x5d4   : > { %v2060_v14 = vsub.f32 1.0, %v2059_v2  ;;  %3749 = vrcp.f32 %v5855_v47  ;;  %v5861_v25 = vpop.eup %3745  ;;  %vm2093_vm10 = vweird.f32 %v5855_v47 }
 0x5d5   : > { %2052 = vadd.xlane.f32.xlu0 %v5857_v24  ;;  %3751 = vpow2.f32 %v2722_v34  ;;  %v2070_v34 = vor.u32 1.1754944e-38, %v2069_v21  ;;  %v2085_v62 = vor.u32 1.1754944e-38, %v2084_v58  ;;  %vm2083_vm5 = vcmp.eq.f32.partialorder %v2082_v31, 8.507059e+37 }
 0x5d6   : > { %v2061_v39 = vmul.f32 %v3742_v1, %v2060_v14 }
 0x5d8   : > { %2050 = vadd.xlane.f32.xlu2 %v5861_v25  ;;  %v2062_v23 = vadd.f32 %v3742_v1, %v2061_v39 }
 0x5d9   : > { %v3748_v26 = vpop.eup %3747 }
 0x5da   : > { %v2074_v0 = vmul.f32 %v3748_v26, %v2029_v51  ;;  %v5866_v7 = vpop.xlane.xlu0 %2032  ;;  %v5868_v29 = vpop.eup %3749  ;;  %vm2079_vm15 = vweird.f32 %v3748_v26  ;;  %v2066_v46 = vsel %vm5871_vm14, %v3742_v1, %v2062_v23 }
 0x5db   : > { %3753 = vrcp.f32 %v5866_v7  ;;  %v2089_v2 = vmul.f32 %v5868_v29, %v5855_v47  ;;  %v5879_v14 = vpop.eup %3751  ;;  %vm2080_vm4 = vmor %vm2078_vm2, %vm2079_vm15  ;;  %v2071_v20 = vsel %vm2068_vm3, %v2070_v34, %v2066_v46  ;;  %v2114_v46 = vand.u32 2147483648, %v5866_v7 }
 0x5dc   : > { %v2075_v36 = vsub.f32 1.0, %v2074_v0  ;;  %v2072_v51 = vmul.f32 %v5719_v48, %v2071_v20  ;;  %vm2108_vm7 = vweird.f32 %v5866_v7  ;;  %vm2094_vm8 = vweird.f32 %v5868_v29 }
 0x5dd   : > { %v2090_v19 = vsub.f32 1.0, %v2089_v2  ;;  %v5893_v2 = vpop.xlane.xlu1 %2742  ;;  %v2112_v48 = vand.u32 2147483647, %v5866_v7  ;;  %vm2095_vm11 = vmor %vm2093_vm10, %vm2094_vm8 }
 0x5de   : > { %v2076_v42 = vmul.f32 %v3748_v26, %v2075_v36 }
 0x5df   : > { %v2091_v58 = vmul.f32 %v5868_v29, %v2090_v19  ;;  %v2099_v19 = vand.u32 2147483648, %v5855_v47  ;;  %vm2113_vm12 = vcmp.eq.f32.partialorder %v2112_v48, 8.507059e+37 }
 0x5e0   : > { %v2077_v39 = vadd.f32 %v3748_v26, %v2076_v42  ;;  %2754 = vadd.xlane.f32.xlu2 %v5879_v14 }
 0x5e1   : > { %v3754_v0 = vpop.eup %3753  ;;  %v2092_v20 = vadd.f32 %v5868_v29, %v2091_v58 }
 0x5e2   : > { %v2081_v36 = vsel %vm2080_vm4, %v3748_v26, %v2077_v39  ;;  %v2104_v1 = vmul.f32 %v3754_v0, %v5866_v7  ;;  %v5883_v23 = vpop.xlane.xlu2 %2034  ;;  %vm2109_vm6 = vweird.f32 %v3754_v0  ;;  %v2097_v39 = vand.u32 2147483647, %v5855_v47 }
 0x5e3   : > { %v2086_v16 = vsel %vm2083_vm5, %v2085_v62, %v2081_v36  ;;  %3755 = vrcp.f32 %v5883_v23  ;;  %vm2110_vm9 = vmor %vm2108_vm7, %vm2109_vm6  ;;  %v5903_v36 = vpop.f32.mrf.mxu0  ;;  %v2096_v7 = vsel %vm2095_vm11, %v5868_v29, %v2092_v20  ;;  %vm2123_vm4 = vweird.f32 %v5883_v23 }
 0x5e4   : > { %v2105_v21 = vsub.f32 1.0, %v2104_v1  ;;  %v2087_v56 = vmul.f32 %v5725_v17, %v2086_v16  ;;  %v2115_v16 = vor.u32 1.1754944e-38, %v2114_v46  ;;  %vm2098_vm13 = vcmp.eq.f32.partialorder %v2097_v39, 8.507059e+37 }
 0x5e6   : > { %v2106_v26 = vmul.f32 %v3754_v0, %v2105_v21  ;;  %v2298_v42 = vpack.c.bf16 %v2087_v56, %v2072_v51  ;;  %v2100_v51 = vor.u32 1.1754944e-38, %v2099_v19 }
 0x5e8   : > { %2354 = vmatmul.bf16.vlgmr.msra.gmra.mxu1 %v2298_v42  ;;  %v2107_v31 = vadd.f32 %v3754_v0, %v2106_v26  ;;  %v2101_v26 = vsel %vm2098_vm13, %v2100_v51, %v2096_v7  ;;  %v2127_v51 = vand.u32 2147483647, %v5883_v23 }
 0x5e9   : > { %v5898_v17 = vpop.eup %3755  ;;  %v2102_v46 = vmul.f32 %v5727_v30, %v2101_v26 }
 0x5ea   : > { %v2037_v34 = vpop.xlane.xlu2 %2036  ;;  %v2111_v62 = vsel %vm2110_vm9, %v3754_v0, %v2107_v31  ;;  %v2119_v21 = vmul.f32 %v5898_v17, %v5883_v23  ;;  %vm2124_vm2 = vweird.f32 %v5898_v17  ;;  %vm2128_vm7 = vcmp.eq.f32.partialorder %v2127_v51, 8.507059e+37 }
 0x5eb   : > { %3757 = vrcp.f32 %v2037_v34  ;;  %v2116_v56 = vsel %vm2113_vm12, %v2115_v16, %v2111_v62  ;;  %v5914_v48 = vpop.f32.mrf.mxu0  ;;  %v2144_v39 = vand.u32 2147483648, %v2037_v34  ;;  %vm2138_vm15 = vweird.f32 %v2037_v34  ;;  %vm2125_vm5 = vmor %vm2123_vm4, %vm2124_vm2 }
 0x5ec   : > { %v2120_v42 = vsub.f32 1.0, %v2119_v21  ;;  %v2117_v31 = vmul.f32 %v5734_v5, %v2116_v56  ;;  %v2142_v30 = vand.u32 2147483647, %v2037_v34  ;;  %vm2818_vm4 = vweird.f32 %v5893_v2 }
 0x5ed   : > { %v3035_v1 = vpop.permute.xlu0 %3034 }
 0x5ee   : > { %3062 = vmatpush.bf16.msrb.mxu0 %v3035_v1  ;;  %v2121_v1 = vmul.f32 %v5898_v17, %v2120_v42  ;;  %v2299_v20 = vpack.c.bf16 %v2117_v31, %v2102_v46  ;;  %v2145_v42 = vor.u32 1.1754944e-38, %v2144_v39  ;;  %vm2143_vm6 = vcmp.eq.f32.partialorder %v2142_v30, 8.507059e+37 }
 0x5f0   : > { %v2122_v5 = vadd.f32 %v5898_v17, %v2121_v1 }
 0x5f1   : > { %v3758_v58 = vpop.eup %3757 }
 0x5f2   : > { %v2134_v47 = vmul.f32 %v3758_v58, %v2037_v34  ;;  %v5908_v0 = vpop.xlane.xlu1 %2038  ;;  %vm2139_vm14 = vweird.f32 %v3758_v58 }
 0x5f3   : > { %3759 = vrcp.f32 %v5908_v0  ;;  %vm2140_vm3 = vmor %vm2138_vm15, %vm2139_vm14  ;;  %v5930_v1 = vpop.f32.mrf.mxu0  ;;  %vm2153_vm12 = vweird.f32 %v5908_v0 }
 0x5f4   : > { %v2135_v32 = vsub.f32 1.0, %v2134_v47  ;;  %v2126_v47 = vsel %vm2125_vm5, %v5898_v17, %v2122_v5 }
 0x5f6   : > { %v2136_v29 = vmul.f32 %v3758_v58, %v2135_v32  ;;  %v2129_v32 = vand.u32 2147483648, %v5883_v23 }
 0x5f8   : > { %2359 = vmatmul.bf16.gmra.mxu1 %v2299_v20  ;;  %v2137_v19 = vadd.f32 %v3758_v58, %v2136_v29  ;;  %v2130_v31 = vor.u32 1.1754944e-38, %v2129_v32 }
 0x5f9   : > { %v5920_v21 = vpop.eup %3759 }
 0x5fa   : > { %v1975_v62 = vpop.xlane.xlu1 %1974  ;;  %v5916_v16 = vpop.xlane.xlu2 %2040  ;;  %v2141_v56 = vsel %vm2140_vm3, %v3758_v58, %v2137_v19  ;;  %v2149_v34 = vmul.f32 %v5920_v21, %v5908_v0  ;;  %v2131_v29 = vsel %vm2128_vm7, %v2130_v31, %v2126_v47  ;;  %vm2154_vm9 = vweird.f32 %v5920_v21 }
 0x5fb   : > { %v1992_v7 = vsub.f32 %v5759_v6, %v1975_v62  ;;  %3761 = vrcp.f32 %v5916_v16  ;;  %v2146_v6 = vsel %vm2143_vm6, %v2145_v42, %v2141_v56  ;;  %v2132_v5 = vmul.f32 %v5739_v63, %v2131_v29  ;;  %v5954_v31 = vpop.f32.mrf.mxu0  ;;  %vm2155_vm13 = vmor %vm2153_vm12, %vm2154_vm9 }
 0x5fc   : > { %v2150_v20 = vsub.f32 1.0, %v2149_v34  ;;  %v2147_v39 = vmul.f32 %v5743_v38, %v2146_v6  ;;  %v6774_v56 = vpack.c.bf16 %v5698_v55, %v5687_v59  ;;  %vm2168_vm10 = vweird.f32 %v5916_v16 }
 0x5fd   : > { %v2022_v26 = vmul.f32 1.442695, %v1992_v7  ;;  %v2172_v42 = vand.u32 2147483647, %v5916_v16  ;;  %v2159_v47 = vand.u32 2147483648, %v5908_v0 }
 0x5fe   : > { %v2151_v7 = vmul.f32 %v5920_v21, %v2150_v20  ;;  %v2157_v6 = vand.u32 2147483647, %v5908_v0 }
 0x5ff   : > { %3763 = vpow2.f32 %v2022_v26  ;;  %v2300_v26 = vpack.c.bf16 %v2147_v39, %v2132_v5  ;;  %vm2173_vm14 = vcmp.eq.f32.partialorder %v2172_v42, 8.507059e+37 }
 0x600   : > { %v2152_v63 = vadd.f32 %v5920_v21, %v2151_v7  ;;  %vm2158_vm15 = vcmp.eq.f32.partialorder %v2157_v6, 8.507059e+37 }
 0x601   : > { %v3762_v46 = vpop.eup %3761 }
 0x602   : > { %v2164_v23 = vmul.f32 %v3762_v46, %v5916_v16  ;;  %v1977_v58 = vpop.xlane.xlu1 %1976  ;;  %v3033_v19 = vpop.permute.xlu2 %3032  ;;  %vm2169_vm8 = vweird.f32 %v3762_v46 }
 0x603   : > { %v1993_v62 = vsub.f32 %v5771_v53, %v1977_v58  ;;  %3063 = vmatpush.bf16.msrb.mxu0 %v3033_v19  ;;  %v2174_v53 = vand.u32 2147483648, %v5916_v16  ;;  %vm5949_vm11 = vmor %vm2168_vm10, %vm2169_vm8  ;;  %v2160_v58 = vor.u32 1.1754944e-38, %v2159_v47 }
 0x604   : > { %v2165_v17 = vsub.f32 1.0, %v2164_v23 }
 0x605   : > { %v5936_v30 = vpop.eup %3763  ;;  %v2024_v32 = vmul.f32 1.442695, %v1993_v62  ;;  %v2175_v16 = vor.u32 1.1754944e-38, %v2174_v53 }
 0x606   : > { %v2166_v51 = vmul.f32 %v3762_v46, %v2165_v17  ;;  %2054 = vadd.xlane.f32.xlu0 %v5936_v30  ;;  %3064 = vmatmul.bf16.vlgmr.msrb.gmra.mxu0 %v6774_v56 }
 0x607   : > { %3765 = vpow2.f32 %v2024_v32  ;;  %v5971_v32 = vpop.f32.mrf.mxu0 }
 0x608   : > { %v2167_v38 = vadd.f32 %v3762_v46, %v2166_v51  ;;  %2364 = vmatmul.bf16.gmra.mxu1 %v2300_v26  ;;  %3767 = vrcp.f32 %v5893_v2 }
 0x60a   : > { %v2677_v34 = vpop.xlane.xlu1 %2676  ;;  %v2171_v29 = vsel %vm5949_vm11, %v3762_v46, %v2167_v38 }
 0x60b   : > { %v2698_v55 = vsub.f32 %v5777_v9, %v2677_v34  ;;  %v2156_v9 = vsel %vm2155_vm13, %v5920_v21, %v2152_v63  ;;  %v2176_v19 = vsel %vm2173_vm14, %v2175_v16, %v2171_v29  ;;  %v2824_v29 = vand.u32 2147483648, %v5893_v2 }
 0x60c   : > { %v2161_v0 = vsel %vm2158_vm15, %v2160_v58, %v2156_v9  ;;  %v2177_v46 = vmul.f32 %v5761_v8, %v2176_v19  ;;  %v2822_v58 = vand.u32 2147483647, %v5893_v2 }
 0x60d   : > { %v5960_v20 = vpop.eup %3765  ;;  %v2724_v23 = vmul.f32 1.442695, %v2698_v55  ;;  %v2162_v17 = vmul.f32 %v5750_v61, %v2161_v0 }
 0x60e   : > { %2056 = vadd.xlane.f32.xlu1 %v5960_v20  ;;  %v3768_v62 = vpop.eup %3767  ;;  %vm2823_vm8 = vcmp.eq.f32.partialorder %v2822_v58, 8.507059e+37 }
 0x60f   : > { %3769 = vpow2.f32 %v2724_v23  ;;  %v2301_v7 = vpack.c.bf16 %v2177_v46, %v2162_v17  ;;  %v2814_v21 = vmul.f32 %v3768_v62, %v5893_v2  ;;  %v5979_v42 = vpop.f32.mrf.mxu0  ;;  %vm2819_vm2 = vweird.f32 %v3768_v62 }
 0x610   : > { %6777 = vst [vmem:[#allocation10_spill] sm:$0xff] %v5979_v42  ;;  %vm5994_vm5 = vmor %vm2818_vm4, %vm2819_vm2  ;;  %v2825_v2 = vor.u32 1.1754944e-38, %v2824_v29 }
 0x611   : > { %v2815_v26 = vsub.f32 1.0, %v2814_v21 }
 0x612   : > { %v5965_v39 = vpop.xlane.xlu1 %2744 }
 0x613   : > { %v2816_v53 = vmul.f32 %v3768_v62, %v2815_v26  ;;  %vm2833_vm10 = vweird.f32 %v5965_v39 }
 0x615   : > { %v5969_v5 = vpop.eup %3769  ;;  %v2817_v6 = vadd.f32 %v3768_v62, %v2816_v53 }
 0x616   : > { %2756 = vadd.xlane.f32.xlu2 %v5969_v5 }
 0x618   : > { %v2741_v51 = vpop.xlane.xlu0 %2740  ;;  %2369 = vmatmul.bf16.gmra.mxu1 %v2301_v7 }
 0x619   : > { %3771 = vrcp.f32 %v2741_v51  ;;  %v2809_v23 = vand.u32 2147483648, %v2741_v51  ;;  %v2807_v19 = vand.u32 2147483647, %v2741_v51  ;;  %vm2803_vm6 = vweird.f32 %v2741_v51 }
 0x61a   : > { %3773 = vrcp.f32 %v5965_v39  ;;  %v2681_v56 = vpop.xlane.xlu1 %2680 }
 0x61b   : > { %v2700_v8 = vsub.f32 %v5794_v10, %v2681_v56  ;;  %v2821_v56 = vsel %vm5994_vm5, %v3768_v62, %v2817_v6  ;;  %v2810_v26 = vor.u32 1.1754944e-38, %v2809_v23  ;;  %vm2808_vm9 = vcmp.eq.f32.partialorder %v2807_v19, 8.507059e+37 }
 0x61c   : > { %v2826_v29 = vsel %vm2823_vm8, %v2825_v2, %v2821_v56  ;;  %v2839_v56 = vand.u32 2147483648, %v5965_v39 }
 0x61d   : > { %v2728_v38 = vmul.f32 1.442695, %v2700_v8  ;;  %v2827_v19 = vmul.f32 %v5732_v13, %v2826_v29 }
 0x61f   : > { %v3772_v61 = vpop.eup %3771  ;;  %3775 = vpow2.f32 %v2728_v38 }
 0x620   : > { %v5977_v63 = vpop.eup %3773  ;;  %v2799_v34 = vmul.f32 %v3772_v61, %v2741_v51  ;;  %v5981_v47 = vpop.xlane.xlu0 %2746  ;;  %vm2804_vm3 = vweird.f32 %v3772_v61 }
 0x621   : > { %3777 = vrcp.f32 %v5981_v47  ;;  %v2829_v10 = vmul.f32 %v5977_v63, %v5965_v39  ;;  %vm6001_vm7 = vmor %vm2803_vm6, %vm2804_vm3  ;;  %vm2834_vm11 = vweird.f32 %v5977_v63  ;;  %vm2848_vm12 = vweird.f32 %v5981_v47 }
 0x622   : > { %v2800_v59 = vsub.f32 1.0, %v2799_v34  ;;  %v5984_v55 = vpop.xlane.xlu1 %2042  ;;  %v6016_v34 = vpop.f32.mrf.mxu0  ;;  %vm6074_vm5 = vmor %vm2833_vm10, %vm2834_vm11 }
 0x623   : > { %3779 = vrcp.f32 %v5984_v55  ;;  %v2830_v7 = vsub.f32 1.0, %v2829_v10  ;;  %vm2183_vm2 = vweird.f32 %v5984_v55 }
 0x624   : > { %v2801_v16 = vmul.f32 %v3772_v61, %v2800_v59 }
 0x625   : > { %v5990_v9 = vpop.eup %3775 }
 0x626   : > { %v2802_v46 = vadd.f32 %v3772_v61, %v2801_v16  ;;  %2760 = vadd.xlane.f32.xlu1 %v5990_v9  ;;  %v2831_v16 = vmul.f32 %v5977_v63, %v2830_v7 }
 0x627   : > { %v5999_v17 = vpop.eup %3777 }
 0x628   : > { %v2844_v8 = vmul.f32 %v5999_v17, %v5981_v47  ;;  %v6009_v38 = vpop.xlane.xlu0 %2044  ;;  %v2806_v51 = vsel %vm6001_vm7, %v3772_v61, %v2802_v46  ;;  %v2832_v21 = vadd.f32 %v5977_v63, %v2831_v16  ;;  %vm2849_vm13 = vweird.f32 %v5999_v17 }
 0x629   : > { %v6013_v53 = vpop.eup %3779  ;;  %3781 = vrcp.f32 %v6009_v38  ;;  %v2811_v10 = vsel %vm2808_vm9, %v2810_v26, %v2806_v51  ;;  %v2852_v51 = vand.u32 2147483647, %v5981_v47  ;;  %vm6046_vm15 = vmor %vm2848_vm12, %vm2849_vm13  ;;  %vm2198_vm6 = vweird.f32 %v6009_v38 }
 0x62a   : > { %v2845_v59 = vsub.f32 1.0, %v2844_v8  ;;  %v2179_v62 = vmul.f32 %v6013_v53, %v5984_v55  ;;  %v6020_v6 = vpop.xlane.xlu1 %2748  ;;  %v2812_v58 = vmul.f32 %v5791_v60, %v2811_v10  ;;  %vm2184_vm14 = vweird.f32 %v6013_v53 }
 0x62b   : > { %3783 = vrcp.f32 %v6020_v6  ;;  %vm6058_vm3 = vmor %vm2183_vm2, %vm2184_vm14  ;;  %vm2853_vm7 = vcmp.eq.f32.partialorder %v2852_v51, 8.507059e+37 }
 0x62c   : > { %v2180_v23 = vsub.f32 1.0, %v2179_v62  ;;  %v2846_v61 = vmul.f32 %v5999_v17, %v2845_v59  ;;  %v3009_v2 = vpack.c.bf16 %v2827_v19, %v2812_v58  ;;  %v2854_v59 = vand.u32 2147483648, %v5981_v47 }
 0x62d   : > { %v2189_v62 = vand.u32 2147483648, %v5984_v55  ;;  %v2837_v58 = vand.u32 2147483647, %v5965_v39  ;;  %v2836_v39 = vsel %vm6074_vm5, %v5977_v63, %v2832_v21 }
 0x62e   : > { %v2181_v0 = vmul.f32 %v6013_v53, %v2180_v23  ;;  %v2847_v7 = vadd.f32 %v5999_v17, %v2846_v61  ;;  %3069 = vmatmul.bf16.gmra.mxu0 %v3009_v2  ;;  %v2187_v23 = vand.u32 2147483647, %v5984_v55  ;;  %v6053_v61 = vpop.f32.mrf.mxu0  ;;  %v2202_v2 = vand.u32 2147483647, %v6009_v38 }
 0x62f   : > { %v3782_v46 = vpop.eup %3781  ;;  %vm2838_vm10 = vcmp.eq.f32.partialorder %v2837_v58, 8.507059e+37 }
 0x630   : > { %v2194_v13 = vmul.f32 %v3782_v46, %v6009_v38  ;;  %v2683_v60 = vpop.xlane.xlu0 %2682  ;;  %v2182_v26 = vadd.f32 %v6013_v53, %v2181_v0  ;;  %vm2199_vm4 = vweird.f32 %v3782_v46  ;;  %v2204_v0 = vand.u32 2147483648, %v6009_v38 }
 0x631   : > { %v2701_v8 = vsub.f32 %v5816_v52, %v2683_v60  ;;  %vm2188_vm8 = vcmp.eq.f32.partialorder %v2187_v23, 8.507059e+37  ;;  %vm2200_vm9 = vmor %vm2198_vm6, %vm2199_vm4  ;;  %vm2203_vm11 = vcmp.eq.f32.partialorder %v2202_v2, 8.507059e+37 }
 0x632   : > { %v2195_v10 = vsub.f32 1.0, %v2194_v13  ;;  %v6042_v29 = vpop.xlane.xlu1 %2046  ;;  %v2186_v55 = vsel %vm6058_vm3, %v6013_v53, %v2182_v26  ;;  %v2851_v13 = vsel %vm6046_vm15, %v5999_v17, %v2847_v7  ;;  %v2840_v53 = vor.u32 1.1754944e-38, %v2839_v56 }
 0x633   : > { %v2730_v52 = vmul.f32 1.442695, %v2701_v8  ;;  %3785 = vrcp.f32 %v6042_v29  ;;  %v2855_v8 = vor.u32 1.1754944e-38, %v2854_v59  ;;  %v2205_v17 = vor.u32 1.1754944e-38, %v2204_v0 }
 0x634   : > { %v2196_v47 = vmul.f32 %v3782_v46, %v2195_v10  ;;  %v2190_v10 = vor.u32 1.1754944e-38, %v2189_v62  ;;  %v2841_v21 = vsel %vm2838_vm10, %v2840_v53, %v2836_v39  ;;  %vm2213_vm14 = vweird.f32 %v6042_v29 }
 0x635   : > { %3787 = vpow2.f32 %v2730_v52  ;;  %v6079_v52 = vpop.eup %3783  ;;  %v2856_v62 = vsel %vm2853_vm7, %v2855_v8, %v2851_v13  ;;  %v2842_v60 = vmul.f32 %v5784_v22, %v2841_v21  ;;  %v2217_v21 = vand.u32 2147483647, %v6042_v29 }
 0x636   : > { %v2197_v42 = vadd.f32 %v3782_v46, %v2196_v47  ;;  %v2191_v26 = vsel %vm2188_vm8, %v2190_v10, %v2186_v55  ;;  %v2859_v38 = vmul.f32 %v6079_v52, %v6020_v6  ;;  %v2857_v47 = vmul.f32 %v5801_v28, %v2856_v62  ;;  %v6103_v8 = vpop.f32.mrf.mxu0 }
 0x637   : > { %v2192_v19 = vmul.f32 %v5804_v18, %v2191_v26  ;;  %vm2863_vm15 = vweird.f32 %v6020_v6  ;;  %vm2864_vm4 = vweird.f32 %v6079_v52  ;;  %vm2218_vm6 = vcmp.eq.f32.partialorder %v2217_v21, 8.507059e+37 }
 0x638   : > { %v6085_v7 = vpop.xlane.xlu0 %2048  ;;  %v2201_v59 = vsel %vm2200_vm9, %v3782_v46, %v2197_v42  ;;  %v2860_v53 = vsub.f32 1.0, %v2859_v38  ;;  %vm6157_vm8 = vmor %vm2863_vm15, %vm2864_vm4 }
 0x639   : > { %v6087_v16 = vpop.eup %3785  ;;  %3789 = vrcp.f32 %v6085_v7  ;;  %v2206_v63 = vsel %vm2203_vm11, %v2205_v17, %v2201_v59  ;;  %v2219_v17 = vand.u32 2147483648, %v6042_v29  ;;  %v2234_v38 = vand.u32 2147483648, %v6085_v7 }
 0x63a   : > { %v2209_v56 = vmul.f32 %v6087_v16, %v6042_v29  ;;  %v2687_v51 = vpop.xlane.xlu1 %2686  ;;  %v2207_v58 = vmul.f32 %v5808_v35, %v2206_v63  ;;  %v3010_v35 = vpack.c.bf16 %v2857_v47, %v2842_v60  ;;  %v2861_v59 = vmul.f32 %v6079_v52, %v2860_v53 }
 0x63b   : > { %v6094_v23 = vpop.eup %3787  ;;  %v2703_v42 = vsub.f32 %v5829_v45, %v2687_v51  ;;  %v2679_v46 = vpop.xlane.xlu2 %2678  ;;  %vm2214_vm12 = vweird.f32 %v6087_v16  ;;  %vm2228_vm3 = vweird.f32 %v6085_v7  ;;  %v2869_v29 = vand.u32 2147483648, %v6020_v6 }
 0x63c   : > { %v2210_v0 = vsub.f32 1.0, %v2209_v56  ;;  %v2699_v2 = vsub.f32 %v5835_v37, %v2679_v46  ;;  %2762 = vadd.xlane.f32.xlu2 %v6094_v23  ;;  %v2302_v13 = vpack.c.bf16 %v2207_v58, %v2192_v19  ;;  %vm6127_vm2 = vmor %vm2213_vm14, %vm2214_vm12  ;;  %v2862_v47 = vadd.f32 %v6079_v52, %v2861_v59 }
 0x63d   : > { %v2734_v55 = vmul.f32 1.442695, %v2703_v42  ;;  %v2232_v42 = vand.u32 2147483647, %v6085_v7  ;;  %v2867_v53 = vand.u32 2147483647, %v6020_v6 }
 0x63e   : > { %v2726_v10 = vmul.f32 1.442695, %v2699_v2  ;;  %v2211_v18 = vmul.f32 %v6087_v16, %v2210_v0  ;;  %2374 = vmatmul.bf16.gmra.mxu1 %v2302_v13  ;;  %3074 = vmatmul.bf16.gmra.mxu0 %v3010_v35  ;;  %v2235_v13 = vor.u32 1.1754944e-38, %v2234_v38 }
 0x63f   : > { %v3790_v45 = vpop.eup %3789  ;;  %3791 = vpow2.f32 %v2734_v55  ;;  %v2220_v55 = vor.u32 1.1754944e-38, %v2219_v17  ;;  %vm2233_vm7 = vcmp.eq.f32.partialorder %v2232_v42, 8.507059e+37  ;;  %v2866_v17 = vsel %vm6157_vm8, %v6079_v52, %v2862_v47 }
 0x640   : > { %v2224_v28 = vmul.f32 %v3790_v45, %v6085_v7  ;;  %3793 = vpow2.f32 %v2726_v10  ;;  %v2685_v37 = vpop.xlane.xlu0 %2684  ;;  %v2212_v62 = vadd.f32 %v6087_v16, %v2211_v18  ;;  %vm2229_vm13 = vweird.f32 %v3790_v45  ;;  %v6145_v7 = vpop.f32.mrf.mxu0 }
 0x641   : > { %v2702_v39 = vsub.f32 %v5842_v4, %v2685_v37  ;;  %vm6137_vm5 = vmor %vm2228_vm3, %vm2229_vm13  ;;  %vm2868_vm9 = vcmp.eq.f32.partialorder %v2867_v53, 8.507059e+37 }
 0x642   : > { %v2225_v22 = vsub.f32 1.0, %v2224_v28  ;;  %v6109_v26 = vpop.xlane.xlu1 %2752  ;;  %v2216_v2 = vsel %vm6127_vm2, %v6087_v16, %v2212_v62 }
 0x643   : > { %v6115_v56 = vpop.xlane.xlu2 %2750  ;;  %v2732_v63 = vmul.f32 1.442695, %v2702_v39  ;;  %v2221_v35 = vsel %vm2218_vm6, %v2220_v55, %v2216_v2  ;;  %v948_v2 = vpop.f32.mrf.mxu1 }
 0x644   : > { %v2226_v51 = vmul.f32 %v3790_v45, %v2225_v22  ;;  %3795 = vrcp.f32 %v6115_v56  ;;  %v2870_v22 = vor.u32 1.1754944e-38, %v2869_v29  ;;  %v2222_v59 = vmul.f32 %v5819_v40, %v2221_v35 }
 0x645   : > { %v6118_v4 = vpop.eup %3791  ;;  %3797 = vrcp.f32 %v6109_v26  ;;  %v2884_v52 = vand.u32 2147483648, %v6115_v56  ;;  %vm2878_vm11 = vweird.f32 %v6115_v56 }
 0x646   : > { %v6124_v46 = vpop.eup %3793  ;;  %v2227_v58 = vadd.f32 %v3790_v45, %v2226_v51  ;;  %2766 = vadd.xlane.f32.xlu1 %v6118_v4  ;;  %3799 = vpow2.f32 %v2732_v63  ;;  %v2882_v63 = vand.u32 2147483647, %v6115_v56  ;;  %v2871_v21 = vsel %vm2868_vm9, %v2870_v22, %v2866_v17 }
 0x647   : > { %2758 = vadd.xlane.f32.xlu0 %v6124_v46  ;;  %vm2893_vm9 = vweird.f32 %v6109_v26 }
 0x648   : > { %v6147_v60 = vpop.xlane.xlu0 %2052  ;;  %v2231_v10 = vsel %vm6137_vm5, %v3790_v45, %v2227_v58  ;;  %v6181_v29 = vpop.f32.mrf.mxu0  ;;  %vm2883_vm13 = vcmp.eq.f32.partialorder %v2882_v63, 8.507059e+37 }
 0x649   : > { %3801 = vrcp.f32 %v6147_v60  ;;  %v2236_v28 = vsel %vm2233_vm7, %v2235_v13, %v2231_v10  ;;  %v2872_v13 = vmul.f32 %v5811_v11, %v2871_v21  ;;  %v2885_v10 = vor.u32 1.1754944e-38, %v2884_v52 }
 0x64a   : > { %v3796_v18 = vpop.eup %3795  ;;  %v2237_v62 = vmul.f32 %v5826_v27, %v2236_v28  ;;  %v2264_v28 = vand.u32 2147483648, %v6147_v60  ;;  %vm2258_vm15 = vweird.f32 %v6147_v60  ;;  %v2262_v11 = vand.u32 2147483647, %v6147_v60 }
 0x64b   : > { %v6161_v37 = vpop.eup %3797  ;;  %v2874_v45 = vmul.f32 %v3796_v18, %v6115_v56  ;;  %v6164_v39 = vpop.xlane.xlu2 %2050  ;;  %vm2879_vm10 = vweird.f32 %v3796_v18 }
 0x64c   : > { %3803 = vrcp.f32 %v6164_v39  ;;  %v6172_v38 = vpop.eup %3799  ;;  %v2889_v51 = vmul.f32 %v6161_v37, %v6109_v26  ;;  %v2303_v58 = vpack.c.bf16 %v2237_v62, %v2222_v59  ;;  %vm6183_vm12 = vmor %vm2878_vm11, %vm2879_vm10  ;;  %v2265_v63 = vor.u32 1.1754944e-38, %v2264_v28 }
 0x64d   : > { %v2875_v6 = vsub.f32 1.0, %v2874_v45  ;;  %vm2263_vm4 = vcmp.eq.f32.partialorder %v2262_v11, 8.507059e+37  ;;  %vm2243_vm5 = vweird.f32 %v6164_v39  ;;  %vm2894_vm6 = vweird.f32 %v6161_v37 }
 0x64e   : > { %2379 = vmatmul.bf16.gmra.mxu1 %v2303_v58  ;;  %v2890_v0 = vsub.f32 1.0, %v2889_v51  ;;  %vm6219_vm10 = vmor %vm2893_vm9, %vm2894_vm6 }
 0x64f   : > { %v3802_v42 = vpop.eup %3801  ;;  %v2876_v19 = vmul.f32 %v3796_v18, %v2875_v6  ;;  %2764 = vadd.xlane.f32.xlu0 %v6172_v38 }
 0x650   : > { %v2254_v40 = vmul.f32 %v3802_v42, %v6147_v60  ;;  %vm2259_vm14 = vweird.f32 %v3802_v42  ;;  %v2891_v22 = vmul.f32 %v6161_v37, %v2890_v0 }
 0x651   : > { %v2877_v47 = vadd.f32 %v3796_v18, %v2876_v19  ;;  %vm6202_vm2 = vmor %vm2258_vm15, %vm2259_vm14 }
 0x652   : > { %v3804_v27 = vpop.eup %3803  ;;  %v2255_v55 = vsub.f32 1.0, %v2254_v40 }
 0x653   : > { %v2239_v53 = vmul.f32 %v3804_v27, %v6164_v39  ;;  %v6189_v16 = vpop.xlane.xlu2 %2754  ;;  %v2881_v56 = vsel %vm6183_vm12, %v3796_v18, %v2877_v47  ;;  %v2249_v18 = vand.u32 2147483648, %v6164_v39  ;;  %vm2244_vm3 = vweird.f32 %v3804_v27 }
 0x654   : > { %v2256_v35 = vmul.f32 %v3802_v42, %v2255_v55  ;;  %3805 = vrcp.f32 %v6189_v16  ;;  %977 = vrot.lane.b32.xlu2 %v5903_v36, %s3884_s8  ;;  %v2886_v17 = vsel %vm2883_vm13, %v2885_v10, %v2881_v56  ;;  %v2247_v36 = vand.u32 2147483647, %v6164_v39  ;;  %vm2245_vm7 = vmor %vm2243_vm5, %vm2244_vm3  ;;  %v1667_v55 = vpop.f32.mrf.mxu0 }
 0x655   : > { %v2240_v45 = vsub.f32 1.0, %v2239_v53  ;;  %v2887_v59 = vmul.f32 %v5847_v15, %v2886_v17  ;;  %v2892_v15 = vadd.f32 %v6161_v37, %v2891_v22  ;;  %v2250_v58 = vor.u32 1.1754944e-38, %v2249_v18  ;;  %v950_v18 = vpop.f32.mrf.mxu1 }
 0x656   : > { %v2257_v6 = vadd.f32 %v3802_v42, %v2256_v35  ;;  %vm2248_vm8 = vcmp.eq.f32.partialorder %v2247_v36, 8.507059e+37  ;;  %v2897_v10 = vand.u32 2147483647, %v6109_v26  ;;  %v2914_v35 = vand.u32 2147483648, %v6189_v16 }
 0x657   : > { %v2241_v51 = vmul.f32 %v3804_v27, %v2240_v45  ;;  %v3011_v21 = vpack.c.bf16 %v2887_v59, %v2872_v13  ;;  %v2912_v11 = vand.u32 2147483647, %v6189_v16  ;;  %vm2908_vm13 = vweird.f32 %v6189_v16 }
 0x658   : > { %v2261_v60 = vsel %vm6202_vm2, %v3802_v42, %v2257_v6  ;;  %v2899_v42 = vand.u32 2147483648, %v6109_v26  ;;  %vm2898_vm12 = vcmp.eq.f32.partialorder %v2897_v10, 8.507059e+37 }
 0x659   : > { %v2242_v19 = vadd.f32 %v3804_v27, %v2241_v51  ;;  %3079 = vmatmul.bf16.gmra.mxu0 %v3011_v21  ;;  %v2266_v40 = vsel %vm2263_vm4, %v2265_v63, %v2261_v60  ;;  %vm2913_vm15 = vcmp.eq.f32.partialorder %v2912_v11, 8.507059e+37 }
 0x65a   : > { %v3806_v52 = vpop.eup %3805  ;;  %v2267_v56 = vmul.f32 %v5857_v24, %v2266_v40  ;;  %v2900_v45 = vor.u32 1.1754944e-38, %v2899_v42  ;;  %v2915_v24 = vor.u32 1.1754944e-38, %v2914_v35 }
 0x65b   : > { %v2904_v47 = vmul.f32 %v3806_v52, %v6189_v16  ;;  %v2246_v0 = vsel %vm2245_vm7, %v3804_v27, %v2242_v19  ;;  %vm2909_vm11 = vweird.f32 %v3806_v52 }
 0x65c   : > { %995 = vrot.lane.b32.xlu2 %v5567_v49, %s3885_s6  ;;  %v2251_v39 = vsel %vm2248_vm8, %v2250_v58, %v2246_v0  ;;  %v2896_v49 = vsel %vm6219_vm10, %v6161_v37, %v2892_v15  ;;  %vm2910_vm14 = vmor %vm2908_vm13, %vm2909_vm11  ;;  %v1670_v59 = vpop.f32.mrf.mxu0 }
 0x65d   : > { %v2905_v27 = vsub.f32 1.0, %v2904_v47  ;;  %v2252_v53 = vmul.f32 %v5861_v25, %v2251_v39  ;;  %v2901_v17 = vsel %vm2898_vm12, %v2900_v45, %v2896_v49  ;;  %v3168_v45 = vld [vmem:[%s6545_s2 + $0x18] sm:$0xff] }
 0x65e   : > { %3229 = vmatpush.msra.mxu2 %v3168_v45 }
 0x65f   : > { %v2906_v28 = vmul.f32 %v3806_v52, %v2905_v27  ;;  %1009 = vrot.lane.b32.xlu1 %v5592_v41, %s3886_s7  ;;  %v2304_v26 = vpack.c.bf16 %v2267_v56, %v2252_v53  ;;  %v2902_v41 = vmul.f32 %v5845_v57, %v2901_v17 }
 0x661   : > { %v2907_v25 = vadd.f32 %v3806_v52, %v2906_v28  ;;  %2384 = vmatmul.bf16.gmra.mxu1 %v2304_v26 }
 0x663   : > { %993 = vrot.lane.b32.xlu0 %v5555_v44, %s3885_s6  ;;  %v2911_v37 = vsel %vm2910_vm14, %v3806_v52, %v2907_v25 }
 0x664   : > { %997 = vrot.lane.b32.xlu2 %v5580_v54, %s3885_s6  ;;  %v2916_v22 = vsel %vm2913_vm15, %v2915_v24, %v2911_v37  ;;  %v1672_v54 = vpop.f32.mrf.mxu0  ;;  %v3167_v37 = vld [vmem:[%s6545_s2 + $0x10] sm:$0xff] }
 0x665   : > { %v2917_v6 = vmul.f32 %v5879_v14, %v2916_v22  ;;  %v6246_v44 = vpop.f32.mrf.mxu1  ;;  %3230 = vmatpush.msra.mxu2 %v3167_v37 }
 0x667   : > { %1011 = vrot.lane.b32.xlu1 %v5597_v3, %s3886_s7  ;;  %v3012_v16 = vpack.c.bf16 %v2917_v6, %v2902_v41  ;;  %v3166_v41 = vld [vmem:[%s6545_s2 + $0x8] sm:$0xff]  ;;  %v3165_v6 = vld [vmem:[%s6545_s2] sm:$0xff] }
 0x668   : > { %3231 = vmatpush.msra.mxu2 %v3166_v41 }
 0x669   : > { %3084 = vmatmul.bf16.gmra.mxu0 %v3012_v16 }
 0x66a   : > { %3232 = vmatpush.msra.mxu2 %v3165_v6 }
 0x66b   : > { %979 = vrot.lane.b32.xlu0 %v5914_v48, %s3884_s8 }
 0x66c   : > { %999 = vrot.lane.b32.xlu2 %v5584_v12, %s3885_s6  ;;  %v1675_v3 = vpop.f32.mrf.mxu0 }
 0x66d   : > { %v6255_v57 = vpop.f32.mrf.mxu1 }
 0x66f   : > { %1013 = vrot.lane.b32.xlu1 %v5601_v33, %s3886_s7 }
 0x673   : > { %981 = vrot.lane.b32.xlu0 %v948_v2, %s3884_s8 }
 0x674   : > { %1705 = vrot.lane.b32.xlu2 %v6181_v29, %s3885_s6  ;;  %v1677_v62 = vpop.f32.mrf.mxu0 }
 0x675   : > { %v6260_v51 = vpop.f32.mrf.mxu1 }
 0x677   : > { %1015 = vrot.lane.b32.xlu1 %v5607_v50, %s3886_s7 }
 0x679   : > { %v2055_v14 = vpop.xlane.xlu0 %2054 }
 0x67a   : > { %3807 = vrcp.f32 %v2055_v14  ;;  %v2279_v19 = vand.u32 2147483648, %v2055_v14  ;;  %vm2273_vm3 = vweird.f32 %v2055_v14  ;;  %v2277_v52 = vand.u32 2147483647, %v2055_v14 }
 0x67b   : > { %983 = vrot.lane.b32.xlu0 %v950_v18, %s3884_s8 }
 0x67c   : > { %1707 = vrot.lane.b32.xlu2 %v1667_v55, %s3885_s6  ;;  %v1680_v60 = vpop.f32.mrf.mxu0  ;;  %v2280_v55 = vor.u32 1.1754944e-38, %v2279_v19  ;;  %vm2278_vm6 = vcmp.eq.f32.partialorder %v2277_v52, 8.507059e+37 }
 0x67f   : > { %1721 = vrot.lane.b32.xlu1 %v1675_v3, %s3886_s7 }
 0x680   : > { %v3808_v12 = vpop.eup %3807 }
 0x681   : > { %v2269_v33 = vmul.f32 %v3808_v12, %v2055_v14  ;;  %v2057_v48 = vpop.xlane.xlu1 %2056  ;;  %vm2274_vm2 = vweird.f32 %v3808_v12 }
 0x682   : > { %3809 = vrcp.f32 %v2057_v48  ;;  %vm6268_vm4 = vmor %vm2273_vm3, %vm2274_vm2  ;;  %v2294_v40 = vand.u32 2147483648, %v2057_v48  ;;  %v2292_v0 = vand.u32 2147483647, %v2057_v48  ;;  %vm2288_vm7 = vweird.f32 %v2057_v48 }
 0x683   : > { %v2270_v29 = vsub.f32 1.0, %v2269_v33  ;;  %1689 = vrot.lane.b32.xlu0 %v6016_v34, %s3884_s8  ;;  %v6272_v34 = vpop.f32.mrf.mxu1 }
 0x684   : > { %1709 = vrot.lane.b32.xlu2 %v1670_v59, %s3885_s6  ;;  %vm2293_vm9 = vcmp.eq.f32.partialorder %v2292_v0, 8.507059e+37  ;;  %v1682_v56 = vpop.f32.mrf.mxu0 }
 0x685   : > { %v2271_v50 = vmul.f32 %v3808_v12, %v2270_v29 }
 0x687   : > { %1723 = vrot.lane.b32.xlu1 %v1677_v62, %s3886_s7  ;;  %v2272_v63 = vadd.f32 %v3808_v12, %v2271_v50 }
 0x688   : > { %v3810_v36 = vpop.eup %3809 }
 0x689   : > { %v2284_v21 = vmul.f32 %v3810_v36, %v2057_v48  ;;  %vm2289_vm5 = vweird.f32 %v3810_v36  ;;  %v2276_v2 = vsel %vm6268_vm4, %v3808_v12, %v2272_v63 }
 0x68a   : > { %vm2290_vm8 = vmor %vm2288_vm7, %vm2289_vm5  ;;  %v2281_v39 = vsel %vm2278_vm6, %v2280_v55, %v2276_v2 }
 0x68b   : > { %v2285_v15 = vsub.f32 1.0, %v2284_v21  ;;  %1691 = vrot.lane.b32.xlu0 %v6053_v61, %s3884_s8  ;;  %v2295_v61 = vor.u32 1.1754944e-38, %v2294_v40  ;;  %v2282_v27 = vmul.f32 %v5936_v30, %v2281_v39  ;;  %v2365_v49 = vpop.f32.mrf.mxu1 }
 0x68c   : > { %1711 = vrot.lane.b32.xlu2 %v1672_v54, %s3885_s6  ;;  %v6285_v28 = vpop.f32.mrf.mxu0 }
 0x68d   : > { %v2286_v47 = vmul.f32 %v3810_v36, %v2285_v15 }
 0x68f   : > { %v2287_v42 = vadd.f32 %v3810_v36, %v2286_v47  ;;  %1725 = vrot.lane.b32.xlu1 %v1680_v60, %s3886_s7 }
 0x691   : > { %v2291_v13 = vsel %vm2290_vm8, %v3810_v36, %v2287_v42 }
 0x692   : > { %v2296_v10 = vsel %vm2293_vm9, %v2295_v61, %v2291_v13  ;;  %vm1025_vm9 = vcmask 130048  }
 0x693   : > { %1693 = vrot.lane.b32.xlu0 %v6103_v8, %s3884_s8  ;;  %v2297_v53 = vmul.f32 %v5960_v20, %v2296_v10  ;;  %v2367_v11 = vpop.f32.mrf.mxu1  ;;  %v2757_v8 = vpop.xlane.xlu2 %2756 }
 0x694   : > { %v6288_v26 = vpop.f32.mrf.mxu0  ;;  %3811 = vrcp.f32 %v2757_v8  ;;  %v2929_v50 = vand.u32 2147483648, %v2757_v8  ;;  %vm2923_vm11 = vweird.f32 %v2757_v8  ;;  %v2927_v36 = vand.u32 2147483647, %v2757_v8 }
 0x695   : > { %v2305_v35 = vpack.c.bf16 %v2297_v53, %v2282_v27 }
 0x696   : > { %v2930_v0 = vor.u32 1.1754944e-38, %v2929_v50  ;;  %vm2928_vm14 = vcmp.eq.f32.partialorder %v2927_v36, 8.507059e+37 }
 0x697   : > { %1727 = vrot.lane.b32.xlu1 %v1682_v56, %s3886_s7  ;;  %2389 = vmatmul.bf16.gmra.mxu1 %v2305_v35 }
 0x699   : > { %v6310_v18 = vpop.xlane.xlu1 %2760 }
 0x69a   : > { %vm2953_vm7 = vweird.f32 %v6310_v18 }
 0x69b   : > { %1695 = vrot.lane.b32.xlu0 %v6145_v7, %s3884_s8  ;;  %v2370_v30 = vpop.f32.mrf.mxu1  ;;  %v3812_v7 = vpop.eup %3811 }
 0x69c   : > { %v2919_v24 = vmul.f32 %v3812_v7, %v2757_v8  ;;  %vm2924_vm10 = vweird.f32 %v3812_v7 }
 0x69d   : > { %vm6323_vm12 = vmor %vm2923_vm11, %vm2924_vm10  ;;  %vm1030_vm10 = vcmask 195584  }
 0x69e   : > { %v2920_v59 = vsub.f32 1.0, %v2919_v24 }
 0x6a0   : > { %v2921_v3 = vmul.f32 %v3812_v7, %v2920_v59 }
 0x6a2   : > { %v2922_v62 = vadd.f32 %v3812_v7, %v2921_v3  ;;  %v2957_v3 = vand.u32 2147483647, %v6310_v18 }
 0x6a3   : > { %2399 = vrot.lane.b32.xlu0 %v2365_v49, %s3884_s8  ;;  %v2372_v25 = vpop.f32.mrf.mxu1 }
 0x6a4   : > { %v2926_v47 = vsel %vm6323_vm12, %v3812_v7, %v2922_v62 }
 0x6a5   : > { %v2931_v10 = vsel %vm2928_vm14, %v2930_v0, %v2926_v47 }
 0x6ab   : > { %2401 = vrot.lane.b32.xlu0 %v2367_v11, %s3884_s8  ;;  %v6291_v20 = vpop.f32.mrf.mxu0  ;;  %v2932_v11 = vmul.f32 %v5969_v5, %v2931_v10 }
 0x6af   : > { %v6302_v22 = vpop.xlane.xlu2 %2762 }
 0x6b0   : > { %3813 = vrcp.f32 %v6302_v22  ;;  %v2974_v37 = vand.u32 2147483648, %v6302_v22  ;;  %vm2968_vm6 = vweird.f32 %v6302_v22  ;;  %v2972_v41 = vand.u32 2147483647, %v6302_v22 }
 0x6b2   : > { %v2975_v62 = vor.u32 1.1754944e-38, %v2974_v37  ;;  %vm2973_vm12 = vcmp.eq.f32.partialorder %v2972_v41, 8.507059e+37 }
 0x6b3   : > { %2403 = vrot.lane.b32.xlu0 %v2370_v30, %s3884_s8  ;;  %v6297_v17 = vpop.f32.mrf.mxu0 }
 0x6b6   : > { %v6316_v14 = vpop.eup %3813 }
 0x6b7   : > { %v2964_v63 = vmul.f32 %v6316_v14, %v6302_v22  ;;  %v978_v55 = vpop.permute.xlu2 %977  ;;  %vm2969_vm4 = vweird.f32 %v6316_v14 }
 0x6b8   : > { %vm6357_vm8 = vmor %vm2968_vm6, %vm2969_vm4 }
 0x6b9   : > { %v2965_v2 = vsub.f32 1.0, %v2964_v63  ;;  %v6334_v39 = vpop.xlane.xlu1 %2766 }
 0x6ba   : > { %v2759_v16 = vpop.xlane.xlu0 %2758  ;;  %vm2998_vm4 = vweird.f32 %v6334_v39 }
 0x6bb   : > { %3815 = vrcp.f32 %v2759_v16  ;;  %2405 = vrot.lane.b32.xlu0 %v2372_v25, %s3884_s8  ;;  %v2375_v54 = vpop.f32.mrf.mxu1  ;;  %v3075_v12 = vpop.f32.mrf.mxu0  ;;  %v2944_v15 = vand.u32 2147483648, %v2759_v16  ;;  %v2942_v40 = vand.u32 2147483647, %v2759_v16  ;;  %vm2938_vm15 = vweird.f32 %v2759_v16 }
 0x6bc   : > { %3817 = vrcp.f32 %v6310_v18  ;;  %2415 = vrot.lane.b32.xlu2 %v2375_v54, %s3885_s6  ;;  %v2966_v49 = vmul.f32 %v6316_v14, %v2965_v2 }
 0x6bd   : > { %v2945_v13 = vor.u32 1.1754944e-38, %v2944_v15  ;;  %vm2943_vm3 = vcmp.eq.f32.partialorder %v2942_v40, 8.507059e+37 }
 0x6be   : > { %v2967_v25 = vadd.f32 %v6316_v14, %v2966_v49 }
 0x6bf   : > { %v996_v6 = vpop.permute.xlu2 %995 }
 0x6c0   : > { %v2971_v22 = vsel %vm6357_vm8, %v6316_v14, %v2967_v25  ;;  %v3002_v25 = vand.u32 2147483647, %v6334_v39 }
 0x6c1   : > { %v3816_v33 = vpop.eup %3815 }
 0x6c2   : > { %v6318_v48 = vpop.eup %3817  ;;  %v2934_v29 = vmul.f32 %v3816_v33, %v2759_v16  ;;  %vm2939_vm13 = vweird.f32 %v3816_v33  ;;  %v6332_v61 = vpop.xlane.xlu0 %2764  ;;  %v2959_v16 = vand.u32 2147483648, %v6310_v18 }
 0x6c3   : > { %3109 = vrot.lane.b32.xlu0 %v3075_v12, %s3884_s8  ;;  %v2377_v60 = vpop.f32.mrf.mxu1  ;;  %v2949_v52 = vmul.f32 %v6318_v48, %v6310_v18  ;;  %vm2940_vm2 = vmor %vm2938_vm15, %vm2939_vm13  ;;  %v3077_v53 = vpop.f32.mrf.mxu0  ;;  %3819 = vrcp.f32 %v6332_v61  ;;  %vm2954_vm5 = vweird.f32 %v6318_v48  ;;  %vm2958_vm13 = vcmp.eq.f32.partialorder %v2957_v3, 8.507059e+37 }
 0x6c4   : > { %v2935_v21 = vsub.f32 1.0, %v2934_v29  ;;  %2417 = vrot.lane.b32.xlu2 %v2377_v60, %s3885_s6  ;;  %3821 = vrcp.f32 %v6334_v39  ;;  %vm6367_vm11 = vmor %vm2953_vm7, %vm2954_vm5  ;;  %v1021_v29 = vsel %vm394_vm1, %v5831_v43, %v978_v55  ;;  %v2989_v49 = vand.u32 2147483648, %v6332_v61 }
 0x6c5   : > { %v2950_v27 = vsub.f32 1.0, %v2949_v52  ;;  %v2976_v52 = vsel %vm2973_vm12, %v2975_v62, %v2971_v22  ;;  %vm3003_vm7 = vcmp.eq.f32.partialorder %v3002_v25, 8.507059e+37 }
 0x6c6   : > { %v2936_v58 = vmul.f32 %v3816_v33, %v2935_v21  ;;  %v2960_v21 = vor.u32 1.1754944e-38, %v2959_v16  ;;  %v2977_v47 = vmul.f32 %v6094_v23, %v2976_v52 }
 0x6c7   : > { %v2951_v30 = vmul.f32 %v6318_v48, %v2950_v27  ;;  %v998_v0 = vpop.permute.xlu2 %997 }
 0x6c8   : > { %v2937_v42 = vadd.f32 %v3816_v33, %v2936_v58 }
 0x6c9   : > { %v6346_v24 = vpop.eup %3819 }
 0x6ca   : > { %v2941_v56 = vsel %vm2940_vm2, %v3816_v33, %v2937_v42  ;;  %v6353_v59 = vpop.eup %3821  ;;  %v2979_v12 = vmul.f32 %v6346_v24, %v6332_v61  ;;  %vm2984_vm14 = vweird.f32 %v6346_v24  ;;  %vm2983_vm2 = vweird.f32 %v6332_v61 }
 0x6cb   : > { %3111 = vrot.lane.b32.xlu0 %v3077_v53, %s3884_s8  ;;  %v2946_v35 = vsel %vm2943_vm3, %v2945_v13, %v2941_v56  ;;  %v2380_v45 = vpop.f32.mrf.mxu1  ;;  %v2994_v18 = vmul.f32 %v6353_v59, %v6334_v39  ;;  %v6808_v13 = vld [vmem:[#allocation6_spill] sm:$0xff]  ;;  %vm2999_vm15 = vweird.f32 %v6353_v59  ;;  %vm6402_vm3 = vmor %vm2983_vm2, %vm2984_vm14 }
 0x6cc   : > { %v2947_v8 = vmul.f32 %v6124_v46, %v2946_v35  ;;  %2419 = vrot.lane.b32.xlu2 %v2380_v45, %s3885_s6  ;;  %v2952_v46 = vadd.f32 %v6318_v48, %v2951_v30  ;;  %v2980_v43 = vsub.f32 1.0, %v2979_v12  ;;  %v2987_v30 = vand.u32 2147483647, %v6332_v61  ;;  %vm6411_vm5 = vmor %vm2998_vm4, %vm2999_vm15 }
 0x6cd   : > { %v2995_v40 = vsub.f32 1.0, %v2994_v18  ;;  %v3004_v45 = vand.u32 2147483648, %v6334_v39 }
 0x6ce   : > { %v3013_v7 = vpack.c.bf16 %v2947_v8, %v2932_v11  ;;  %v2956_v14 = vsel %vm6367_vm11, %v6318_v48, %v2952_v46  ;;  %v2981_v48 = vmul.f32 %v6346_v24, %v2980_v43  ;;  %v2990_v46 = vor.u32 1.1754944e-38, %v2989_v49 }
 0x6cf   : > { %v2961_v58 = vsel %vm2958_vm13, %v2960_v21, %v2956_v14  ;;  %v2996_v42 = vmul.f32 %v6353_v59, %v2995_v40  ;;  %vm2988_vm6 = vcmp.eq.f32.partialorder %v2987_v30, 8.507059e+37  ;;  %v1000_v41 = vpop.permute.xlu2 %999  ;;  %v3005_v3 = vor.u32 1.1754944e-38, %v3004_v45 }
 0x6d0   : > { %3089 = vmatmul.bf16.gmra.mxu0 %v3013_v7  ;;  %v2962_v2 = vmul.f32 %v5990_v9, %v2961_v58  ;;  %v2982_v23 = vadd.f32 %v6346_v24, %v2981_v48 }
 0x6d1   : > { %v1010_v5 = vpop.permute.xlu1 %1009  ;;  %v2997_v8 = vadd.f32 %v6353_v59, %v2996_v42 }
 0x6d2   : > { %v3014_v53 = vpack.c.bf16 %v2977_v47, %v2962_v2  ;;  %v2986_v37 = vsel %vm6402_vm3, %v6346_v24, %v2982_v23 }
 0x6d3   : > { %v2382_v36 = vpop.f32.mrf.mxu1  ;;  %v3001_v39 = vsel %vm6411_vm5, %v6353_v59, %v2997_v8  ;;  %v2991_v22 = vsel %vm2988_vm6, %v2990_v46, %v2986_v37 }
 0x6d4   : > { %2421 = vrot.lane.b32.xlu2 %v2382_v36, %s3885_s6  ;;  %v6814_v36 = vld [vmem:[#allocation11_spill] sm:$0xff] }
 0x6d5   : > { %v994_v50 = vpop.permute.xlu0 %993 }
 0x6d6   : > { %v1026_v63 = vsel %vm1025_vm9, %v1021_v29, %v994_v50  ;;  %v3080_v19 = vpop.f32.mrf.mxu0  ;;  %v3006_v29 = vsel %vm3003_vm7, %v3005_v3, %v3001_v39  ;;  %v2992_v50 = vmul.f32 %v6172_v38, %v2991_v22 }
 0x6d7   : > { %v1031_v60 = vsel %vm1030_vm10, %v1026_v63, %v1010_v5  ;;  %3113 = vrot.lane.b32.xlu0 %v3080_v19, %s3884_s8  ;;  %v3007_v59 = vmul.f32 %v6118_v4, %v3006_v29  ;;  %v1706_v19 = vpop.permute.xlu2 %1705 }
 0x6d8   : > { %3515 = vmatmul.msk.f32.vlgmr.msra.gmra.mxu2 %vm232_vm0, %v1031_v60 }
 0x6d9   : > { %v1012_v15 = vpop.permute.xlu1 %1011  ;;  %v3015_v14 = vpack.c.bf16 %v3007_v59, %v2992_v50 }
 0x6dd   : > { %v980_v55 = vpop.permute.xlu0 %979 }
 0x6de   : > { %v1022_v10 = vsel %vm394_vm1, %v6808_v13, %v980_v55  ;;  %v2385_v27 = vpop.f32.mrf.mxu1  ;;  %v3082_v35 = vpop.f32.mrf.mxu0 }
 0x6df   : > { %v1027_v56 = vsel %vm1025_vm9, %v1022_v10, %v996_v6  ;;  %2431 = vrot.lane.b32.xlu1 %v2385_v27, %s3886_s7  ;;  %3115 = vrot.lane.b32.xlu0 %v3082_v35, %s3884_s8  ;;  %v6813_v6 = vld [vmem:[#allocation15_spill] sm:$0xff]  ;;  %v1708_v40 = vpop.permute.xlu2 %1707  ;;  %v6815_v35 = vld [vmem:[#allocation10_spill] sm:$0xff] }
 0x6e0   : > { %3094 = vmatmul.bf16.gmra.mxu0 %v3014_v53  ;;  %v1032_v9 = vsel %vm1030_vm10, %v1027_v56, %v1012_v15 }
 0x6e1   : > { %v1014_v11 = vpop.permute.xlu1 %1013  ;;  %3516 = vmatmul.msk.f32.gmra.mxu2 %vm232_vm0, %v1032_v9 }
 0x6e5   : > { %v982_v61 = vpop.permute.xlu0 %981 }
 0x6e6   : > { %v1023_v16 = vsel %vm394_vm1, %v6813_v6, %v982_v61  ;;  %v2387_v54 = vpop.f32.mrf.mxu1  ;;  %v3085_v24 = vpop.f32.mrf.mxu0 }
 0x6e7   : > { %v1028_v12 = vsel %vm1025_vm9, %v1023_v16, %v998_v0  ;;  %2433 = vrot.lane.b32.xlu1 %v2387_v54, %s3886_s7  ;;  %3125 = vrot.lane.b32.xlu2 %v3085_v24, %s3885_s6  ;;  %v1710_v42 = vpop.permute.xlu2 %1709 }
 0x6e8   : > { %v1033_v33 = vsel %vm1030_vm10, %v1028_v12, %v1014_v11 }
 0x6e9   : > { %v1016_v62 = vpop.permute.xlu1 %1015  ;;  %3517 = vmatmul.msk.f32.gmra.mxu2 %vm232_vm0, %v1033_v33 }
 0x6ed   : > { %v984_v18 = vpop.permute.xlu0 %983 }
 0x6ee   : > { %v1024_v63 = vsel %vm394_vm1, %v6814_v36, %v984_v18  ;;  %v3087_v60 = vpop.f32.mrf.mxu0 }
 0x6ef   : > { %v1029_v21 = vsel %vm1025_vm9, %v1024_v63, %v1000_v41  ;;  %3127 = vrot.lane.b32.xlu2 %v3087_v60, %s3885_s6 }
 0x6f0   : > { %3099 = vmatmul.bf16.gmra.mxu0 %v3015_v14  ;;  %v1034_v52 = vsel %vm1030_vm10, %v1029_v21, %v1016_v62 }
 0x6f1   : > { %v1722_v43 = vpop.permute.xlu1 %1721  ;;  %3518 = vmatmul.msk.f32.gmra.mxu2 %vm232_vm0, %v1034_v52 }
 0x6f5   : > { %v1690_v38 = vpop.permute.xlu0 %1689 }
 0x6f6   : > { %v1733_v4 = vsel %vm394_vm1, %v5930_v1, %v1690_v38 }
 0x6f7   : > { %v1737_v15 = vsel %vm1025_vm9, %v1733_v4, %v1706_v19 }
 0x6f8   : > { %v1741_v58 = vsel %vm1030_vm10, %v1737_v15, %v1722_v43 }
 0x6f9   : > { %3519 = vmatmul.msk.f32.gmra.mxu2 %vm232_vm0, %v1741_v58  ;;  %v1724_v47 = vpop.permute.xlu1 %1723 }
 0x6fd   : > { %v1692_v48 = vpop.permute.xlu0 %1691 }
 0x6fe   : > { %v1734_v0 = vsel %vm394_vm1, %v5954_v31, %v1692_v48  ;;  %v1712_v31 = vpop.permute.xlu2 %1711 }
 0x6ff   : > { %v1738_v2 = vsel %vm1025_vm9, %v1734_v0, %v1708_v40 }
 0x700   : > { %v1742_v55 = vsel %vm1030_vm10, %v1738_v2, %v1724_v47 }
 0x701   : > { %3520 = vmatmul.msk.f32.gmra.mxu2 %vm232_vm0, %v1742_v55  ;;  %v1726_v1 = vpop.permute.xlu1 %1725 }
 0x705   : > { %v1694_v13 = vpop.permute.xlu0 %1693 }
 0x706   : > { %v1735_v10 = vsel %vm394_vm1, %v5971_v32, %v1694_v13 }
 0x707   : > { %v1739_v27 = vsel %vm1025_vm9, %v1735_v10, %v1710_v42 }
 0x708   : > { %v1743_v53 = vsel %vm1030_vm10, %v1739_v27, %v1726_v1 }
 0x709   : > { %3521 = vmatmul.msk.f32.gmra.mxu2 %vm232_vm0, %v1743_v53  ;;  %v1728_v9 = vpop.permute.xlu1 %1727 }
 0x70d   : > { %v1696_v56 = vpop.permute.xlu0 %1695 }
 0x70e   : > { %v1736_v23 = vsel %vm394_vm1, %v6815_v35, %v1696_v56 }
 0x70f   : > { %v1740_v49 = vsel %vm1025_vm9, %v1736_v23, %v1712_v31 }
 0x710   : > { %v1744_v11 = vsel %vm1030_vm10, %v1740_v49, %v1728_v9 }
 0x711   : > { %3522 = vmatmul.msk.f32.gmra.mxu2 %vm232_vm0, %v1744_v11 }
 0x714   : > { %v2390_v8 = vpop.f32.mrf.mxu1 }
 0x715   : > { %2435 = vrot.lane.b32.xlu1 %v2390_v8, %s3886_s7  ;;  %v2400_v30 = vpop.permute.xlu0 %2399 }
 0x716   : > { %v2416_v45 = vpop.permute.xlu2 %2415  ;;  %v2443_v25 = vsel %vm394_vm1, %v6246_v44, %v2400_v30 }
 0x717   : > { %v2447_v37 = vsel %vm1025_vm9, %v2443_v25, %v2416_v45 }
 0x71c   : > { %v2392_v32 = vpop.f32.mrf.mxu1 }
 0x71d   : > { %2437 = vrot.lane.b32.xlu1 %v2392_v32, %s3886_s7  ;;  %v2402_v61 = vpop.permute.xlu0 %2401 }
 0x71e   : > { %v2444_v6 = vsel %vm394_vm1, %v6255_v57, %v2402_v61  ;;  %v2418_v16 = vpop.permute.xlu2 %2417 }
 0x71f   : > { %v2448_v44 = vsel %vm1025_vm9, %v2444_v6, %v2418_v16 }
 0x725   : > { %v2404_v14 = vpop.permute.xlu0 %2403 }
 0x726   : > { %v2420_v21 = vpop.permute.xlu2 %2419  ;;  %v2445_v19 = vsel %vm394_vm1, %v6260_v51, %v2404_v14 }
 0x727   : > { %v2449_v43 = vsel %vm1025_vm9, %v2445_v19, %v2420_v21 }
 0x72d   : > { %v2406_v15 = vpop.permute.xlu0 %2405 }
 0x72e   : > { %v2446_v40 = vsel %vm394_vm1, %v6272_v34, %v2406_v15  ;;  %v2422_v47 = vpop.permute.xlu2 %2421 }
 0x72f   : > { %v2450_v48 = vsel %vm1025_vm9, %v2446_v40, %v2422_v47 }
 0x735   : > { %v3110_v34 = vpop.permute.xlu0 %3109 }
 0x736   : > { %v3153_v10 = vsel %vm394_vm1, %v6285_v28, %v3110_v34 }
 0x73d   : > { %v3112_v31 = vpop.permute.xlu0 %3111 }
 0x73e   : > { %v3154_v9 = vsel %vm394_vm1, %v6288_v26, %v3112_v31 }
 0x741   : > { %v3126_v13 = vpop.permute.xlu2 %3125 }
 0x742   : > { %v3157_v27 = vsel %vm1025_vm9, %v3153_v10, %v3126_v13 }
 0x749   : > { %v3128_v35 = vpop.permute.xlu2 %3127  ;;  %v3114_v8 = vpop.permute.xlu0 %3113 }
 0x74a   : > { %v3158_v49 = vsel %vm1025_vm9, %v3154_v9, %v3128_v35 }
 0x74d   : > { %v3090_v7 = vpop.f32.mrf.mxu0 }
 0x74e   : > { %3129 = vrot.lane.b32.xlu2 %v3090_v7, %s3885_s6  ;;  %v3155_v7 = vsel %vm394_vm1, %v6291_v20, %v3114_v8 }
 0x751   : > { %v2432_v5 = vpop.permute.xlu1 %2431 }
 0x752   : > { %v2451_v46 = vsel %vm1030_vm10, %v2447_v37, %v2432_v5  ;;  %v3116_v5 = vpop.permute.xlu0 %3115 }
 0x753   : > { %3523 = vmatmul.msk.f32.gmra.mxu2 %vm232_vm0, %v2451_v46 }
 0x755   : > { %v3092_v41 = vpop.f32.mrf.mxu0 }
 0x756   : > { %3131 = vrot.lane.b32.xlu2 %v3092_v41, %s3885_s6  ;;  %v3156_v41 = vsel %vm394_vm1, %v6297_v17, %v3116_v5 }
 0x759   : > { %v2434_v54 = vpop.permute.xlu1 %2433 }
 0x75a   : > { %v2452_v39 = vsel %vm1030_vm10, %v2448_v44, %v2434_v54 }
 0x75b   : > { %v3234_v3 = vpop.f32.mrf.mxu2  ;;  %3524 = vmatmul.msk.f32.gmra.mxu2 %vm232_vm0, %v2452_v39 }
 0x75c   : > { %3823 = vtanh.f32 %v3234_v3 }
 0x75d   : > { %v3095_v12 = vpop.f32.mrf.mxu0 }
 0x75e   : > { %3141 = vrot.lane.b32.xlu1 %v3095_v12, %s3886_s7 }
 0x762   : > { %v3824_v57 = vpop.eup %3823 }
 0x763   : > { %3298 = vst.msk [vmem:[%s6473_s20] sm:$0xff] %vm232_vm0, %v3824_v57 }
 0x764   : > { %v3237_v24 = vpop.f32.mrf.mxu2 }
 0x765   : > { %3825 = vtanh.f32 %v3237_v24  ;;  %v3097_v22 = vpop.f32.mrf.mxu0 }
 0x766   : > { %3143 = vrot.lane.b32.xlu1 %v3097_v22, %s3886_s7 }
 0x76b   : > { %v3826_v33 = vpop.eup %3825 }
 0x76c   : > { %3299 = vst.msk [vmem:[%s6473_s20 + $0x8] sm:$0xff] %vm232_vm0, %v3826_v33  ;;  %v3240_v62 = vpop.f32.mrf.mxu2 }
 0x76d   : > { %3827 = vtanh.f32 %v3240_v62  ;;  %v3100_v29 = vpop.f32.mrf.mxu0 }
 0x76e   : > { %3145 = vrot.lane.b32.xlu1 %v3100_v29, %s3886_s7 }
 0x773   : > { %v3828_v50 = vpop.eup %3827 }
 0x774   : > { %3300 = vst.msk [vmem:[%s6473_s20 + $0x10] sm:$0xff] %vm232_vm0, %v3828_v50  ;;  %v3243_v59 = vpop.f32.mrf.mxu2 }
 0x775   : > { %3829 = vtanh.f32 %v3243_v59  ;;  %v3102_v18 = vpop.f32.mrf.mxu0 }
 0x776   : > { %3147 = vrot.lane.b32.xlu1 %v3102_v18, %s3886_s7 }
 0x77b   : > { %v3830_v36 = vpop.eup %3829 }
 0x77c   : > { %3301 = vst.msk [vmem:[%s6473_s20 + $0x18] sm:$0xff] %vm232_vm0, %v3830_v36  ;;  %v3246_v63 = vpop.f32.mrf.mxu2 }
 0x77d   : > { %3831 = vtanh.f32 %v3246_v63 }
 0x783   : > { %v3832_v60 = vpop.eup %3831 }
 0x784   : > { %3302 = vst.msk [vmem:[%s6473_s20 + $0x20] sm:$0xff] %vm232_vm0, %v3832_v60  ;;  %v3249_v52 = vpop.f32.mrf.mxu2 }
 0x785   : > { %3833 = vtanh.f32 %v3249_v52 }
 0x787   : > { %v2436_v38 = vpop.permute.xlu1 %2435 }
 0x788   : > { %v2453_v4 = vsel %vm1030_vm10, %v2449_v43, %v2436_v38 }
 0x789   : > { %3525 = vmatmul.msk.f32.gmra.mxu2 %vm232_vm0, %v2453_v4 }
 0x78b   : > { %v3834_v58 = vpop.eup %3833 }
 0x78c   : > { %3303 = vst.msk [vmem:[%s6473_s20 + $0x28] sm:$0xff] %vm232_vm0, %v3834_v58  ;;  %v3252_v51 = vpop.f32.mrf.mxu2 }
 0x78d   : > { %3835 = vtanh.f32 %v3252_v51 }
 0x78f   : > { %v2438_v0 = vpop.permute.xlu1 %2437 }
 0x790   : > { %v2454_v2 = vsel %vm1030_vm10, %v2450_v48, %v2438_v0 }
 0x791   : > { %3526 = vmatmul.msk.f32.gmra.mxu2 %vm232_vm0, %v2454_v2 }
 0x793   : > { %v3836_v55 = vpop.eup %3835 }
 0x794   : > { %3304 = vst.msk [vmem:[%s6473_s20 + $0x30] sm:$0xff] %vm232_vm0, %v3836_v55  ;;  %v3255_v42 = vpop.f32.mrf.mxu2 }
 0x795   : > { %3837 = vtanh.f32 %v3255_v42 }
 0x79b   : > { %v3838_v1 = vpop.eup %3837 }
 0x79c   : > { %3305 = vst.msk [vmem:[%s6473_s20 + $0x38] sm:$0xff] %vm232_vm0, %v3838_v1 }
 0x7a8   : > { %v3130_v32 = vpop.permute.xlu2 %3129 }
 0x7a9   : > { %v3159_v26 = vsel %vm1025_vm9, %v3155_v7, %v3130_v32 }
 0x7b0   : > { %v3132_v61 = vpop.permute.xlu2 %3131 }
 0x7b1   : > { %v3160_v20 = vsel %vm1025_vm9, %v3156_v41, %v3132_v61 }
 0x7d0   : > { %v3142_v53 = vpop.permute.xlu1 %3141 }
 0x7d1   : > { %v3161_v56 = vsel %vm1030_vm10, %v3157_v27, %v3142_v53 }
 0x7d2   : > { %3527 = vmatmul.msk.f32.gmra.mxu2 %vm232_vm0, %v3161_v56 }
 0x7d6   : > { %v3258_v23 = vpop.f32.mrf.mxu2 }
 0x7d7   : > { %3839 = vtanh.f32 %v3258_v23 }
 0x7d8   : > { %v3144_v11 = vpop.permute.xlu1 %3143 }
 0x7d9   : > { %v3162_v28 = vsel %vm1030_vm10, %v3158_v49, %v3144_v11 }
 0x7da   : > { %3528 = vmatmul.msk.f32.gmra.mxu2 %vm232_vm0, %v3162_v28 }
 0x7dd   : > { %v3840_v30 = vpop.eup %3839 }
 0x7de   : > { %3306 = vst.msk [vmem:[%s6473_s20 + $0x40] sm:$0xff] %vm232_vm0, %v3840_v30  ;;  %v3261_v45 = vpop.f32.mrf.mxu2 }
 0x7df   : > { %3841 = vtanh.f32 %v3261_v45 }
 0x7e0   : > { %v3146_v25 = vpop.permute.xlu1 %3145 }
 0x7e1   : > { %v3163_v37 = vsel %vm1030_vm10, %v3159_v26, %v3146_v25 }
 0x7e2   : > { %3529 = vmatmul.msk.f32.gmra.mxu2 %vm232_vm0, %v3163_v37 }
 0x7e5   : > { %v3842_v46 = vpop.eup %3841 }
 0x7e6   : > { %3307 = vst.msk [vmem:[%s6473_s20 + $0x48] sm:$0xff] %vm232_vm0, %v3842_v46 }
 0x7e8   : > { %v3148_v6 = vpop.permute.xlu1 %3147 }
 0x7e9   : > { %v3164_v16 = vsel %vm1030_vm10, %v3160_v20, %v3148_v6 }
 0x7ea   : > { %3530 = vmatmul.msk.f32.gmra.mxu2 %vm232_vm0, %v3164_v16 }
 0x80c   : > { %v3264_v44 = vpop.f32.mrf.mxu2 }
 0x80d   : > { %3843 = vtanh.f32 %v3264_v44 }
 0x813   : > { %v3844_v54 = vpop.eup %3843 }
 0x814   : > { %3308 = vst.msk [vmem:[%s6473_s20 + $0x50] sm:$0xff] %vm232_vm0, %v3844_v54  ;;  %v3267_v39 = vpop.f32.mrf.mxu2 }
 0x815   : > { %3845 = vtanh.f32 %v3267_v39 }
 0x81b   : > { %v3846_v3 = vpop.eup %3845 }
 0x81c   : > { %3309 = vst.msk [vmem:[%s6473_s20 + $0x58] sm:$0xff] %vm232_vm0, %v3846_v3 }
 0x855   : > { %v3270_v17 = vpop.f32.mrf.mxu2 }
 0x856   : > { %3847 = vtanh.f32 %v3270_v17 }
 0x85c   : > { %v3848_v12 = vpop.eup %3847 }
 0x85d   : > { %3310 = vst.msk [vmem:[%s6473_s20 + $0x60] sm:$0xff] %vm232_vm0, %v3848_v12  ;;  %v3273_v57 = vpop.f32.mrf.mxu2 }
 0x85e   : > { %3849 = vtanh.f32 %v3273_v57 }
 0x864   : > { %v3850_v24 = vpop.eup %3849 }
 0x865   : > { %3311 = vst.msk [vmem:[%s6473_s20 + $0x68] sm:$0xff] %vm232_vm0, %v3850_v24  ;;  %v3276_v22 = vpop.f32.mrf.mxu2 }
 0x866   : > { %3851 = vtanh.f32 %v3276_v22 }
 0x86c   : > { %v3852_v33 = vpop.eup %3851 }
 0x86d   : > { %3312 = vst.msk [vmem:[%s6473_s20 + $0x70] sm:$0xff] %vm232_vm0, %v3852_v33  ;;  %v3279_v62 = vpop.f32.mrf.mxu2 }
 0x86e   : > { %3853 = vtanh.f32 %v3279_v62 }
 0x874   : > { %v3854_v29 = vpop.eup %3853 }
 0x875   : > { %3313 = vst.msk [vmem:[%s6473_s20 + $0x78] sm:$0xff] %vm232_vm0, %v3854_v29 }
 0x876 PF: > { %s14_s15 = sadd.s32 1, %s3877_s15  }
 0x877   : > { %p11_p4 = scmp.ge.s32.totalorder %s14_s15, 6  }
 0x879   :  { %13 = sbr.rel (!%p11_p4) target bundleno = 1 (0x1), region = 66 }

</bundles_post_ra>
